<compile_context>
chip_gen: v5e
topology: v5e:2x2
jax: 0.10.0
libtpu: 0.0.40
codegen_flags: <defaults>
</compile_context>

<pallas_src>
import functools

import jax
import jax.numpy as jnp
from jax.experimental import pallas as pl
from jax.experimental.pallas import tpu as pltpu

# ----------------------------- model hyper-params (small, synthetic) -----------------------------
IN_CH = 3          # input image channels
C1 = 8             # extractor conv1 channels
C2 = 16            # extractor conv2 channels (feature map channels)
MID_CH = 16        # RPN intermediate channels
N_ANCHOR = 9       # 3 ratios x 3 scales
ROI_SIZE = 7       # head RoI pooling output size
FC_DIM = 32        # head fc width
N_CLASS = 4        # background + 3 foreground classes
FEAT_STRIDE = 4    # two stride-2 convs in the extractor
N_POST = 8         # proposals kept per image (stand-in for NMS top-k)

LANE = 128


def _round_up(x, m):
    return (x + m - 1) // m * m


def _pick_vmem_limit():
    # Generation-aware scoped-VMEM budget: ~3/4 of physical, capped at 64 MiB.
    #   v5e/v6e: 128 MiB physical -> 64 MiB; v7x: 64 MiB physical -> 48 MiB.
    try:
        cap = int(pltpu.get_tpu_info().vmem_capacity_bytes)
    except Exception:
        cap = 128 * 1024 * 1024
    return min(cap * 3 // 4, 64 * 1024 * 1024)


VMEM_LIMIT = _pick_vmem_limit()


# ----------------------------- conv kernel (tap-accumulation, row-tiled) -----------------------------
def _conv_kernel(x_ref, w_ref, b_ref, *rest, kh, kw, out_w, row_tile, relu, fused_head):
    """Stride-1 conv over a row tile of the output.

    x_ref : (1, Hs, Ws, cin) bf16   whole (padded / space-to-depth'd) image, resident per batch elem
    w_ref : (kh*kw, cin, Np) bf16   resident tap weights (Np = cout padded to 128)
    b_ref : (1, Np) f32             resident bias
    optional fused 1x1 head: hw_ref (Np, Hp) bf16, hb_ref (1, Hp) f32
    o_ref : (1, row_tile, out_w, Np or Hp)

    Per tap: one fat matmul with M = row_tile*out_w (instead of one tiny dot per row).
    """
    if fused_head:
        hw_ref, hb_ref, o_ref = rest
    else:
        (o_ref,) = rest

    y0 = pl.program_id(1) * row_tile
    np_ = w_ref.shape[2]
    m = row_tile * out_w
    acc = jnp.zeros((m, np_), jnp.float32)
    for i in range(kh):                       # kh*kw <= 9 taps: small fixed unroll
        for j in range(kw):
            slab = x_ref[0, pl.ds(y0 + i, row_tile), pl.ds(j, out_w), :]   # (row_tile, out_w, cin)
            acc = acc + jnp.dot(slab.reshape(m, slab.shape[-1]), w_ref[i * kw + j],
                                preferred_element_type=jnp.float32)
    acc = acc + b_ref[...]
    if relu:
        acc = jnp.maximum(acc, 0.0)
    if fused_head:
        # 1x1 head epilogue in VMEM -> the intermediate feature map never hits HBM.
        mid = acc.astype(jnp.bfloat16)
        acc = jnp.dot(mid, hw_ref[...], preferred_element_type=jnp.float32) + hb_ref[...]
    o_ref[0] = acc.reshape(row_tile, out_w, acc.shape[-1]).astype(o_ref.dtype)


def conv3x3(x_nhwc, w33, b, *, stride, relu, head_w=None, head_b=None, out_dtype=jnp.bfloat16):
    """3x3 conv, pad=1, stride in {1,2}.  w33: (3*3*Cin_logical, Cout), rows ordered (i, j, c).

    The input may carry 128-padded channels from the previous layer (extra channels are
    exact zeros); the weight cin is zero-padded to match, so no activation slicing happens.
    stride==2 is rewritten as a stride-1 2x2 conv over a space-to-depth input.
    Output channels are padded to 128 lanes and CARRIED (bf16) to the next layer.
    """
    N, H, W, cphys = x_nhwc.shape
    cin_log = w33.shape[0] // 9
    cout = w33.shape[1]

    w4 = w33.reshape(3, 3, cin_log, cout)
    if cphys > cin_log:
        w4 = jnp.pad(w4, ((0, 0), (0, 0), (0, cphys - cin_log), (0, 0)))   # match carried padding

    xp = jnp.pad(x_nhwc, ((0, 0), (1, 1), (1, 1), (0, 0)))
    if stride == 2:
        Hp, Wp = H + 2, W + 2
        assert Hp % 2 == 0 and Wp % 2 == 0, "space-to-depth path assumes even padded dims"
        # space-to-depth (pure reshape): (N,Hp,Wp,C) -> (N,Hp/2,Wp/2,4C), channel order (p,q,c)
        x_in = (xp.reshape(N, Hp // 2, 2, Wp // 2, 2, cphys)
                  .transpose(0, 1, 3, 2, 4, 5)
                  .reshape(N, Hp // 2, Wp // 2, 4 * cphys))
        w4p = jnp.pad(w4, ((0, 1), (0, 1), (0, 0), (0, 0)))                  # (4,4,C,Cout)
        weff = w4p.reshape(2, 2, 2, 2, cphys, cout).transpose(0, 2, 1, 3, 4, 5)
        kh = kw = 2
        cin = 4 * cphys
        w_taps = weff.reshape(kh * kw, cin, cout)
        out_h, out_w = Hp // 2 - 1, Wp // 2 - 1
    else:
        kh = kw = 3
        cin = cphys
        x_in = xp
        w_taps = w4.reshape(kh * kw, cin, cout)
        out_h, out_w = H, W

    Np = _round_up(cout, LANE)
    w_taps = jnp.pad(w_taps, ((0, 0), (0, 0), (0, Np - cout))).astype(jnp.bfloat16)
    b_p = jnp.pad(b.astype(jnp.float32), (0, Np - cout)).reshape(1, Np)

    fused = head_w is not None
    if fused:
        hn = head_w.shape[1]
        Hp_ = _round_up(hn, LANE)
        hw = jnp.pad(head_w, ((0, Np - head_w.shape[0]), (0, Hp_ - hn))).astype(jnp.bfloat16)
        hb = jnp.pad(head_b.astype(jnp.float32), (0, Hp_ - hn)).reshape(1, Hp_)
        out_ch = Hp_
    else:
        out_ch = Np

    x_in = x_in.astype(jnp.bfloat16)
    Hs, Ws = x_in.shape[1], x_in.shape[2]

    # Row tiling: multiple of 8 output rows per grid step when possible.
    # TODO(synk): for large images use a halo'd row-window DMA (manual double-buffer)
    #             instead of keeping the full per-image input resident in VMEM.
    row_tile = 8 if out_h % 8 == 0 else out_h
    n_row_tiles = out_h // row_tile

    inputs = [x_in, w_taps, b_p]
    in_specs = [
        pl.BlockSpec((1, Hs, Ws, cin), lambda n, r: (n, 0, 0, 0)),
        pl.BlockSpec((kh * kw, cin, Np), lambda n, r: (0, 0, 0)),   # resident weight
        pl.BlockSpec((1, Np), lambda n, r: (0, 0)),                 # resident bias
    ]
    if fused:
        inputs += [hw, hb]
        in_specs += [pl.BlockSpec((Np, out_ch), lambda n, r: (0, 0)),
                     pl.BlockSpec((1, out_ch), lambda n, r: (0, 0))]

    out = pl.pallas_call(
        functools.partial(_conv_kernel, kh=kh, kw=kw, out_w=out_w, row_tile=row_tile,
                          relu=relu, fused_head=fused),
        out_shape=jax.ShapeDtypeStruct((N, out_h, out_w, out_ch), out_dtype),
        grid=(N, n_row_tiles),
        in_specs=in_specs,
        out_specs=pl.BlockSpec((1, row_tile, out_w, out_ch), lambda n, r: (n, r, 0, 0)),
        compiler_params=pltpu.CompilerParams(
            dimension_semantics=("parallel", "parallel"),   # 2 axes -> both TCs on v7x even at N=1
            vmem_limit_bytes=VMEM_LIMIT),
    )(*inputs)
    return out    # padded-channel layout carried to the consumer (no XLA slice)


# ----------------------------- fused head fc chain -----------------------------
def _head_fc_kernel(x_ref, w1_ref, b1_ref, w2_ref, b2_ref, w3_ref, b3_ref, o_ref):
    h1 = jnp.dot(x_ref[...], w1_ref[...], preferred_element_type=jnp.float32) + b1_ref[...]
    h1 = jnp.maximum(h1, 0.0).astype(jnp.bfloat16)
    h2 = jnp.dot(h1, w2_ref[...], preferred_element_type=jnp.float32) + b2_ref[...]
    h2 = jnp.maximum(h2, 0.0).astype(jnp.bfloat16)
    o_ref[...] = jnp.dot(h2, w3_ref[...], preferred_element_type=jnp.float32) + b3_ref[...]


def head_fc(pooled, w1, b1, w2, b2, w3, b3):
    """fc1 -> ReLU -> fc2 -> ReLU -> fused {cls_loc, score} head in one pallas_call."""
    M, K = pooled.shape
    Mp = _round_up(M, 8)
    F1 = _round_up(w1.shape[1], LANE)
    F2 = _round_up(w2.shape[1], LANE)
    NO = _round_up(w3.shape[1], LANE)

    x = jnp.pad(pooled.astype(jnp.bfloat16), ((0, Mp - M), (0, 0)))
    w1p = jnp.pad(w1, ((0, 0), (0, F1 - w1.shape[1]))).astype(jnp.bfloat16)
    b1p = jnp.pad(b1.astype(jnp.float32), (0, F1 - b1.shape[0])).reshape(1, F1)
    w2p = jnp.pad(w2, ((0, F1 - w2.shape[0]), (0, F2 - w2.shape[1]))).astype(jnp.bfloat16)
    b2p = jnp.pad(b2.astype(jnp.float32), (0, F2 - b2.shape[0])).reshape(1, F2)
    w3p = jnp.pad(w3, ((0, F2 - w3.shape[0]), (0, NO - w3.shape[1]))).astype(jnp.bfloat16)
    b3p = jnp.pad(b3.astype(jnp.float32), (0, NO - b3.shape[0])).reshape(1, NO)

    out = pl.pallas_call(
        _head_fc_kernel,
        out_shape=jax.ShapeDtypeStruct((Mp, NO), jnp.float32),
        compiler_params=pltpu.CompilerParams(vmem_limit_bytes=VMEM_LIMIT),
    )(x, w1p, b1p, w2p, b2p, w3p, b3p)
    return out[:M]


# ----------------------------- proposal decode -----------------------------
def _loc2bbox_kernel(anc_ref, loc_ref, out_ref, *, hmax, wmax):
    # anc/loc/out: (8, Rp); rows 0..3 = (ymin,xmin,ymax,xmax) / (dy,dx,dh,dw); rows 4..7 pad.
    a = anc_ref[...]
    l = loc_ref[...]
    h = a[2:3, :] - a[0:1, :]
    w = a[3:4, :] - a[1:2, :]
    cy = a[0:1, :] + 0.5 * h
    cx = a[1:2, :] + 0.5 * w
    ncy = l[0:1, :] * h + cy
    ncx = l[1:2, :] * w + cx
    # numerical guard: clamp log-size deltas before exp (torchvision-style decode)
    nh = jnp.exp(jnp.minimum(l[2:3, :], 10.0)) * h
    nw = jnp.exp(jnp.minimum(l[3:4, :], 10.0)) * w
    out_ref[0:1, :] = jnp.clip(ncy - 0.5 * nh, 0.0, hmax)
    out_ref[1:2, :] = jnp.clip(ncx - 0.5 * nw, 0.0, wmax)
    out_ref[2:3, :] = jnp.clip(ncy + 0.5 * nh, 0.0, hmax)
    out_ref[3:4, :] = jnp.clip(ncx + 0.5 * nw, 0.0, wmax)
    out_ref[4:8, :] = jnp.zeros((4, out_ref.shape[1]), out_ref.dtype)


def loc2bbox_clip(anchor, loc, hmax, wmax):
    """anchor, loc: (R, 4) -> decoded & clipped boxes (R, 4). One Pallas call on the top-k boxes."""
    R = anchor.shape[0]
    Rp = _round_up(R, LANE)

    def prep(t):   # (R,4) -> (8, Rp): transpose, pad sublanes to 8 / lanes to 128
        return jnp.pad(jnp.transpose(t.astype(jnp.float32)), ((0, 4), (0, Rp - R)))

    out_t = pl.pallas_call(
        functools.partial(_loc2bbox_kernel, hmax=float(hmax), wmax=float(wmax)),
        out_shape=jax.ShapeDtypeStruct((8, Rp), jnp.float32),
    )(prep(anchor), prep(loc))
    return jnp.transpose(out_t[:4])[:R]


# ----------------------------- plain-JAX glue -----------------------------
def generate_anchor_base(base_size, ratios, scales):
    py = px = base_size / 2.0
    rows = []
    for r in ratios:
        for s in scales:
            h = base_size * s * (r ** 0.5)
            w = base_size * s * ((1.0 / r) ** 0.5)
            rows.append([py - h / 2.0, px - w / 2.0, py + h / 2.0, px + w / 2.0])
    return jnp.array(rows, dtype=jnp.float32)


def enumerate_shifted_anchor(anchor_base, feat_stride, hh, ww):
    shift_y = jnp.arange(0, hh * feat_stride, feat_stride, dtype=jnp.float32)
    shift_x = jnp.arange(0, ww * feat_stride, feat_stride, dtype=jnp.float32)
    sx, sy = jnp.meshgrid(shift_x, shift_y)
    shift = jnp.stack([sy.ravel(), sx.ravel(), sy.ravel(), sx.ravel()], axis=1)   # (K, 4)
    anchor = anchor_base[None, :, :] + shift[:, None, :]                          # (K, A, 4)
    return anchor.reshape(-1, 4)


def roi_pool(feat_nhwc, rois, roi_indices, roi_size, spatial_scale):
    # Nearest-neighbor sampling of bin centers (simplified RoI pooling); gather stays in JAX.
    # TODO(synk): true adaptive max RoI pooling has no clean Pallas equivalent here.
    N, Hf, Wf, C = feat_nhwc.shape
    ymin = rois[:, 0] * spatial_scale
    xmin = rois[:, 1] * spatial_scale
    ymax = rois[:, 2] * spatial_scale
    xmax = rois[:, 3] * spatial_scale
    bin_h = (ymax - ymin) / roi_size
    bin_w = (xmax - xmin) / roi_size
    centers = jnp.arange(roi_size, dtype=jnp.float32) + 0.5
    ys = ymin[:, None] + centers[None, :] * bin_h[:, None]
    xs = xmin[:, None] + centers[None, :] * bin_w[:, None]
    yi = jnp.clip(jnp.floor(ys), 0, Hf - 1).astype(jnp.int32)
    xi = jnp.clip(jnp.floor(xs), 0, Wf - 1).astype(jnp.int32)
    out = feat_nhwc[roi_indices[:, None, None], yi[:, :, None], xi[:, None, :], :]
    return out.reshape(rois.shape[0], roi_size * roi_size * C)


# ----------------------------- parameters -----------------------------
def init_params(key):
    ks = jax.random.split(key, 9)
    w = lambda k, s: (jax.random.normal(k, s, jnp.float32) * 0.01)
    z = lambda n: jnp.zeros((n,), jnp.float32)
    return {
        # extractor
        "conv1_w": w(ks[0], (3 * 3 * IN_CH, C1)), "conv1_b": z(C1),
        "conv2_w": w(ks[1], (3 * 3 * C1, C2)),    "conv2_b": z(C2),
        # RPN
        "rpn_conv_w": w(ks[2], (3 * 3 * C2, MID_CH)), "rpn_conv_b": z(MID_CH),
        "rpn_loc_w": w(ks[3], (MID_CH, N_ANCHOR * 4)), "rpn_loc_b": z(N_ANCHOR * 4),
        "rpn_score_w": w(ks[4], (MID_CH, N_ANCHOR * 2)), "rpn_score_b": z(N_ANCHOR * 2),
        # head
        "fc1_w": w(ks[5], (ROI_SIZE * ROI_SIZE * C2, FC_DIM)), "fc1_b": z(FC_DIM),
        "fc2_w": w(ks[6], (FC_DIM, FC_DIM)),                   "fc2_b": z(FC_DIM),
        "cls_loc_w": w(ks[7], (FC_DIM, N_CLASS * 4)),          "cls_loc_b": z(N_CLASS * 4),
        "score_w": w(ks[8], (FC_DIM, N_CLASS)),                "score_b": z(N_CLASS),
    }


# ----------------------------- Faster R-CNN forward -----------------------------
def faster_rcnn_forward(params, x_nchw, scale=1.0):
    """Returns (roi_cls_locs [R',(L+1)*4], roi_scores [R',L+1], rois [R',4], roi_indices [R'])."""
    N, _, H, W = x_nchw.shape
    x = jnp.transpose(x_nchw, (0, 2, 3, 1))                       # NCHW -> NHWC

    # --- extractor: two stride-2 3x3 convs + ReLU (bf16, padded channels carried) ---
    h1 = conv3x3(x, params["conv1_w"], params["conv1_b"], stride=2, relu=True)
    feat = conv3x3(h1, params["conv2_w"], params["conv2_b"], stride=2, relu=True)
    _, Hf, Wf, Cpad = feat.shape

    # --- RPN: 3x3 conv + fused loc/score 1x1 head in ONE kernel (mid never hits HBM) ---
    rpn_head_w = jnp.concatenate([params["rpn_loc_w"], params["rpn_score_w"]], axis=1)
    rpn_head_b = jnp.concatenate([params["rpn_loc_b"], params["rpn_score_b"]], axis=0)
    rpn_out = conv3x3(feat, params["rpn_conv_w"], params["rpn_conv_b"], stride=1, relu=True,
                      head_w=rpn_head_w, head_b=rpn_head_b, out_dtype=jnp.float32)
    n_loc = N_ANCHOR * 4
    rpn_locs = rpn_out[..., :n_loc].reshape(N, Hf * Wf * N_ANCHOR, 4)
    rpn_scores = rpn_out[..., n_loc:n_loc + N_ANCHOR * 2].reshape(N, Hf * Wf * N_ANCHOR, 2)

    anchor_base = generate_anchor_base(FEAT_STRIDE, (0.5, 1.0, 2.0), (1.0, 2.0, 4.0))
    anchor = enumerate_shifted_anchor(anchor_base, FEAT_STRIDE, Hf, Wf)   # (Hf*Wf*A, 4)

    fg_prob = jax.nn.softmax(rpn_scores, axis=-1)[..., 1]                 # (N, R)

    # TODO(synk): ProposalCreator's NMS and min_size*scale filtering have no clean Pallas
    #             equivalent here; proposals are kept by top-k foreground score instead.
    _, top_idx = jax.lax.top_k(fg_prob, N_POST)                           # (N, N_POST)
    sel_anchor = anchor[top_idx].reshape(N * N_POST, 4)
    sel_loc = jnp.take_along_axis(rpn_locs, top_idx[..., None], axis=1).reshape(N * N_POST, 4)
    rois = loc2bbox_clip(sel_anchor, sel_loc, float(H), float(W))         # one Pallas call
    roi_indices = jnp.repeat(jnp.arange(N, dtype=jnp.int32), N_POST)

    # --- head: RoI pooling gather + fused fc1->fc2->{cls_loc,score} kernel ---
    pooled = roi_pool(feat, rois, roi_indices, ROI_SIZE, 1.0 / FEAT_STRIDE)
    # fc1 weight cin padded to the carried channel layout (avoids slicing `feat`)
    fc1_w = params["fc1_w"].reshape(ROI_SIZE * ROI_SIZE, C2, FC_DIM)
    fc1_w = jnp.pad(fc1_w, ((0, 0), (0, Cpad - C2), (0, 0))).reshape(ROI_SIZE * ROI_SIZE * Cpad, FC_DIM)
    head_w = jnp.concatenate([params["cls_loc_w"], params["score_w"]], axis=1)
    head_b = jnp.concatenate([params["cls_loc_b"], params["score_b"]], axis=0)
    head_out = head_fc(pooled, fc1_w, params["fc1_b"],
                       params["fc2_w"], params["fc2_b"], head_w, head_b)
    roi_cls_locs = head_out[:, :N_CLASS * 4]
    roi_scores = head_out[:, N_CLASS * 4:N_CLASS * 4 + N_CLASS]
    return roi_cls_locs, roi_scores, rois, roi_indices


if __name__ == "__main__":
    key = jax.random.PRNGKey(0)
    pkey, xkey = jax.random.split(key)
    params = init_params(pkey)
    x = jax.random.normal(xkey, (2, IN_CH, 16, 16), dtype=jnp.float32)    # NCHW input

    fwd = jax.jit(functools.partial(faster_rcnn_forward, scale=1.0))
    roi_cls_locs, roi_scores, rois, roi_indices = fwd(params, x)
    jax.block_until_ready((roi_cls_locs, roi_scores, rois, roi_indices))

    R = 2 * N_POST
    assert roi_cls_locs.shape == (R, N_CLASS * 4)
    assert roi_scores.shape == (R, N_CLASS)
    assert rois.shape == (R, 4)
    assert roi_indices.shape == (R,)
    assert bool(jnp.all(jnp.isfinite(roi_cls_locs)))
    assert bool(jnp.all(jnp.isfinite(rois)))
    print("KERNEL_OK")
</pallas_src>

<mosaic_0001>
module attributes {stable_mosaic.version = 11 : i64} {
  func.func @_conv_kernel(%arg0: i32, %arg1: i32, %arg2: memref<1x9x9x12xbf16, #tpu.memory_space<vmem>>, %arg3: memref<4x12x128xbf16, #tpu.memory_space<vmem>>, %arg4: memref<1x128xf32, #tpu.memory_space<vmem>>, %arg5: memref<1x8x8x128xbf16, #tpu.memory_space<vmem>>) attributes {dimension_semantics = [#tpu.dimension_semantics<parallel>, #tpu.dimension_semantics<parallel>], iteration_bounds = array<i64: 2, 1>, scalar_prefetch = 0 : i64, scratch_operands = 0 : i64, tpu.core_type = #tpu.core_type<tc>, window_params = [{transform_indices = @transform_0, window_bounds = array<i64: 1, 9, 9, 12>}, {pipeline_mode = #tpu.pipeline_mode<synchronous>, transform_indices = @transform_1, window_bounds = array<i64: 4, 12, 128>}, {pipeline_mode = #tpu.pipeline_mode<synchronous>, transform_indices = @transform_2, window_bounds = array<i64: 1, 128>}, {transform_indices = @transform_3, window_bounds = array<i64: 1, 8, 8, 128>}]} {
    %c8_i32 = arith.constant 8 : i32
    %0 = arith.muli %arg1, %c8_i32 : i32
    %cst = arith.constant 0.000000e+00 : f32
    %1 = vector.broadcast %cst : f32 to vector<64x128xf32>
    %c0_i32 = arith.constant 0 : i32
    %2 = arith.addi %0, %c0_i32 : i32
    %c0 = arith.constant 0 : index
    %3 = arith.index_cast %2 : i32 to index
    %c0_0 = arith.constant 0 : index
    %c0_1 = arith.constant 0 : index
    %4 = vector.load %arg2[%c0, %3, %c0_0, %c0_1] : memref<1x9x9x12xbf16, #tpu.memory_space<vmem>>, vector<1x8x8x12xbf16>
    %5 = vector.shape_cast %4 : vector<1x8x8x12xbf16> to vector<8x8x12xbf16>
    %6 = vector.shape_cast %5 : vector<8x8x12xbf16> to vector<64x12xbf16>
    %c0_2 = arith.constant 0 : index
    %c0_3 = arith.constant 0 : index
    %c0_4 = arith.constant 0 : index
    %7 = vector.load %arg3[%c0_2, %c0_3, %c0_4] : memref<4x12x128xbf16, #tpu.memory_space<vmem>>, vector<1x12x128xbf16>
    %8 = vector.shape_cast %7 : vector<1x12x128xbf16> to vector<12x128xbf16>
    %cst_5 = arith.constant dense<0.000000e+00> : vector<64x128xf32>
    %9 = tpu.matmul %6, %8, %cst_5 {dimension_numbers = #tpu.dot_dimension_numbers<[1], [0], [0], [1], [0, 0, 1, 1], [], []>} : vector<64x12xbf16>, vector<12x128xbf16>, vector<64x128xf32> -> vector<64x128xf32>
    %10 = arith.addf %1, %9 : vector<64x128xf32>
    %c0_i32_6 = arith.constant 0 : i32
    %11 = arith.addi %0, %c0_i32_6 : i32
    %c0_7 = arith.constant 0 : index
    %12 = arith.index_cast %11 : i32 to index
    %c1 = arith.constant 1 : index
    %c0_8 = arith.constant 0 : index
    %13 = vector.load %arg2[%c0_7, %12, %c1, %c0_8] : memref<1x9x9x12xbf16, #tpu.memory_space<vmem>>, vector<1x8x8x12xbf16>
    %14 = vector.shape_cast %13 : vector<1x8x8x12xbf16> to vector<8x8x12xbf16>
    %15 = vector.shape_cast %14 : vector<8x8x12xbf16> to vector<64x12xbf16>
    %c1_9 = arith.constant 1 : index
    %c0_10 = arith.constant 0 : index
    %c0_11 = arith.constant 0 : index
    %16 = vector.load %arg3[%c1_9, %c0_10, %c0_11] : memref<4x12x128xbf16, #tpu.memory_space<vmem>>, vector<1x12x128xbf16>
    %17 = vector.shape_cast %16 : vector<1x12x128xbf16> to vector<12x128xbf16>
    %cst_12 = arith.constant dense<0.000000e+00> : vector<64x128xf32>
    %18 = tpu.matmul %15, %17, %cst_12 {dimension_numbers = #tpu.dot_dimension_numbers<[1], [0], [0], [1], [0, 0, 1, 1], [], []>} : vector<64x12xbf16>, vector<12x128xbf16>, vector<64x128xf32> -> vector<64x128xf32>
    %19 = arith.addf %10, %18 : vector<64x128xf32>
    %c1_i32 = arith.constant 1 : i32
    %20 = arith.addi %0, %c1_i32 : i32
    %c0_13 = arith.constant 0 : index
    %21 = arith.index_cast %20 : i32 to index
    %c0_14 = arith.constant 0 : index
    %c0_15 = arith.constant 0 : index
    %22 = vector.load %arg2[%c0_13, %21, %c0_14, %c0_15] : memref<1x9x9x12xbf16, #tpu.memory_space<vmem>>, vector<1x8x8x12xbf16>
    %23 = vector.shape_cast %22 : vector<1x8x8x12xbf16> to vector<8x8x12xbf16>
    %24 = vector.shape_cast %23 : vector<8x8x12xbf16> to vector<64x12xbf16>
    %c2 = arith.constant 2 : index
    %c0_16 = arith.constant 0 : index
    %c0_17 = arith.constant 0 : index
    %25 = vector.load %arg3[%c2, %c0_16, %c0_17] : memref<4x12x128xbf16, #tpu.memory_space<vmem>>, vector<1x12x128xbf16>
    %26 = vector.shape_cast %25 : vector<1x12x128xbf16> to vector<12x128xbf16>
    %cst_18 = arith.constant dense<0.000000e+00> : vector<64x128xf32>
    %27 = tpu.matmul %24, %26, %cst_18 {dimension_numbers = #tpu.dot_dimension_numbers<[1], [0], [0], [1], [0, 0, 1, 1], [], []>} : vector<64x12xbf16>, vector<12x128xbf16>, vector<64x128xf32> -> vector<64x128xf32>
    %28 = arith.addf %19, %27 : vector<64x128xf32>
    %c1_i32_19 = arith.constant 1 : i32
    %29 = arith.addi %0, %c1_i32_19 : i32
    %c0_20 = arith.constant 0 : index
    %30 = arith.index_cast %29 : i32 to index
    %c1_21 = arith.constant 1 : index
    %c0_22 = arith.constant 0 : index
    %31 = vector.load %arg2[%c0_20, %30, %c1_21, %c0_22] : memref<1x9x9x12xbf16, #tpu.memory_space<vmem>>, vector<1x8x8x12xbf16>
    %32 = vector.shape_cast %31 : vector<1x8x8x12xbf16> to vector<8x8x12xbf16>
    %33 = vector.shape_cast %32 : vector<8x8x12xbf16> to vector<64x12xbf16>
    %c3 = arith.constant 3 : index
    %c0_23 = arith.constant 0 : index
    %c0_24 = arith.constant 0 : index
    %34 = vector.load %arg3[%c3, %c0_23, %c0_24] : memref<4x12x128xbf16, #tpu.memory_space<vmem>>, vector<1x12x128xbf16>
    %35 = vector.shape_cast %34 : vector<1x12x128xbf16> to vector<12x128xbf16>
    %cst_25 = arith.constant dense<0.000000e+00> : vector<64x128xf32>
    %36 = tpu.matmul %33, %35, %cst_25 {dimension_numbers = #tpu.dot_dimension_numbers<[1], [0], [0], [1], [0, 0, 1, 1], [], []>} : vector<64x12xbf16>, vector<12x128xbf16>, vector<64x128xf32> -> vector<64x128xf32>
    %37 = arith.addf %28, %36 : vector<64x128xf32>
    %c0_26 = arith.constant 0 : index
    %c0_27 = arith.constant 0 : index
    %38 = vector.load %arg4[%c0_26, %c0_27] : memref<1x128xf32, #tpu.memory_space<vmem>>, vector<1x128xf32>
    %39 = vector.broadcast %38 : vector<1x128xf32> to vector<64x128xf32>
    %40 = arith.addf %37, %39 : vector<64x128xf32>
    %cst_28 = arith.constant 0.000000e+00 : f32
    %41 = vector.broadcast %cst_28 : f32 to vector<64x128xf32>
    %42 = arith.maximumf %40, %41 : vector<64x128xf32>
    %43 = vector.shape_cast %42 : vector<64x128xf32> to vector<8x8x128xf32>
    %44 = arith.truncf %43 : vector<8x8x128xf32> to vector<8x8x128xbf16>
    %c0_29 = arith.constant 0 : index
    %c0_30 = arith.constant 0 : index
    %c0_31 = arith.constant 0 : index
    %c0_32 = arith.constant 0 : index
    %45 = vector.load %arg5[%c0_29, %c0_30, %c0_31, %c0_32] : memref<1x8x8x128xbf16, #tpu.memory_space<vmem>>, vector<1x8x8x128xbf16>
    %46 = vector.shape_cast %45 : vector<1x8x8x128xbf16> to vector<8x8x128xbf16>
    %47 = vector.shape_cast %44 : vector<8x8x128xbf16> to vector<1x8x8x128xbf16>
    tpu.vector_store %arg5[%c0_29, %c0_30, %c0_31, %c0_32], %47 {strides = array<i32>} : memref<1x8x8x128xbf16, #tpu.memory_space<vmem>>, vector<1x8x8x128xbf16>,
    return
  }
  func.func @transform_0(%arg0: i32, %arg1: i32) -> (i32, i32, i32, i32) {
    %c0_i32 = arith.constant 0 : i32
    %c0_i32_0 = arith.constant 0 : i32
    %c0_i32_1 = arith.constant 0 : i32
    %c0_i32_2 = arith.constant 0 : i32
    return %arg0, %c0_i32, %c0_i32_0, %c0_i32_1 : i32, i32, i32, i32
  }
  func.func @transform_1(%arg0: i32, %arg1: i32) -> (i32, i32, i32) {
    %c0_i32 = arith.constant 0 : i32
    %c0_i32_0 = arith.constant 0 : i32
    %c0_i32_1 = arith.constant 0 : i32
    %c0_i32_2 = arith.constant 0 : i32
    return %c0_i32, %c0_i32_0, %c0_i32_1 : i32, i32, i32
  }
  func.func @transform_2(%arg0: i32, %arg1: i32) -> (i32, i32) {
    %c0_i32 = arith.constant 0 : i32
    %c0_i32_0 = arith.constant 0 : i32
    %c0_i32_1 = arith.constant 0 : i32
    return %c0_i32, %c0_i32_0 : i32, i32
  }
  func.func @transform_3(%arg0: i32, %arg1: i32) -> (i32, i32, i32, i32) {
    %c0_i32 = arith.constant 0 : i32
    %c0_i32_0 = arith.constant 0 : i32
    %c0_i32_1 = arith.constant 0 : i32
    return %arg0, %arg1, %c0_i32, %c0_i32_0 : i32, i32, i32, i32
  }
}

module attributes {stable_mosaic.version = 11 : i64} {
  func.func @_conv_kernel(%arg0: i32, %arg1: i32, %arg2: memref<1x5x5x512xbf16, #tpu.memory_space<vmem>>, %arg3: memref<4x512x128xbf16, #tpu.memory_space<vmem>>, %arg4: memref<1x128xf32, #tpu.memory_space<vmem>>, %arg5: memref<1x4x4x128xbf16, #tpu.memory_space<vmem>>) attributes {dimension_semantics = [#tpu.dimension_semantics<parallel>, #tpu.dimension_semantics<parallel>], iteration_bounds = array<i64: 2, 1>, scalar_prefetch = 0 : i64, scratch_operands = 0 : i64, tpu.core_type = #tpu.core_type<tc>, window_params = [{transform_indices = @transform_0, window_bounds = array<i64: 1, 5, 5, 512>}, {pipeline_mode = #tpu.pipeline_mode<synchronous>, transform_indices = @transform_1, window_bounds = array<i64: 4, 512, 128>}, {pipeline_mode = #tpu.pipeline_mode<synchronous>, transform_indices = @transform_2, window_bounds = array<i64: 1, 128>}, {transform_indices = @transform_3, window_bounds = array<i64: 1, 4, 4, 128>}]} {
    %c4_i32 = arith.constant 4 : i32
    %0 = arith.muli %arg1, %c4_i32 : i32
    %cst = arith.constant 0.000000e+00 : f32
    %1 = vector.broadcast %cst : f32 to vector<16x128xf32>
    %c0_i32 = arith.constant 0 : i32
    %2 = arith.addi %0, %c0_i32 : i32
    %c0 = arith.constant 0 : index
    %3 = arith.index_cast %2 : i32 to index
    %c0_0 = arith.constant 0 : index
    %c0_1 = arith.constant 0 : index
    %4 = vector.load %arg2[%c0, %3, %c0_0, %c0_1] : memref<1x5x5x512xbf16, #tpu.memory_space<vmem>>, vector<1x4x4x512xbf16>
    %5 = vector.shape_cast %4 : vector<1x4x4x512xbf16> to vector<4x4x512xbf16>
    %6 = vector.shape_cast %5 : vector<4x4x512xbf16> to vector<16x512xbf16>
    %c0_2 = arith.constant 0 : index
    %c0_3 = arith.constant 0 : index
    %c0_4 = arith.constant 0 : index
    %7 = vector.load %arg3[%c0_2, %c0_3, %c0_4] : memref<4x512x128xbf16, #tpu.memory_space<vmem>>, vector<1x512x128xbf16>
    %8 = vector.shape_cast %7 : vector<1x512x128xbf16> to vector<512x128xbf16>
    %cst_5 = arith.constant dense<0.000000e+00> : vector<16x128xf32>
    %9 = tpu.matmul %6, %8, %cst_5 {dimension_numbers = #tpu.dot_dimension_numbers<[1], [0], [0], [1], [0, 0, 1, 1], [], []>} : vector<16x512xbf16>, vector<512x128xbf16>, vector<16x128xf32> -> vector<16x128xf32>
    %10 = arith.addf %1, %9 : vector<16x128xf32>
    %c0_i32_6 = arith.constant 0 : i32
    %11 = arith.addi %0, %c0_i32_6 : i32
    %c0_7 = arith.constant 0 : index
    %12 = arith.index_cast %11 : i32 to index
    %c1 = arith.constant 1 : index
    %c0_8 = arith.constant 0 : index
    %13 = vector.load %arg2[%c0_7, %12, %c1, %c0_8] : memref<1x5x5x512xbf16, #tpu.memory_space<vmem>>, vector<1x4x4x512xbf16>
    %14 = vector.shape_cast %13 : vector<1x4x4x512xbf16> to vector<4x4x512xbf16>
    %15 = vector.shape_cast %14 : vector<4x4x512xbf16> to vector<16x512xbf16>
    %c1_9 = arith.constant 1 : index
    %c0_10 = arith.constant 0 : index
    %c0_11 = arith.constant 0 : index
    %16 = vector.load %arg3[%c1_9, %c0_10, %c0_11] : memref<4x512x128xbf16, #tpu.memory_space<vmem>>, vector<1x512x128xbf16>
    %17 = vector.shape_cast %16 : vector<1x512x128xbf16> to vector<512x128xbf16>
    %cst_12 = arith.constant dense<0.000000e+00> : vector<16x128xf32>
    %18 = tpu.matmul %15, %17, %cst_12 {dimension_numbers = #tpu.dot_dimension_numbers<[1], [0], [0], [1], [0, 0, 1, 1], [], []>} : vector<16x512xbf16>, vector<512x128xbf16>, vector<16x128xf32> -> vector<16x128xf32>
    %19 = arith.addf %10, %18 : vector<16x128xf32>
    %c1_i32 = arith.constant 1 : i32
    %20 = arith.addi %0, %c1_i32 : i32
    %c0_13 = arith.constant 0 : index
    %21 = arith.index_cast %20 : i32 to index
    %c0_14 = arith.constant 0 : index
    %c0_15 = arith.constant 0 : index
    %22 = vector.load %arg2[%c0_13, %21, %c0_14, %c0_15] : memref<1x5x5x512xbf16, #tpu.memory_space<vmem>>, vector<1x4x4x512xbf16>
    %23 = vector.shape_cast %22 : vector<1x4x4x512xbf16> to vector<4x4x512xbf16>
    %24 = vector.shape_cast %23 : vector<4x4x512xbf16> to vector<16x512xbf16>
    %c2 = arith.constant 2 : index
    %c0_16 = arith.constant 0 : index
    %c0_17 = arith.constant 0 : index
    %25 = vector.load %arg3[%c2, %c0_16, %c0_17] : memref<4x512x128xbf16, #tpu.memory_space<vmem>>, vector<1x512x128xbf16>
    %26 = vector.shape_cast %25 : vector<1x512x128xbf16> to vector<512x128xbf16>
    %cst_18 = arith.constant dense<0.000000e+00> : vector<16x128xf32>
    %27 = tpu.matmul %24, %26, %cst_18 {dimension_numbers = #tpu.dot_dimension_numbers<[1], [0], [0], [1], [0, 0, 1, 1], [], []>} : vector<16x512xbf16>, vector<512x128xbf16>, vector<16x128xf32> -> vector<16x128xf32>
    %28 = arith.addf %19, %27 : vector<16x128xf32>
    %c1_i32_19 = arith.constant 1 : i32
    %29 = arith.addi %0, %c1_i32_19 : i32
    %c0_20 = arith.constant 0 : index
    %30 = arith.index_cast %29 : i32 to index
    %c1_21 = arith.constant 1 : index
    %c0_22 = arith.constant 0 : index
    %31 = vector.load %arg2[%c0_20, %30, %c1_21, %c0_22] : memref<1x5x5x512xbf16, #tpu.memory_space<vmem>>, vector<1x4x4x512xbf16>
    %32 = vector.shape_cast %31 : vector<1x4x4x512xbf16> to vector<4x4x512xbf16>
    %33 = vector.shape_cast %32 : vector<4x4x512xbf16> to vector<16x512xbf16>
    %c3 = arith.constant 3 : index
    %c0_23 = arith.constant 0 : index
    %c0_24 = arith.constant 0 : index
    %34 = vector.load %arg3[%c3, %c0_23, %c0_24] : memref<4x512x128xbf16, #tpu.memory_space<vmem>>, vector<1x512x128xbf16>
    %35 = vector.shape_cast %34 : vector<1x512x128xbf16> to vector<512x128xbf16>
    %cst_25 = arith.constant dense<0.000000e+00> : vector<16x128xf32>
    %36 = tpu.matmul %33, %35, %cst_25 {dimension_numbers = #tpu.dot_dimension_numbers<[1], [0], [0], [1], [0, 0, 1, 1], [], []>} : vector<16x512xbf16>, vector<512x128xbf16>, vector<16x128xf32> -> vector<16x128xf32>
    %37 = arith.addf %28, %36 : vector<16x128xf32>
    %c0_26 = arith.constant 0 : index
    %c0_27 = arith.constant 0 : index
    %38 = vector.load %arg4[%c0_26, %c0_27] : memref<1x128xf32, #tpu.memory_space<vmem>>, vector<1x128xf32>
    %39 = vector.broadcast %38 : vector<1x128xf32> to vector<16x128xf32>
    %40 = arith.addf %37, %39 : vector<16x128xf32>
    %cst_28 = arith.constant 0.000000e+00 : f32
    %41 = vector.broadcast %cst_28 : f32 to vector<16x128xf32>
    %42 = arith.maximumf %40, %41 : vector<16x128xf32>
    %43 = vector.shape_cast %42 : vector<16x128xf32> to vector<4x4x128xf32>
    %44 = arith.truncf %43 : vector<4x4x128xf32> to vector<4x4x128xbf16>
    %c0_29 = arith.constant 0 : index
    %c0_30 = arith.constant 0 : index
    %c0_31 = arith.constant 0 : index
    %c0_32 = arith.constant 0 : index
    %45 = vector.load %arg5[%c0_29, %c0_30, %c0_31, %c0_32] : memref<1x4x4x128xbf16, #tpu.memory_space<vmem>>, vector<1x4x4x128xbf16>
    %46 = vector.shape_cast %45 : vector<1x4x4x128xbf16> to vector<4x4x128xbf16>
    %47 = vector.shape_cast %44 : vector<4x4x128xbf16> to vector<1x4x4x128xbf16>
    tpu.vector_store %arg5[%c0_29, %c0_30, %c0_31, %c0_32], %47 {strides = array<i32>} : memref<1x4x4x128xbf16, #tpu.memory_space<vmem>>, vector<1x4x4x128xbf16>,
    return
  }
  func.func @transform_0(%arg0: i32, %arg1: i32) -> (i32, i32, i32, i32) {
    %c0_i32 = arith.constant 0 : i32
    %c0_i32_0 = arith.constant 0 : i32
    %c0_i32_1 = arith.constant 0 : i32
    %c0_i32_2 = arith.constant 0 : i32
    return %arg0, %c0_i32, %c0_i32_0, %c0_i32_1 : i32, i32, i32, i32
  }
  func.func @transform_1(%arg0: i32, %arg1: i32) -> (i32, i32, i32) {
    %c0_i32 = arith.constant 0 : i32
    %c0_i32_0 = arith.constant 0 : i32
    %c0_i32_1 = arith.constant 0 : i32
    %c0_i32_2 = arith.constant 0 : i32
    return %c0_i32, %c0_i32_0, %c0_i32_1 : i32, i32, i32
  }
  func.func @transform_2(%arg0: i32, %arg1: i32) -> (i32, i32) {
    %c0_i32 = arith.constant 0 : i32
    %c0_i32_0 = arith.constant 0 : i32
    %c0_i32_1 = arith.constant 0 : i32
    return %c0_i32, %c0_i32_0 : i32, i32
  }
  func.func @transform_3(%arg0: i32, %arg1: i32) -> (i32, i32, i32, i32) {
    %c0_i32 = arith.constant 0 : i32
    %c0_i32_0 = arith.constant 0 : i32
    %c0_i32_1 = arith.constant 0 : i32
    return %arg0, %arg1, %c0_i32, %c0_i32_0 : i32, i32, i32, i32
  }
}

module attributes {stable_mosaic.version = 11 : i64} {
  func.func @_conv_kernel(%arg0: i32, %arg1: i32, %arg2: memref<1x6x6x128xbf16, #tpu.memory_space<vmem>>, %arg3: memref<9x128x128xbf16, #tpu.memory_space<vmem>>, %arg4: memref<1x128xf32, #tpu.memory_space<vmem>>, %arg5: memref<128x128xbf16, #tpu.memory_space<vmem>>, %arg6: memref<1x128xf32, #tpu.memory_space<vmem>>, %arg7: memref<1x4x4x128xf32, #tpu.memory_space<vmem>>) attributes {dimension_semantics = [#tpu.dimension_semantics<parallel>, #tpu.dimension_semantics<parallel>], iteration_bounds = array<i64: 2, 1>, scalar_prefetch = 0 : i64, scratch_operands = 0 : i64, tpu.core_type = #tpu.core_type<tc>, window_params = [{transform_indices = @transform_0, window_bounds = array<i64: 1, 6, 6, 128>}, {pipeline_mode = #tpu.pipeline_mode<synchronous>, transform_indices = @transform_1, window_bounds = array<i64: 9, 128, 128>}, {pipeline_mode = #tpu.pipeline_mode<synchronous>, transform_indices = @transform_2, window_bounds = array<i64: 1, 128>}, {pipeline_mode = #tpu.pipeline_mode<synchronous>, transform_indices = @transform_3, window_bounds = array<i64: 128, 128>}, {pipeline_mode = #tpu.pipeline_mode<synchronous>, transform_indices = @transform_4, window_bounds = array<i64: 1, 128>}, {transform_indices = @transform_5, window_bounds = array<i64: 1, 4, 4, 128>}]} {
    %c4_i32 = arith.constant 4 : i32
    %0 = arith.muli %arg1, %c4_i32 : i32
    %cst = arith.constant 0.000000e+00 : f32
    %1 = vector.broadcast %cst : f32 to vector<16x128xf32>
    %c0_i32 = arith.constant 0 : i32
    %2 = arith.addi %0, %c0_i32 : i32
    %c0 = arith.constant 0 : index
    %3 = arith.index_cast %2 : i32 to index
    %c0_0 = arith.constant 0 : index
    %c0_1 = arith.constant 0 : index
    %4 = vector.load %arg2[%c0, %3, %c0_0, %c0_1] : memref<1x6x6x128xbf16, #tpu.memory_space<vmem>>, vector<1x4x4x128xbf16>
    %5 = vector.shape_cast %4 : vector<1x4x4x128xbf16> to vector<4x4x128xbf16>
    %6 = vector.shape_cast %5 : vector<4x4x128xbf16> to vector<16x128xbf16>
    %c0_2 = arith.constant 0 : index
    %c0_3 = arith.constant 0 : index
    %c0_4 = arith.constant 0 : index
    %7 = vector.load %arg3[%c0_2, %c0_3, %c0_4] : memref<9x128x128xbf16, #tpu.memory_space<vmem>>, vector<1x128x128xbf16>
    %8 = vector.shape_cast %7 : vector<1x128x128xbf16> to vector<128x128xbf16>
    %cst_5 = arith.constant dense<0.000000e+00> : vector<16x128xf32>
    %9 = tpu.matmul %6, %8, %cst_5 {dimension_numbers = #tpu.dot_dimension_numbers<[1], [0], [0], [1], [0, 0, 1, 1], [], []>} : vector<16x128xbf16>, vector<128x128xbf16>, vector<16x128xf32> -> vector<16x128xf32>
    %10 = arith.addf %1, %9 : vector<16x128xf32>
    %c0_i32_6 = arith.constant 0 : i32
    %11 = arith.addi %0, %c0_i32_6 : i32
    %c0_7 = arith.constant 0 : index
    %12 = arith.index_cast %11 : i32 to index
    %c1 = arith.constant 1 : index
    %c0_8 = arith.constant 0 : index
    %13 = vector.load %arg2[%c0_7, %12, %c1, %c0_8] : memref<1x6x6x128xbf16, #tpu.memory_space<vmem>>, vector<1x4x4x128xbf16>
    %14 = vector.shape_cast %13 : vector<1x4x4x128xbf16> to vector<4x4x128xbf16>
    %15 = vector.shape_cast %14 : vector<4x4x128xbf16> to vector<16x128xbf16>
    %c1_9 = arith.constant 1 : index
    %c0_10 = arith.constant 0 : index
    %c0_11 = arith.constant 0 : index
    %16 = vector.load %arg3[%c1_9, %c0_10, %c0_11] : memref<9x128x128xbf16, #tpu.memory_space<vmem>>, vector<1x128x128xbf16>
    %17 = vector.shape_cast %16 : vector<1x128x128xbf16> to vector<128x128xbf16>
    %cst_12 = arith.constant dense<0.000000e+00> : vector<16x128xf32>
    %18 = tpu.matmul %15, %17, %cst_12 {dimension_numbers = #tpu.dot_dimension_numbers<[1], [0], [0], [1], [0, 0, 1, 1], [], []>} : vector<16x128xbf16>, vector<128x128xbf16>, vector<16x128xf32> -> vector<16x128xf32>
    %19 = arith.addf %10, %18 : vector<16x128xf32>
    %c0_i32_13 = arith.constant 0 : i32
    %20 = arith.addi %0, %c0_i32_13 : i32
    %c0_14 = arith.constant 0 : index
    %21 = arith.index_cast %20 : i32 to index
    %c2 = arith.constant 2 : index
    %c0_15 = arith.constant 0 : index
    %22 = vector.load %arg2[%c0_14, %21, %c2, %c0_15] : memref<1x6x6x128xbf16, #tpu.memory_space<vmem>>, vector<1x4x4x128xbf16>
    %23 = vector.shape_cast %22 : vector<1x4x4x128xbf16> to vector<4x4x128xbf16>
    %24 = vector.shape_cast %23 : vector<4x4x128xbf16> to vector<16x128xbf16>
    %c2_16 = arith.constant 2 : index
    %c0_17 = arith.constant 0 : index
    %c0_18 = arith.constant 0 : index
    %25 = vector.load %arg3[%c2_16, %c0_17, %c0_18] : memref<9x128x128xbf16, #tpu.memory_space<vmem>>, vector<1x128x128xbf16>
    %26 = vector.shape_cast %25 : vector<1x128x128xbf16> to vector<128x128xbf16>
    %cst_19 = arith.constant dense<0.000000e+00> : vector<16x128xf32>
    %27 = tpu.matmul %24, %26, %cst_19 {dimension_numbers = #tpu.dot_dimension_numbers<[1], [0], [0], [1], [0, 0, 1, 1], [], []>} : vector<16x128xbf16>, vector<128x128xbf16>, vector<16x128xf32> -> vector<16x128xf32>
    %28 = arith.addf %19, %27 : vector<16x128xf32>
    %c1_i32 = arith.constant 1 : i32
    %29 = arith.addi %0, %c1_i32 : i32
    %c0_20 = arith.constant 0 : index
    %30 = arith.index_cast %29 : i32 to index
    %c0_21 = arith.constant 0 : index
    %c0_22 = arith.constant 0 : index
    %31 = vector.load %arg2[%c0_20, %30, %c0_21, %c0_22] : memref<1x6x6x128xbf16, #tpu.memory_space<vmem>>, vector<1x4x4x128xbf16>
    %32 = vector.shape_cast %31 : vector<1x4x4x128xbf16> to vector<4x4x128xbf16>
    %33 = vector.shape_cast %32 : vector<4x4x128xbf16> to vector<16x128xbf16>
    %c3 = arith.constant 3 : index
    %c0_23 = arith.constant 0 : index
    %c0_24 = arith.constant 0 : index
    %34 = vector.load %arg3[%c3, %c0_23, %c0_24] : memref<9x128x128xbf16, #tpu.memory_space<vmem>>, vector<1x128x128xbf16>
    %35 = vector.shape_cast %34 : vector<1x128x128xbf16> to vector<128x128xbf16>
    %cst_25 = arith.constant dense<0.000000e+00> : vector<16x128xf32>
    %36 = tpu.matmul %33, %35, %cst_25 {dimension_numbers = #tpu.dot_dimension_numbers<[1], [0], [0], [1], [0, 0, 1, 1], [], []>} : vector<16x128xbf16>, vector<128x128xbf16>, vector<16x128xf32> -> vector<16x128xf32>
    %37 = arith.addf %28, %36 : vector<16x128xf32>
    %c1_i32_26 = arith.constant 1 : i32
    %38 = arith.addi %0, %c1_i32_26 : i32
    %c0_27 = arith.constant 0 : index
    %39 = arith.index_cast %38 : i32 to index
    %c1_28 = arith.constant 1 : index
    %c0_29 = arith.constant 0 : index
    %40 = vector.load %arg2[%c0_27, %39, %c1_28, %c0_29] : memref<1x6x6x128xbf16, #tpu.memory_space<vmem>>, vector<1x4x4x128xbf16>
    %41 = vector.shape_cast %40 : vector<1x4x4x128xbf16> to vector<4x4x128xbf16>
    %42 = vector.shape_cast %41 : vector<4x4x128xbf16> to vector<16x128xbf16>
    %c4 = arith.constant 4 : index
    %c0_30 = arith.constant 0 : index
    %c0_31 = arith.constant 0 : index
    %43 = vector.load %arg3[%c4, %c0_30, %c0_31] : memref<9x128x128xbf16, #tpu.memory_space<vmem>>, vector<1x128x128xbf16>
    %44 = vector.shape_cast %43 : vector<1x128x128xbf16> to vector<128x128xbf16>
    %cst_32 = arith.constant dense<0.000000e+00> : vector<16x128xf32>
    %45 = tpu.matmul %42, %44, %cst_32 {dimension_numbers = #tpu.dot_dimension_numbers<[1], [0], [0], [1], [0, 0, 1, 1], [], []>} : vector<16x128xbf16>, vector<128x128xbf16>, vector<16x128xf32> -> vector<16x128xf32>
    %46 = arith.addf %37, %45 : vector<16x128xf32>
    %c1_i32_33 = arith.constant 1 : i32
    %47 = arith.addi %0, %c1_i32_33 : i32
    %c0_34 = arith.constant 0 : index
    %48 = arith.index_cast %47 : i32 to index
    %c2_35 = arith.constant 2 : index
    %c0_36 = arith.constant 0 : index
    %49 = vector.load %arg2[%c0_34, %48, %c2_35, %c0_36] : memref<1x6x6x128xbf16, #tpu.memory_space<vmem>>, vector<1x4x4x128xbf16>
    %50 = vector.shape_cast %49 : vector<1x4x4x128xbf16> to vector<4x4x128xbf16>
    %51 = vector.shape_cast %50 : vector<4x4x128xbf16> to vector<16x128xbf16>
    %c5 = arith.constant 5 : index
    %c0_37 = arith.constant 0 : index
    %c0_38 = arith.constant 0 : index
    %52 = vector.load %arg3[%c5, %c0_37, %c0_38] : memref<9x128x128xbf16, #tpu.memory_space<vmem>>, vector<1x128x128xbf16>
    %53 = vector.shape_cast %52 : vector<1x128x128xbf16> to vector<128x128xbf16>
    %cst_39 = arith.constant dense<0.000000e+00> : vector<16x128xf32>
    %54 = tpu.matmul %51, %53, %cst_39 {dimension_numbers = #tpu.dot_dimension_numbers<[1], [0], [0], [1], [0, 0, 1, 1], [], []>} : vector<16x128xbf16>, vector<128x128xbf16>, vector<16x128xf32> -> vector<16x128xf32>
    %55 = arith.addf %46, %54 : vector<16x128xf32>
    %c2_i32 = arith.constant 2 : i32
    %56 = arith.addi %0, %c2_i32 : i32
    %c0_40 = arith.constant 0 : index
    %57 = arith.index_cast %56 : i32 to index
    %c0_41 = arith.constant 0 : index
    %c0_42 = arith.constant 0 : index
    %58 = vector.load %arg2[%c0_40, %57, %c0_41, %c0_42] : memref<1x6x6x128xbf16, #tpu.memory_space<vmem>>, vector<1x4x4x128xbf16>
    %59 = vector.shape_cast %58 : vector<1x4x4x128xbf16> to vector<4x4x128xbf16>
    %60 = vector.shape_cast %59 : vector<4x4x128xbf16> to vector<16x128xbf16>
    %c6 = arith.constant 6 : index
    %c0_43 = arith.constant 0 : index
    %c0_44 = arith.constant 0 : index
    %61 = vector.load %arg3[%c6, %c0_43, %c0_44] : memref<9x128x128xbf16, #tpu.memory_space<vmem>>, vector<1x128x128xbf16>
    %62 = vector.shape_cast %61 : vector<1x128x128xbf16> to vector<128x128xbf16>
    %cst_45 = arith.constant dense<0.000000e+00> : vector<16x128xf32>
    %63 = tpu.matmul %60, %62, %cst_45 {dimension_numbers = #tpu.dot_dimension_numbers<[1], [0], [0], [1], [0, 0, 1, 1], [], []>} : vector<16x128xbf16>, vector<128x128xbf16>, vector<16x128xf32> -> vector<16x128xf32>
    %64 = arith.addf %55, %63 : vector<16x128xf32>
    %c2_i32_46 = arith.constant 2 : i32
    %65 = arith.addi %0, %c2_i32_46 : i32
    %c0_47 = arith.constant 0 : index
    %66 = arith.index_cast %65 : i32 to index
    %c1_48 = arith.constant 1 : index
    %c0_49 = arith.constant 0 : index
    %67 = vector.load %arg2[%c0_47, %66, %c1_48, %c0_49] : memref<1x6x6x128xbf16, #tpu.memory_space<vmem>>, vector<1x4x4x128xbf16>
    %68 = vector.shape_cast %67 : vector<1x4x4x128xbf16> to vector<4x4x128xbf16>
    %69 = vector.shape_cast %68 : vector<4x4x128xbf16> to vector<16x128xbf16>
    %c7 = arith.constant 7 : index
    %c0_50 = arith.constant 0 : index
    %c0_51 = arith.constant 0 : index
    %70 = vector.load %arg3[%c7, %c0_50, %c0_51] : memref<9x128x128xbf16, #tpu.memory_space<vmem>>, vector<1x128x128xbf16>
    %71 = vector.shape_cast %70 : vector<1x128x128xbf16> to vector<128x128xbf16>
    %cst_52 = arith.constant dense<0.000000e+00> : vector<16x128xf32>
    %72 = tpu.matmul %69, %71, %cst_52 {dimension_numbers = #tpu.dot_dimension_numbers<[1], [0], [0], [1], [0, 0, 1, 1], [], []>} : vector<16x128xbf16>, vector<128x128xbf16>, vector<16x128xf32> -> vector<16x128xf32>
    %73 = arith.addf %64, %72 : vector<16x128xf32>
    %c2_i32_53 = arith.constant 2 : i32
    %74 = arith.addi %0, %c2_i32_53 : i32
    %c0_54 = arith.constant 0 : index
    %75 = arith.index_cast %74 : i32 to index
    %c2_55 = arith.constant 2 : index
    %c0_56 = arith.constant 0 : index
    %76 = vector.load %arg2[%c0_54, %75, %c2_55, %c0_56] : memref<1x6x6x128xbf16, #tpu.memory_space<vmem>>, vector<1x4x4x128xbf16>
    %77 = vector.shape_cast %76 : vector<1x4x4x128xbf16> to vector<4x4x128xbf16>
    %78 = vector.shape_cast %77 : vector<4x4x128xbf16> to vector<16x128xbf16>
    %c8 = arith.constant 8 : index
    %c0_57 = arith.constant 0 : index
    %c0_58 = arith.constant 0 : index
    %79 = vector.load %arg3[%c8, %c0_57, %c0_58] : memref<9x128x128xbf16, #tpu.memory_space<vmem>>, vector<1x128x128xbf16>
    %80 = vector.shape_cast %79 : vector<1x128x128xbf16> to vector<128x128xbf16>
    %cst_59 = arith.constant dense<0.000000e+00> : vector<16x128xf32>
    %81 = tpu.matmul %78, %80, %cst_59 {dimension_numbers = #tpu.dot_dimension_numbers<[1], [0], [0], [1], [0, 0, 1, 1], [], []>} : vector<16x128xbf16>, vector<128x128xbf16>, vector<16x128xf32> -> vector<16x128xf32>
    %82 = arith.addf %73, %81 : vector<16x128xf32>
    %c0_60 = arith.constant 0 : index
    %c0_61 = arith.constant 0 : index
    %83 = vector.load %arg4[%c0_60, %c0_61] : memref<1x128xf32, #tpu.memory_space<vmem>>, vector<1x128xf32>
    %84 = vector.broadcast %83 : vector<1x128xf32> to vector<16x128xf32>
    %85 = arith.addf %82, %84 : vector<16x128xf32>
    %cst_62 = arith.constant 0.000000e+00 : f32
    %86 = vector.broadcast %cst_62 : f32 to vector<16x128xf32>
    %87 = arith.maximumf %85, %86 : vector<16x128xf32>
    %88 = arith.truncf %87 : vector<16x128xf32> to vector<16x128xbf16>
    %c0_63 = arith.constant 0 : index
    %c0_64 = arith.constant 0 : index
    %89 = vector.load %arg5[%c0_63, %c0_64] : memref<128x128xbf16, #tpu.memory_space<vmem>>, vector<128x128xbf16>
    %cst_65 = arith.constant dense<0.000000e+00> : vector<16x128xf32>
    %90 = tpu.matmul %88, %89, %cst_65 {dimension_numbers = #tpu.dot_dimension_numbers<[1], [0], [0], [1], [0, 0, 1, 1], [], []>} : vector<16x128xbf16>, vector<128x128xbf16>, vector<16x128xf32> -> vector<16x128xf32>
    %c0_66 = arith.constant 0 : index
    %c0_67 = arith.constant 0 : index
    %91 = vector.load %arg6[%c0_66, %c0_67] : memref<1x128xf32, #tpu.memory_space<vmem>>, vector<1x128xf32>
    %92 = vector.broadcast %91 : vector<1x128xf32> to vector<16x128xf32>
    %93 = arith.addf %90, %92 : vector<16x128xf32>
    %94 = vector.shape_cast %93 : vector<16x128xf32> to vector<4x4x128xf32>
    %c0_68 = arith.constant 0 : index
    %c0_69 = arith.constant 0 : index
    %c0_70 = arith.constant 0 : index
    %c0_71 = arith.constant 0 : index
    %95 = vector.load %arg7[%c0_68, %c0_69, %c0_70, %c0_71] : memref<1x4x4x128xf32, #tpu.memory_space<vmem>>, vector<1x4x4x128xf32>
    %96 = vector.shape_cast %95 : vector<1x4x4x128xf32> to vector<4x4x128xf32>
    %97 = vector.shape_cast %94 : vector<4x4x128xf32> to vector<1x4x4x128xf32>
    tpu.vector_store %arg7[%c0_68, %c0_69, %c0_70, %c0_71], %97 {strides = array<i32>} : memref<1x4x4x128xf32, #tpu.memory_space<vmem>>, vector<1x4x4x128xf32>,
    return
  }
  func.func @transform_0(%arg0: i32, %arg1: i32) -> (i32, i32, i32, i32) {
    %c0_i32 = arith.constant 0 : i32
    %c0_i32_0 = arith.constant 0 : i32
    %c0_i32_1 = arith.constant 0 : i32
    %c0_i32_2 = arith.constant 0 : i32
    return %arg0, %c0_i32, %c0_i32_0, %c0_i32_1 : i32, i32, i32, i32
  }
  func.func @transform_1(%arg0: i32, %arg1: i32) -> (i32, i32, i32) {
    %c0_i32 = arith.constant 0 : i32
    %c0_i32_0 = arith.constant 0 : i32
    %c0_i32_1 = arith.constant 0 : i32
    %c0_i32_2 = arith.constant 0 : i32
    return %c0_i32, %c0_i32_0, %c0_i32_1 : i32, i32, i32
  }
  func.func @transform_2(%arg0: i32, %arg1: i32) -> (i32, i32) {
    %c0_i32 = arith.constant 0 : i32
    %c0_i32_0 = arith.constant 0 : i32
    %c0_i32_1 = arith.constant 0 : i32
    return %c0_i32, %c0_i32_0 : i32, i32
  }
  func.func @transform_3(%arg0: i32, %arg1: i32) -> (i32, i32) {
    %c0_i32 = arith.constant 0 : i32
    %c0_i32_0 = arith.constant 0 : i32
    %c0_i32_1 = arith.constant 0 : i32
    return %c0_i32, %c0_i32_0 : i32, i32
  }
  func.func @transform_4(%arg0: i32, %arg1: i32) -> (i32, i32) {
    %c0_i32 = arith.constant 0 : i32
    %c0_i32_0 = arith.constant 0 : i32
    %c0_i32_1 = arith.constant 0 : i32
    return %c0_i32, %c0_i32_0 : i32, i32
  }
  func.func @transform_5(%arg0: i32, %arg1: i32) -> (i32, i32, i32, i32) {
    %c0_i32 = arith.constant 0 : i32
    %c0_i32_0 = arith.constant 0 : i32
    %c0_i32_1 = arith.constant 0 : i32
    return %arg0, %arg1, %c0_i32, %c0_i32_0 : i32, i32, i32, i32
  }
}

module attributes {stable_mosaic.version = 11 : i64} {
  func.func @_loc2bbox_kernel(%arg0: memref<8x128xf32, #tpu.memory_space<vmem>>, %arg1: memref<8x128xf32, #tpu.memory_space<vmem>>, %arg2: memref<8x128xf32, #tpu.memory_space<vmem>>) attributes {dimension_semantics = [], scalar_prefetch = 0 : i64, scratch_operands = 0 : i64, tpu.core_type = #tpu.core_type<tc>} {
    %c0 = arith.constant 0 : index
    %c0_0 = arith.constant 0 : index
    %0 = vector.load %arg0[%c0, %c0_0] : memref<8x128xf32, #tpu.memory_space<vmem>>, vector<8x128xf32>
    %c0_1 = arith.constant 0 : index
    %c0_2 = arith.constant 0 : index
    %1 = vector.load %arg1[%c0_1, %c0_2] : memref<8x128xf32, #tpu.memory_space<vmem>>, vector<8x128xf32>
    %2 = vector.extract_strided_slice %0 {offsets = [2, 0], sizes = [1, 128], strides = [1, 1]} : vector<8x128xf32> to vector<1x128xf32>
    %3 = vector.extract_strided_slice %0 {offsets = [0, 0], sizes = [1, 128], strides = [1, 1]} : vector<8x128xf32> to vector<1x128xf32>
    %4 = arith.subf %2, %3 : vector<1x128xf32>
    %5 = vector.extract_strided_slice %0 {offsets = [3, 0], sizes = [1, 128], strides = [1, 1]} : vector<8x128xf32> to vector<1x128xf32>
    %6 = vector.extract_strided_slice %0 {offsets = [1, 0], sizes = [1, 128], strides = [1, 1]} : vector<8x128xf32> to vector<1x128xf32>
    %7 = arith.subf %5, %6 : vector<1x128xf32>
    %8 = vector.extract_strided_slice %0 {offsets = [0, 0], sizes = [1, 128], strides = [1, 1]} : vector<8x128xf32> to vector<1x128xf32>
    %cst = arith.constant 5.000000e-01 : f32
    %9 = vector.broadcast %cst : f32 to vector<1x128xf32>
    %10 = arith.mulf %9, %4 : vector<1x128xf32>
    %11 = arith.addf %8, %10 : vector<1x128xf32>
    %12 = vector.extract_strided_slice %0 {offsets = [1, 0], sizes = [1, 128], strides = [1, 1]} : vector<8x128xf32> to vector<1x128xf32>
    %cst_3 = arith.constant 5.000000e-01 : f32
    %13 = vector.broadcast %cst_3 : f32 to vector<1x128xf32>
    %14 = arith.mulf %13, %7 : vector<1x128xf32>
    %15 = arith.addf %12, %14 : vector<1x128xf32>
    %16 = vector.extract_strided_slice %1 {offsets = [0, 0], sizes = [1, 128], strides = [1, 1]} : vector<8x128xf32> to vector<1x128xf32>
    %17 = arith.mulf %16, %4 : vector<1x128xf32>
    %18 = arith.addf %17, %11 : vector<1x128xf32>
    %19 = vector.extract_strided_slice %1 {offsets = [1, 0], sizes = [1, 128], strides = [1, 1]} : vector<8x128xf32> to vector<1x128xf32>
    %20 = arith.mulf %19, %7 : vector<1x128xf32>
    %21 = arith.addf %20, %15 : vector<1x128xf32>
    %22 = vector.extract_strided_slice %1 {offsets = [2, 0], sizes = [1, 128], strides = [1, 1]} : vector<8x128xf32> to vector<1x128xf32>
    %cst_4 = arith.constant 1.000000e+01 : f32
    %23 = vector.broadcast %cst_4 : f32 to vector<1x128xf32>
    %24 = arith.minimumf %22, %23 : vector<1x128xf32>
    %25 = math.exp %24 : vector<1x128xf32>
    %26 = arith.mulf %25, %4 : vector<1x128xf32>
    %27 = vector.extract_strided_slice %1 {offsets = [3, 0], sizes = [1, 128], strides = [1, 1]} : vector<8x128xf32> to vector<1x128xf32>
    %cst_5 = arith.constant 1.000000e+01 : f32
    %28 = vector.broadcast %cst_5 : f32 to vector<1x128xf32>
    %29 = arith.minimumf %27, %28 : vector<1x128xf32>
    %30 = math.exp %29 : vector<1x128xf32>
    %31 = arith.mulf %30, %7 : vector<1x128xf32>
    %cst_6 = arith.constant 5.000000e-01 : f32
    %32 = vector.broadcast %cst_6 : f32 to vector<1x128xf32>
    %33 = arith.mulf %32, %26 : vector<1x128xf32>
    %34 = arith.subf %18, %33 : vector<1x128xf32>
    %cst_7 = arith.constant 0.000000e+00 : f32
    %cst_8 = arith.constant 1.600000e+01 : f32
    %35 = vector.broadcast %cst_7 : f32 to vector<1x128xf32>
    %36 = arith.maximumf %35, %34 : vector<1x128xf32>
    %37 = vector.broadcast %cst_8 : f32 to vector<1x128xf32>
    %38 = arith.minimumf %37, %36 : vector<1x128xf32>
    %c0_9 = arith.constant 0 : index
    %c0_10 = arith.constant 0 : index
    %39 = vector.load %arg2[%c0_9, %c0_10] : memref<8x128xf32, #tpu.memory_space<vmem>>, vector<1x128xf32>
    tpu.vector_store %arg2[%c0_9, %c0_10], %38 {strides = array<i32>} : memref<8x128xf32, #tpu.memory_space<vmem>>, vector<1x128xf32>,
    %cst_11 = arith.constant 5.000000e-01 : f32
    %40 = vector.broadcast %cst_11 : f32 to vector<1x128xf32>
    %41 = arith.mulf %40, %31 : vector<1x128xf32>
    %42 = arith.subf %21, %41 : vector<1x128xf32>
    %cst_12 = arith.constant 0.000000e+00 : f32
    %cst_13 = arith.constant 1.600000e+01 : f32
    %43 = vector.broadcast %cst_12 : f32 to vector<1x128xf32>
    %44 = arith.maximumf %43, %42 : vector<1x128xf32>
    %45 = vector.broadcast %cst_13 : f32 to vector<1x128xf32>
    %46 = arith.minimumf %45, %44 : vector<1x128xf32>
    %c1 = arith.constant 1 : index
    %c0_14 = arith.constant 0 : index
    %47 = vector.load %arg2[%c1, %c0_14] : memref<8x128xf32, #tpu.memory_space<vmem>>, vector<1x128xf32>
    tpu.vector_store %arg2[%c1, %c0_14], %46 {strides = array<i32>} : memref<8x128xf32, #tpu.memory_space<vmem>>, vector<1x128xf32>,
    %cst_15 = arith.constant 5.000000e-01 : f32
    %48 = vector.broadcast %cst_15 : f32 to vector<1x128xf32>
    %49 = arith.mulf %48, %26 : vector<1x128xf32>
    %50 = arith.addf %18, %49 : vector<1x128xf32>
    %cst_16 = arith.constant 0.000000e+00 : f32
    %cst_17 = arith.constant 1.600000e+01 : f32
    %51 = vector.broadcast %cst_16 : f32 to vector<1x128xf32>
    %52 = arith.maximumf %51, %50 : vector<1x128xf32>
    %53 = vector.broadcast %cst_17 : f32 to vector<1x128xf32>
    %54 = arith.minimumf %53, %52 : vector<1x128xf32>
    %c2 = arith.constant 2 : index
    %c0_18 = arith.constant 0 : index
    %55 = vector.load %arg2[%c2, %c0_18] : memref<8x128xf32, #tpu.memory_space<vmem>>, vector<1x128xf32>
    tpu.vector_store %arg2[%c2, %c0_18], %54 {strides = array<i32>} : memref<8x128xf32, #tpu.memory_space<vmem>>, vector<1x128xf32>,
    %cst_19 = arith.constant 5.000000e-01 : f32
    %56 = vector.broadcast %cst_19 : f32 to vector<1x128xf32>
    %57 = arith.mulf %56, %31 : vector<1x128xf32>
    %58 = arith.addf %21, %57 : vector<1x128xf32>
    %cst_20 = arith.constant 0.000000e+00 : f32
    %cst_21 = arith.constant 1.600000e+01 : f32
    %59 = vector.broadcast %cst_20 : f32 to vector<1x128xf32>
    %60 = arith.maximumf %59, %58 : vector<1x128xf32>
    %61 = vector.broadcast %cst_21 : f32 to vector<1x128xf32>
    %62 = arith.minimumf %61, %60 : vector<1x128xf32>
    %c3 = arith.constant 3 : index
    %c0_22 = arith.constant 0 : index
    %63 = vector.load %arg2[%c3, %c0_22] : memref<8x128xf32, #tpu.memory_space<vmem>>, vector<1x128xf32>
    tpu.vector_store %arg2[%c3, %c0_22], %62 {strides = array<i32>} : memref<8x128xf32, #tpu.memory_space<vmem>>, vector<1x128xf32>,
    %cst_23 = arith.constant 0.000000e+00 : f32
    %64 = vector.broadcast %cst_23 : f32 to vector<4x128xf32>
    %c4 = arith.constant 4 : index
    %c0_24 = arith.constant 0 : index
    %65 = vector.load %arg2[%c4, %c0_24] : memref<8x128xf32, #tpu.memory_space<vmem>>, vector<4x128xf32>
    tpu.vector_store %arg2[%c4, %c0_24], %64 {strides = array<i32>} : memref<8x128xf32, #tpu.memory_space<vmem>>, vector<4x128xf32>,
    return
  }
}

module attributes {stable_mosaic.version = 11 : i64} {
  func.func @_head_fc_kernel(%arg0: memref<16x6272xbf16, #tpu.memory_space<vmem>>, %arg1: memref<6272x128xbf16, #tpu.memory_space<vmem>>, %arg2: memref<1x128xf32, #tpu.memory_space<vmem>>, %arg3: memref<128x128xbf16, #tpu.memory_space<vmem>>, %arg4: memref<1x128xf32, #tpu.memory_space<vmem>>, %arg5: memref<128x128xbf16, #tpu.memory_space<vmem>>, %arg6: memref<1x128xf32, #tpu.memory_space<vmem>>, %arg7: memref<16x128xf32, #tpu.memory_space<vmem>>) attributes {dimension_semantics = [], scalar_prefetch = 0 : i64, scratch_operands = 0 : i64, tpu.core_type = #tpu.core_type<tc>} {
    %c0 = arith.constant 0 : index
    %c0_0 = arith.constant 0 : index
    %0 = vector.load %arg0[%c0, %c0_0] : memref<16x6272xbf16, #tpu.memory_space<vmem>>, vector<16x6272xbf16>
    %c0_1 = arith.constant 0 : index
    %c0_2 = arith.constant 0 : index
    %1 = vector.load %arg1[%c0_1, %c0_2] : memref<6272x128xbf16, #tpu.memory_space<vmem>>, vector<6272x128xbf16>
    %cst = arith.constant dense<0.000000e+00> : vector<16x128xf32>
    %2 = tpu.matmul %0, %1, %cst {dimension_numbers = #tpu.dot_dimension_numbers<[1], [0], [0], [1], [0, 0, 1, 1], [], []>} : vector<16x6272xbf16>, vector<6272x128xbf16>, vector<16x128xf32> -> vector<16x128xf32>
    %c0_3 = arith.constant 0 : index
    %c0_4 = arith.constant 0 : index
    %3 = vector.load %arg2[%c0_3, %c0_4] : memref<1x128xf32, #tpu.memory_space<vmem>>, vector<1x128xf32>
    %4 = vector.broadcast %3 : vector<1x128xf32> to vector<16x128xf32>
    %5 = arith.addf %2, %4 : vector<16x128xf32>
    %cst_5 = arith.constant 0.000000e+00 : f32
    %6 = vector.broadcast %cst_5 : f32 to vector<16x128xf32>
    %7 = arith.maximumf %5, %6 : vector<16x128xf32>
    %8 = arith.truncf %7 : vector<16x128xf32> to vector<16x128xbf16>
    %c0_6 = arith.constant 0 : index
    %c0_7 = arith.constant 0 : index
    %9 = vector.load %arg3[%c0_6, %c0_7] : memref<128x128xbf16, #tpu.memory_space<vmem>>, vector<128x128xbf16>
    %cst_8 = arith.constant dense<0.000000e+00> : vector<16x128xf32>
    %10 = tpu.matmul %8, %9, %cst_8 {dimension_numbers = #tpu.dot_dimension_numbers<[1], [0], [0], [1], [0, 0, 1, 1], [], []>} : vector<16x128xbf16>, vector<128x128xbf16>, vector<16x128xf32> -> vector<16x128xf32>
    %c0_9 = arith.constant 0 : index
    %c0_10 = arith.constant 0 : index
    %11 = vector.load %arg4[%c0_9, %c0_10] : memref<1x128xf32, #tpu.memory_space<vmem>>, vector<1x128xf32>
    %12 = vector.broadcast %11 : vector<1x128xf32> to vector<16x128xf32>
    %13 = arith.addf %10, %12 : vector<16x128xf32>
    %cst_11 = arith.constant 0.000000e+00 : f32
    %14 = vector.broadcast %cst_11 : f32 to vector<16x128xf32>
    %15 = arith.maximumf %13, %14 : vector<16x128xf32>
    %16 = arith.truncf %15 : vector<16x128xf32> to vector<16x128xbf16>
    %c0_12 = arith.constant 0 : index
    %c0_13 = arith.constant 0 : index
    %17 = vector.load %arg5[%c0_12, %c0_13] : memref<128x128xbf16, #tpu.memory_space<vmem>>, vector<128x128xbf16>
    %cst_14 = arith.constant dense<0.000000e+00> : vector<16x128xf32>
    %18 = tpu.matmul %16, %17, %cst_14 {dimension_numbers = #tpu.dot_dimension_numbers<[1], [0], [0], [1], [0, 0, 1, 1], [], []>} : vector<16x128xbf16>, vector<128x128xbf16>, vector<16x128xf32> -> vector<16x128xf32>
    %c0_15 = arith.constant 0 : index
    %c0_16 = arith.constant 0 : index
    %19 = vector.load %arg6[%c0_15, %c0_16] : memref<1x128xf32, #tpu.memory_space<vmem>>, vector<1x128xf32>
    %20 = vector.broadcast %19 : vector<1x128xf32> to vector<16x128xf32>
    %21 = arith.addf %18, %20 : vector<16x128xf32>
    %c0_17 = arith.constant 0 : index
    %c0_18 = arith.constant 0 : index
    %22 = vector.load %arg7[%c0_17, %c0_18] : memref<16x128xf32, #tpu.memory_space<vmem>>, vector<16x128xf32>
    tpu.vector_store %arg7[%c0_17, %c0_18], %21 {strides = array<i32>} : memref<16x128xf32, #tpu.memory_space<vmem>>, vector<16x128xf32>,
    return
  }
}

</mosaic_0001>

<bundles_post_ra>
// kernel: faster_rcnn_forward.5
= control target key start
LH: loop header
LB: loop body
LE: loop exit
PB: predicated region body
PF: predicated region fallthrough
CT: control target
= control target key end

     0   :  { %s1092_s12 = smov 0   ;;  %s1094_s13 = smov 0   ;;  %s1283_s0 = inlined_call_operand.vmem [shape: bf16[2,9,9,12], index: 0, kind: input, shape index: {}]   ;;  %s1284_s1 = inlined_call_operand.vmem [shape: bf16[4,12,128], index: 1, kind: input, shape index: {}]   ;;  %s1285_s2 = inlined_call_operand.vmem [shape: f32[1,128], index: 2, kind: input, shape index: {}]   ;;  %s1286_s3 = inlined_call_operand.vmem [shape: bf16[2,8,8,128], index: 3, kind: output, shape index: {}]  }
   0x1   :  { %s1096_s14 = smov 0  }
   0x2 LB: > { %s25_s15 = sadd.s32 1, %s1066_s13  ;;  %p886_p0 = scmp.ge.s32.totalorder %s1070_s14, 1  ;;  %s1070_s14 = sphi %s1096_s14, %s13_s14   ;;  %s1066_s13 = sphi %s1094_s13, %s1290_s13   ;;  %s1062_s12 = sphi %s1092_s12, %s1289_s12  }
   0x3   : > { %p27_p1 = scmp.ge.s32.totalorder %s25_s15, 2  ;;  %p151_p2 = scmp.lt.s32.totalorder %s1070_s14, 3 }
   0x5   : > { %s1292_s15 = smov (%p27_p1, %s25_s15), 0  ;;  %p152_p3 = pnand %p886_p0, %p151_p2 }
   0x6   : > { %p179_p4 = scmp.lt.s32.totalorder (!%p152_p3), %s1062_s12, 1 }
   0x7   : > { %155 = sbr.rel (%p152_p3) target bundleno = 235 (0xeb), region = 32 }
   0xc   : > { %vm365_vm0 = vcmask 1045504   ;;  %v952_v0 = vld [vmem:[%s1284_s1 + $0x10] sm:$0xf]  ;;  %v997_v1 = vld [vmem:[%s1284_s1 + $0x10] sm:$0x30]  ;;  %s1294_s12 = smov (!%p179_p4, %s1062_s12), 1 }
   0xd   : > { %v953_v2 = vor.u32 %v997_v1, %v952_v0  ;;  %v918_v3 = vld [vmem:[%s1284_s1] sm:$0xf]  ;;  %v991_v4 = vld [vmem:[%s1284_s1] sm:$0x30]  ;;  %v894_v6 = vld [vmem:[%s1284_s1 + $0x8] sm:$0xf] }
   0xe   : > { %v919_v5 = vor.u32 %v991_v4, %v918_v3  ;;  %v992_v7 = vld [vmem:[%s1284_s1 + $0x8] sm:$0x30]  ;;  %v978_v10 = vld [vmem:[%s1284_s1 + $0x18] sm:$0xf]  ;;  %v998_v11 = vld [vmem:[%s1284_s1 + $0x18] sm:$0x30] }
   0xf   : > { %v520_v8 = vsel %vm365_vm0, %v953_v2, 0  ;;  %v895_v9 = vor.u32 %v992_v7, %v894_v6  ;;  %s1022_s5 = smul.u32 72, %s1294_s12  ;;  %v979_v13 = vor.u32 %v998_v11, %v978_v10  ;;  %vm352_vm1 = vcmask 97280   ;;  %s986_s11 = sshll.u32 %s1294_s12, 5 }
  0x10   : > { %529 = vmatpush.bf16.msra.mxu2 %v520_v8  ;;  %v436_v12 = vsel %vm365_vm0, %v919_v5, 0  ;;  %vm217_vm2 = vsmask.f32 3328  ;;  %vm218_vm3 = vsmask.f32 7440  ;;  %s1262_s18 = scalar_lea.vmem %s1286_s3, %s986_s11 }
  0x11   : > { %445 = vmatpush.bf16.msra.mxu1 %v436_v12  ;;  %v367_v14 = vsel %vm365_vm0, %v895_v9, 0  ;;  %s1143_s8 = scalar_lea.vmem %s1283_s0, %s1022_s5  ;;  %v720_v15 = vsel %vm365_vm0, %v979_v13, 0  ;;  %vm1165_vm4 = vmor %vm217_vm2, %vm218_vm3 }
  0x12   : > { %376 = vmatpush.bf16.msra.mxu0 %v367_v14  ;;  %v936_v16 = vld [vmem:[%s1143_s8 + $0x8] sm:$0xf]  ;;  %v993_v17 = vld [vmem:[%s1143_s8 + $0xc] sm:$0xf0]  ;;  %v902_v18 = vld [vmem:[%s1143_s8] sm:$0xf]  ;;  %729 = vmatpush.bf16.msra.mxu3 %v720_v15 }
  0x13   : > { %v937_v19 = vor.u32 %v993_v17, %v936_v16  ;;  %v987_v20 = vld [vmem:[%s1143_s8 + $0x4] sm:$0xf0]  ;;  %v199_v21 = vld [vmem:[%s1143_s8] sm:$0xf]  ;;  %v209_v24 = vld [vmem:[%s1143_s8 + $0x4] sm:$0x1] }
  0x14   : > { %v200_v22 = vld [vmem:[%s1143_s8 + $0x8] sm:$0xf]  ;;  %v903_v23 = vor.u32 %v987_v20, %v902_v18  ;;  %v210_v25 = vld [vmem:[%s1143_s8 + $0xc] sm:$0x1]  ;;  %v221_v26 = vshrl.u32 %v199_v21, 16  ;;  %v224_v27 = vshll.u32 %v199_v21, 16 }
  0x15   : > { %954 = vmatmul.msk.bf16.vlgmr.msra.gmra.mxu2 %vm352_vm1, %v937_v19  ;;  %v230_v28 = vshll.u32 %v209_v24, 16  ;;  %v235_v29 = vshrl.u32 %v200_v22, 16  ;;  %v238_v30 = vshll.u32 %v200_v22, 16  ;;  %v244_v31 = vshll.u32 %v210_v25, 16  ;;  %v958_v32 = vld [vmem:[%s1143_s8 + $0x8] sm:$0xf] }
  0x16   : > { %920 = vmatmul.msk.bf16.vlgmr.msra.gmra.mxu1 %vm352_vm1, %v903_v23  ;;  %v223_v33 = vrot.slane %v221_v26, 4  ;;  %v226_v34 = vrot.slane %v224_v27, 5  ;;  %v959_v35 = vld [vmem:[%s1143_s8 + $0xc] sm:$0x1]  ;;  %v960_v36 = vld [vmem:[%s1143_s8 + $0x10] sm:$0xf] }
  0x17   : > { %v232_v37 = vrot.slane %v230_v28, 5  ;;  %v237_v38 = vrot.slane %v235_v29, 4  ;;  %v240_v39 = vrot.slane %v238_v30, 5  ;;  %v246_v40 = vrot.slane %v244_v31, 5  ;;  %v961_v41 = vld [vmem:[%s1143_s8 + $0x14] sm:$0x1] }
  0x18   : > { %v227_v42 = vor.u32 %v226_v34, %v223_v33  ;;  %v576_v43 = vshrl.u32 %v958_v32, 16  ;;  %v579_v44 = vshll.u32 %v958_v32, 16  ;;  %v585_v45 = vshll.u32 %v959_v35, 16  ;;  %v1161_v46 = vld [vmem:[%s1143_s8 + $0x18] sm:$0xf] }
  0x19   : > { %v241_v48 = vor.u32 %v240_v39, %v237_v38  ;;  %v590_v49 = vshrl.u32 %v960_v36, 16  ;;  %v593_v50 = vshll.u32 %v960_v36, 16  ;;  %v599_v51 = vshll.u32 %v961_v41, 16  ;;  %v994_v52 = vld [vmem:[%s1143_s8 + $0x1c] sm:$0xf0] }
  0x1a   : > { %v228_v53 = vrot.slane %v227_v42, 4  ;;  %v578_v54 = vrot.slane %v576_v43, 4  ;;  %v581_v55 = vrot.slane %v579_v44, 5  ;;  %v587_v56 = vrot.slane %v585_v45, 5  ;;  %v906_v57 = vld [vmem:[%s1143_s8 + $0x10] sm:$0xf] }
  0x1b   : > { %v242_v58 = vrot.slane %v241_v48, 4  ;;  %v592_v59 = vrot.slane %v590_v49, 4  ;;  %v595_v60 = vrot.slane %v593_v50, 5  ;;  %v601_v61 = vrot.slane %v599_v51, 5  ;;  %v988_v62 = vld [vmem:[%s1143_s8 + $0x14] sm:$0xf0] }
  0x1c   : > { %v233_v63 = vsel %vm1165_vm4, %v228_v53, %v232_v37  ;;  %v582_v0 = vor.u32 %v581_v55, %v578_v54  ;;  %v941_v1 = vor.u32 %v994_v52, %v1161_v46  ;;  %v907_v2 = vor.u32 %v988_v62, %v906_v57  ;;  %v201_v3 = vld [vmem:[%s1143_s8 + $0x10] sm:$0xf]  ;;  %v202_v4 = vld [vmem:[%s1143_s8 + $0x18] sm:$0xf]  ;;  %v211_v5 = vld [vmem:[%s1143_s8 + $0x14] sm:$0x1] }
  0x1d   : > { %v247_v6 = vsel %vm1165_vm4, %v242_v58, %v246_v40  ;;  %v335_v7 = vunpack.c.l.b16 %v233_v63  ;;  %v596_v8 = vor.u32 %v595_v60, %v592_v59  ;;  %v249_v9 = vshrl.u32 %v201_v3, 16  ;;  %v212_v12 = vld [vmem:[%s1143_s8 + $0x1c] sm:$0x1]  ;;  %v962_v19 = vld [vmem:[%s1143_s8 + $0x18] sm:$0xf] }
  0x1e   : > { %v336_v10 = vunpack.c.l.b16 %v247_v6  ;;  %v583_v11 = vrot.slane %v582_v0, 4  ;;  %v252_v13 = vshll.u32 %v201_v3, 16  ;;  %v258_v14 = vshll.u32 %v211_v5, 16  ;;  %v963_v24 = vld [vmem:[%s1143_s8 + $0x1c] sm:$0x1] }
  0x1f   : > { %v597_v15 = vrot.slane %v596_v8, 4  ;;  %v251_v16 = vrot.slane %v249_v9, 4  ;;  %v263_v17 = vshrl.u32 %v202_v4, 16  ;;  %v266_v18 = vshll.u32 %v202_v4, 16  ;;  %v964_v25 = vld [vmem:[%s1143_s8 + $0x20] sm:$0xf] }
  0x20   : > { %v343_v20 = vpack.c.b16 %v336_v10, %v335_v7  ;;  %v588_v21 = vsel %vm1165_vm4, %v583_v11, %v587_v56  ;;  %v254_v22 = vrot.slane %v252_v13, 5  ;;  %v260_v23 = vrot.slane %v258_v14, 5  ;;  %v965_v35 = vld [vmem:[%s1143_s8 + $0x24] sm:$0x1]  ;;  %v203_v45 = vld [vmem:[%s1143_s8 + $0x20] sm:$0xf] }
  0x21   : > { %v602_v26 = vsel %vm1165_vm4, %v597_v15, %v601_v61  ;;  %v690_v27 = vunpack.c.l.b16 %v588_v21  ;;  %v265_v28 = vrot.slane %v263_v17, 4  ;;  %v268_v29 = vrot.slane %v266_v18, 5  ;;  %v204_v51 = vld [vmem:[%s1143_s8 + $0x28] sm:$0xf]  ;;  %v995_v59 = vld [vmem:[%s1143_s8 + $0x2c] sm:$0xf0] }
  0x22   : > { %896 = vmatmul.msk.bf16.vlgmr.msra.gmra.mxu0 %vm352_vm1, %v343_v20  ;;  %v691_v30 = vunpack.c.l.b16 %v602_v26  ;;  %v255_v31 = vor.u32 %v254_v22, %v251_v16  ;;  %v272_v32 = vshll.u32 %v212_v12, 16  ;;  %v604_v33 = vshrl.u32 %v962_v19, 16  ;;  %v944_v55 = vld [vmem:[%s1143_s8 + $0x28] sm:$0xf]  ;;  %v213_v60 = vld [vmem:[%s1143_s8 + $0x24] sm:$0x1] }
  0x23   : > { %v269_v34 = vor.u32 %v268_v29, %v265_v28  ;;  %v607_v36 = vshll.u32 %v962_v19, 16  ;;  %v613_v37 = vshll.u32 %v963_v24, 16  ;;  %v618_v38 = vshrl.u32 %v964_v25, 16  ;;  %v214_v63 = vld [vmem:[%s1143_s8 + $0x2c] sm:$0x1] }
  0x24   : > { %v698_v39 = vpack.c.b16 %v691_v30, %v690_v27  ;;  %v256_v40 = vrot.slane %v255_v31, 4  ;;  %v274_v41 = vrot.slane %v272_v32, 5  ;;  %v606_v42 = vrot.slane %v604_v33, 4  ;;  %v966_v6 = vld [vmem:[%s1143_s8 + $0x28] sm:$0xf] }
  0x25   : > { %955 = vmatmul.msk.bf16.gmra.mxu2 %vm352_vm1, %v941_v1  ;;  %v270_v43 = vrot.slane %v269_v34, 4  ;;  %v609_v44 = vrot.slane %v607_v36, 5  ;;  %v620_v48 = vrot.slane %v618_v38, 4  ;;  %v621_v49 = vshll.u32 %v964_v25, 16  ;;  %v968_v11 = vld [vmem:[%s1143_s8 + $0x30] sm:$0xf] }
  0x26   : > { %980 = vmatmul.msk.bf16.vlgmr.msra.gmra.mxu3 %vm352_vm1, %v698_v39  ;;  %921 = vmatmul.msk.bf16.gmra.mxu1 %vm352_vm1, %v907_v2  ;;  %v261_v46 = vsel %vm1165_vm4, %v256_v40, %v260_v23  ;;  %v627_v50 = vshll.u32 %v965_v35, 16  ;;  %v615_v54 = vrot.slane %v613_v37, 5  ;;  %v277_v61 = vshrl.u32 %v203_v45, 16  ;;  %v967_v18 = vld [vmem:[%s1143_s8 + $0x2c] sm:$0x1] }
  0x27   : > { %v275_v52 = vsel %vm1165_vm4, %v270_v43, %v274_v41  ;;  %v610_v53 = vor.u32 %v609_v44, %v606_v42  ;;  %v337_v56 = vunpack.c.l.b16 %v261_v46  ;;  %v623_v58 = vrot.slane %v621_v49, 5  ;;  %v910_v23 = vld [vmem:[%s1143_s8 + $0x20] sm:$0xf]  ;;  %v969_v25 = vld [vmem:[%s1143_s8 + $0x34] sm:$0x1] }
  0x28   : > { %v338_v57 = vunpack.c.l.b16 %v275_v52  ;;  %v280_v0 = vshll.u32 %v203_v45, 16  ;;  %v291_v1 = vshrl.u32 %v204_v51, 16  ;;  %v629_v3 = vrot.slane %v627_v50, 5  ;;  %v989_v28 = vld [vmem:[%s1143_s8 + $0x24] sm:$0xf0] }
  0x29   : > { %v611_v62 = vrot.slane %v610_v53, 4  ;;  %v624_v2 = vor.u32 %v623_v58, %v620_v48  ;;  %v279_v4 = vrot.slane %v277_v61, 4  ;;  %v294_v5 = vshll.u32 %v204_v51, 16  ;;  %v205_v43 = vld [vmem:[%s1143_s8 + $0x30] sm:$0xf] }
  0x2a   : > { %v282_v8 = vrot.slane %v280_v0, 5  ;;  %v286_v9 = vshll.u32 %v213_v60, 16  ;;  %v293_v10 = vrot.slane %v291_v1, 4  ;;  %v344_v12 = vpack.c.b16 %v338_v57, %v337_v56  ;;  %v206_v44 = vld [vmem:[%s1143_s8 + $0x38] sm:$0xf] }
  0x2b   : > { %v616_v7 = vsel %vm1165_vm4, %v611_v62, %v615_v54  ;;  %v625_v13 = vrot.slane %v624_v2, 4  ;;  %v945_v14 = vor.u32 %v995_v59, %v944_v55  ;;  %v296_v15 = vrot.slane %v294_v5, 5  ;;  %v970_v57 = vld [vmem:[%s1143_s8 + $0x38] sm:$0xf]  ;;  %v972_v58 = vld [vmem:[%s1143_s8 + $0x40] sm:$0xf] }
  0x2c   : > { %v283_v16 = vor.u32 %v282_v8, %v279_v4  ;;  %v300_v17 = vshll.u32 %v214_v63, 16  ;;  %v632_v19 = vshrl.u32 %v966_v6, 16  ;;  %v635_v20 = vshll.u32 %v966_v6, 16  ;;  %v215_v0 = vld [vmem:[%s1143_s8 + $0x34] sm:$0x1] }
  0x2d   : > { %v630_v21 = vsel %vm1165_vm4, %v625_v13, %v629_v3  ;;  %v692_v22 = vunpack.c.l.b16 %v616_v7  ;;  %v297_v24 = vor.u32 %v296_v15, %v293_v10  ;;  %v646_v26 = vshrl.u32 %v968_v11, 16  ;;  %v216_v4 = vld [vmem:[%s1143_s8 + $0x3c] sm:$0x1]  ;;  %v914_v15 = vld [vmem:[%s1143_s8 + $0x30] sm:$0xf] }
  0x2e   : > { %v693_v27 = vunpack.c.l.b16 %v630_v21  ;;  %v288_v29 = vrot.slane %v286_v9, 5  ;;  %v634_v30 = vrot.slane %v632_v19, 4  ;;  %v637_v31 = vrot.slane %v635_v20, 5  ;;  %v971_v20 = vld [vmem:[%s1143_s8 + $0x3c] sm:$0x1] }
  0x2f   : > { %v284_v32 = vrot.slane %v283_v16, 4  ;;  %v641_v33 = vshll.u32 %v967_v18, 16  ;;  %v648_v34 = vrot.slane %v646_v26, 4  ;;  %v649_v35 = vshll.u32 %v968_v11, 16  ;;  %v948_v11 = vld [vmem:[%s1143_s8 + $0x38] sm:$0xf] }
  0x30   : > { %v298_v36 = vrot.slane %v297_v24, 4  ;;  %v302_v37 = vrot.slane %v300_v17, 5  ;;  %v638_v38 = vor.u32 %v637_v31, %v634_v30  ;;  %v655_v39 = vshll.u32 %v969_v25, 16  ;;  %v990_v16 = vld [vmem:[%s1143_s8 + $0x34] sm:$0xf0] }
  0x31   : > { %v699_v40 = vpack.c.b16 %v693_v27, %v692_v22  ;;  %v911_v41 = vor.u32 %v989_v28, %v910_v23  ;;  %v651_v42 = vrot.slane %v649_v35, 5  ;;  %v289_v45 = vsel %vm1165_vm4, %v284_v32, %v288_v29  ;;  %v973_v25 = vld [vmem:[%s1143_s8 + $0x44] sm:$0x1] }
  0x32   : > { %897 = vmatmul.msk.bf16.gmra.mxu0 %vm352_vm1, %v344_v12  ;;  %v643_v46 = vrot.slane %v641_v33, 5  ;;  %v303_v49 = vsel %vm1165_vm4, %v298_v36, %v302_v37  ;;  %v639_v50 = vrot.slane %v638_v38, 4  ;;  %v657_v51 = vrot.slane %v655_v39, 5  ;;  %v996_v12 = vld [vmem:[%s1143_s8 + $0x3c] sm:$0xf0] }
  0x33   : > { %v652_v48 = vor.u32 %v651_v42, %v648_v34  ;;  %v305_v52 = vshrl.u32 %v205_v43, 16  ;;  %v308_v54 = vshll.u32 %v205_v43, 16  ;;  %v319_v55 = vshrl.u32 %v206_v44, 16 }
  0x34   : > { %v322_v56 = vshll.u32 %v206_v44, 16  ;;  %v339_v59 = vunpack.c.l.b16 %v289_v45  ;;  %v340_v60 = vunpack.c.l.b16 %v303_v49  ;;  %v644_v61 = vsel %vm1165_vm4, %v639_v50, %v643_v46 }
  0x35   : > { %956 = vmatmul.msk.bf16.gmra.mxu2 %vm352_vm1, %v945_v14  ;;  %v653_v53 = vrot.slane %v652_v48, 4  ;;  %v307_v62 = vrot.slane %v305_v52, 4  ;;  %v310_v1 = vrot.slane %v308_v54, 5  ;;  %v321_v2 = vrot.slane %v319_v55, 4 }
  0x36   : > { %981 = vmatmul.msk.bf16.gmra.mxu3 %vm352_vm1, %v699_v40  ;;  %922 = vmatmul.msk.bf16.gmra.mxu1 %vm352_vm1, %v911_v41  ;;  %v324_v3 = vrot.slane %v322_v56, 5  ;;  %v660_v5 = vshrl.u32 %v970_v57, 16  ;;  %v663_v6 = vshll.u32 %v970_v57, 16  ;;  %v674_v7 = vshrl.u32 %v972_v58, 16 }
  0x37   : > { %v658_v63 = vsel %vm1165_vm4, %v653_v53, %v657_v51  ;;  %v677_v8 = vshll.u32 %v972_v58, 16  ;;  %v345_v9 = vpack.c.b16 %v340_v60, %v339_v59  ;;  %v694_v10 = vunpack.c.l.b16 %v644_v61 }
  0x38   : > { %v314_v13 = vshll.u32 %v215_v0, 16  ;;  %v695_v14 = vunpack.c.l.b16 %v658_v63  ;;  %v311_v17 = vor.u32 %v310_v1, %v307_v62  ;;  %v325_v18 = vor.u32 %v324_v3, %v321_v2  ;;  %v1254_v0 = vld [vmem:[%s1285_s2] ss:$0 sm:$0xff] }
  0x39   : > { %v328_v19 = vshll.u32 %v216_v4, 16  ;;  %v662_v21 = vrot.slane %v660_v5, 4  ;;  %v665_v22 = vrot.slane %v663_v6, 5  ;;  %v676_v23 = vrot.slane %v674_v7, 4 }
  0x3a   : > { %v679_v24 = vrot.slane %v677_v8, 5  ;;  %v949_v26 = vor.u32 %v996_v12, %v948_v11  ;;  %v915_v27 = vor.u32 %v990_v16, %v914_v15  ;;  %v316_v28 = vrot.slane %v314_v13, 5 }
  0x3b   : > { %v700_v29 = vpack.c.b16 %v695_v14, %v694_v10  ;;  %v312_v30 = vrot.slane %v311_v17, 4  ;;  %v330_v31 = vrot.slane %v328_v19, 5  ;;  %v669_v32 = vshll.u32 %v971_v20, 16 }
  0x3c   : > { %v326_v33 = vrot.slane %v325_v18, 4  ;;  %v666_v34 = vor.u32 %v665_v22, %v662_v21  ;;  %v680_v35 = vor.u32 %v679_v24, %v676_v23  ;;  %v683_v36 = vshll.u32 %v973_v25, 16 }
  0x3d   : > { %v317_v37 = vsel %vm1165_vm4, %v312_v30, %v316_v28  ;;  %v671_v38 = vrot.slane %v669_v32, 5 }
  0x3e   : > { %v331_v39 = vsel %vm1165_vm4, %v326_v33, %v330_v31  ;;  %v667_v40 = vrot.slane %v666_v34, 4  ;;  %v681_v41 = vrot.slane %v680_v35, 4  ;;  %v685_v42 = vrot.slane %v683_v36, 5 }
  0x3f   : > { %v341_v43 = vunpack.c.l.b16 %v317_v37  ;;  %v342_v44 = vunpack.c.l.b16 %v331_v39 }
  0x40   : > { %v672_v45 = vsel %vm1165_vm4, %v667_v40, %v671_v38  ;;  %v686_v46 = vsel %vm1165_vm4, %v681_v41, %v685_v42 }
  0x41   : > { %v346_v48 = vpack.c.b16 %v342_v44, %v341_v43  ;;  %v696_v49 = vunpack.c.l.b16 %v672_v45  ;;  %v697_v50 = vunpack.c.l.b16 %v686_v46 }
  0x42   : > { %898 = vmatmul.msk.bf16.gmra.mxu0 %vm352_vm1, %v345_v9 }
  0x43   : > { %v701_v51 = vpack.c.b16 %v697_v50, %v696_v49 }
  0x45   : > { %957 = vmatmul.msk.bf16.gmra.mxu2 %vm352_vm1, %v949_v26 }
  0x46   : > { %982 = vmatmul.msk.bf16.gmra.mxu3 %vm352_vm1, %v700_v29  ;;  %923 = vmatmul.msk.bf16.gmra.mxu1 %vm352_vm1, %v915_v27 }
  0x52   : > { %899 = vmatmul.msk.bf16.gmra.mxu0 %vm352_vm1, %v346_v48 }
  0x56   : > { %983 = vmatmul.msk.bf16.gmra.mxu3 %vm352_vm1, %v701_v51 }
  0x93   : > { %v447_v52 = vpop.f32.mrf.mxu1 }
  0x98   : > { %v531_v53 = vpop.f32.mrf.mxu2 }
  0x9b   : > { %v449_v55 = vpop.f32.mrf.mxu1 }
  0x9f   : > { %v378_v54 = vpop.f32.mrf.mxu0 }
  0xa0   : > { %v533_v56 = vpop.f32.mrf.mxu2  ;;  %v448_v57 = vadd.f32 %v447_v52, %v378_v54 }
  0xa2   : > { %v551_v47 = vadd.f32 %v531_v53, %v448_v57 }
  0xa3   : > { %v452_v60 = vpop.f32.mrf.mxu1 }
  0xa7   : > { %v380_v58 = vpop.f32.mrf.mxu0 }
  0xa8   : > { %v450_v61 = vadd.f32 %v449_v55, %v380_v58  ;;  %v536_v62 = vpop.f32.mrf.mxu2 }
  0xa9   : > { %v731_v59 = vpop.f32.mrf.mxu3 }
  0xaa   : > { %v751_v63 = vadd.f32 %v731_v59, %v551_v47  ;;  %v552_v2 = vadd.f32 %v533_v56, %v450_v61 }
  0xab   : > { %v454_v6 = vpop.f32.mrf.mxu1 }
  0xac   : > { %v763_v4 = vadd.f32 %v1254_v0, %v751_v63 }
  0xae   : > { %v771_v8 = vmax.f32 %v763_v4, 0.0 }
  0xaf   : > { %v383_v1 = vpop.f32.mrf.mxu0 }
  0xb0   : > { %v453_v10 = vadd.f32 %v452_v60, %v383_v1  ;;  %v538_v11 = vpop.f32.mrf.mxu2 }
  0xb1   : > { %v733_v3 = vpop.f32.mrf.mxu3 }
  0xb2   : > { %v752_v5 = vadd.f32 %v733_v3, %v552_v2  ;;  %v553_v15 = vadd.f32 %v536_v62, %v453_v10 }
  0xb3   : > { %v457_v17 = vpop.f32.mrf.mxu1 }
  0xb4   : > { %v764_v7 = vadd.f32 %v1254_v0, %v752_v5 }
  0xb6   : > { %v772_v9 = vmax.f32 %v764_v7, 0.0 }
  0xb7   : > { %v385_v12 = vpop.f32.mrf.mxu0 }
  0xb8   : > { %v1002_v13 = vpack.c.bf16 %v772_v9, %v771_v8  ;;  %v455_v16 = vadd.f32 %v454_v6, %v385_v12  ;;  %v541_v21 = vpop.f32.mrf.mxu2 }
  0xb9   : > { %v736_v14 = vpop.f32.mrf.mxu3 }
  0xba   : > { %1003 = vst [vmem:[%s1262_s18] sm:$0xff] %v1002_v13   ;;  %v753_v18 = vadd.f32 %v736_v14, %v553_v15  ;;  %v554_v20 = vadd.f32 %v538_v11, %v455_v16 }
  0xbb   : > { %v459_v29 = vpop.f32.mrf.mxu1 }
  0xbc   : > { %v765_v23 = vadd.f32 %v1254_v0, %v753_v18 }
  0xbe   : > { %v773_v26 = vmax.f32 %v765_v23, 0.0 }
  0xbf   : > { %v388_v19 = vpop.f32.mrf.mxu0 }
  0xc0   : > { %v458_v28 = vadd.f32 %v457_v17, %v388_v19  ;;  %v543_v34 = vpop.f32.mrf.mxu2 }
  0xc1   : > { %v738_v22 = vpop.f32.mrf.mxu3 }
  0xc2   : > { %v754_v24 = vadd.f32 %v738_v22, %v554_v20  ;;  %v555_v33 = vadd.f32 %v541_v21, %v458_v28 }
  0xc3   : > { %v462_v39 = vpop.f32.mrf.mxu1 }
  0xc4   : > { %v766_v25 = vadd.f32 %v1254_v0, %v754_v24 }
  0xc6   : > { %v774_v27 = vmax.f32 %v766_v25, 0.0 }
  0xc7   : > { %v390_v30 = vpop.f32.mrf.mxu0 }
  0xc8   : > { %v1007_v31 = vpack.c.bf16 %v774_v27, %v773_v26  ;;  %v460_v35 = vadd.f32 %v459_v29, %v390_v30  ;;  %v546_v44 = vpop.f32.mrf.mxu2 }
  0xc9   : > { %v741_v32 = vpop.f32.mrf.mxu3 }
  0xca   : > { %1019 = vst [vmem:[%s1262_s18 + $0x8] sm:$0xff] %v1007_v31   ;;  %v755_v36 = vadd.f32 %v741_v32, %v555_v33  ;;  %v556_v38 = vadd.f32 %v543_v34, %v460_v35 }
  0xcb   : > { %v464_v53 = vpop.f32.mrf.mxu1 }
  0xcc   : > { %v767_v41 = vadd.f32 %v1254_v0, %v755_v36 }
  0xce   : > { %v775_v45 = vmax.f32 %v767_v41, 0.0 }
  0xcf   : > { %v393_v37 = vpop.f32.mrf.mxu0 }
  0xd0   : > { %v463_v48 = vadd.f32 %v462_v39, %v393_v37  ;;  %v548_v56 = vpop.f32.mrf.mxu2 }
  0xd1   : > { %v743_v40 = vpop.f32.mrf.mxu3 }
  0xd2   : > { %v756_v42 = vadd.f32 %v743_v40, %v556_v38  ;;  %v557_v52 = vadd.f32 %v546_v44, %v463_v48 }
  0xd4   : > { %v768_v43 = vadd.f32 %v1254_v0, %v756_v42 }
  0xd6   : > { %v776_v46 = vmax.f32 %v768_v43, 0.0 }
  0xd7   : > { %v395_v51 = vpop.f32.mrf.mxu0 }
  0xd8   : > { %v1012_v49 = vpack.c.bf16 %v776_v46, %v775_v45  ;;  %v465_v54 = vadd.f32 %v464_v53, %v395_v51 }
  0xd9   : > { %v746_v50 = vpop.f32.mrf.mxu3 }
  0xda   : > { %1020 = vst [vmem:[%s1262_s18 + $0x10] sm:$0xff] %v1012_v49   ;;  %v757_v55 = vadd.f32 %v746_v50, %v557_v52  ;;  %v558_v57 = vadd.f32 %v548_v56, %v465_v54 }
  0xdc   : > { %v769_v59 = vadd.f32 %v1254_v0, %v757_v55 }
  0xde   : > { %v777_v61 = vmax.f32 %v769_v59, 0.0 }
  0xe1   : > { %v748_v58 = vpop.f32.mrf.mxu3 }
  0xe2   : > { %v758_v60 = vadd.f32 %v748_v58, %v558_v57 }
  0xe4   : > { %v770_v47 = vadd.f32 %v1254_v0, %v758_v60 }
  0xe6   : > { %v778_v62 = vmax.f32 %v770_v47, 0.0 }
  0xe8   : > { %v1017_v63 = vpack.c.bf16 %v778_v62, %v777_v61 }
  0xea   : > { %1021 = vst [vmem:[%s1262_s18 + $0x18] sm:$0xff] %v1017_v63  }
  0xeb PF: > { %s13_s14 = sadd.s32 1, %s1070_s14   ;;  %s1289_s12 = smov %s1066_s13 }
  0xec   : > { %p10_p5 = scmp.ge.s32.totalorder %s13_s14, 4   ;;  %s1290_s13 = smov %s1292_s15 }
  0xee   :  { %12 = sbr.rel (!%p10_p5) target bundleno = 2 (0x2), region = 67 }

// kernel: faster_rcnn_forward.6
= control target key start
LH: loop header
LB: loop body
LE: loop exit
PB: predicated region body
PF: predicated region fallthrough
CT: control target
= control target key end

     0   :  { %s2944_s12 = smov 0   ;;  %s2946_s13 = smov 0   ;;  %s3514_s0 = inlined_call_operand.vmem [shape: bf16[2,5,5,512], index: 0, kind: input, shape index: {}]   ;;  %s3515_s1 = inlined_call_operand.vmem [shape: bf16[4,512,128], index: 1, kind: input, shape index: {}]   ;;  %s3516_s2 = inlined_call_operand.vmem [shape: f32[1,128], index: 2, kind: input, shape index: {}]   ;;  %s3517_s3 = inlined_call_operand.vmem [shape: bf16[2,4,4,128], index: 3, kind: output, shape index: {}]  }
   0x1   :  { %s2948_s14 = smov 0  }
   0x2 LB: > { %s25_s15 = sadd.s32 1, %s2918_s13  ;;  %p2019_p0 = scmp.ge.s32.totalorder %s2922_s14, 1  ;;  %s2922_s14 = sphi %s2948_s14, %s13_s14   ;;  %s2918_s13 = sphi %s2946_s13, %s3525_s13   ;;  %s2914_s12 = sphi %s2944_s12, %s3524_s12  }
   0x3   : > { %p27_p1 = scmp.ge.s32.totalorder %s25_s15, 2  ;;  %p151_p2 = scmp.lt.s32.totalorder %s2922_s14, 3 }
   0x5   : > { %s3527_s15 = smov (%p27_p1, %s25_s15), 0  ;;  %p152_p3 = pnand %p2019_p0, %p151_p2 }
   0x6   : > { %p179_p4 = scmp.lt.s32.totalorder (!%p152_p3), %s2914_s12, 1 }
   0x7   : > { %155 = sbr.rel (%p152_p3) target bundleno = 297 (0x129), region = 32 }
   0xc   : > { %v2785_v0 = vld [vmem:[%s3515_s1 + $0x138] sm:$0xff]  ;;  %v2784_v4 = vld [vmem:[%s3515_s1 + $0x130] sm:$0xff]  ;;  %s3529_s12 = smov (!%p179_p4, %s2914_s12), 1  ;;  %v2783_v8 = vld [vmem:[%s3515_s1 + $0x128] sm:$0xff]  ;;  %vm226_vm0 = vcmask 1041408   ;;  %vm230_vm1 = vcmask 1045508  }
   0xd   : > { %v2793_v1 = vld [vmem:[%s3515_s1 + $0x178] sm:$0xff]  ;;  %735 = vmatpush.bf16.msra.mxu0 %v2785_v0  ;;  %v2792_v5 = vld [vmem:[%s3515_s1 + $0x170] sm:$0xff]  ;;  %v2791_v9 = vld [vmem:[%s3515_s1 + $0x168] sm:$0xff]  ;;  %s2874_s17 = smul.u32 80, %s3529_s12  ;;  %vm234_vm2 = vcmask 1043456   ;;  %vm356_vm3 = vcmask 1043458  }
   0xe   : > { %v2801_v2 = vld [vmem:[%s3515_s1 + $0x1b8] sm:$0xff]  ;;  %749 = vmatpush.bf16.msra.mxu1 %v2793_v1  ;;  %v2800_v6 = vld [vmem:[%s3515_s1 + $0x1b0] sm:$0xff]  ;;  %v2799_v10 = vld [vmem:[%s3515_s1 + $0x1a8] sm:$0xff]  ;;  %vm358_vm4 = vcmask 1045504   ;;  %vm360_vm5 = vcmask 1045506   ;;  %s2745_s4 = sshll.u32 %s3529_s12, 3 }
   0xf   : > { %v2809_v3 = vld [vmem:[%s3515_s1 + $0x1f8] sm:$0xff]  ;;  %763 = vmatpush.bf16.msra.mxu2 %v2801_v2  ;;  %v2808_v7 = vld [vmem:[%s3515_s1 + $0x1f0] sm:$0xff]  ;;  %v2807_v11 = vld [vmem:[%s3515_s1 + $0x1e8] sm:$0xff]  ;;  %s3016_s28 = scalar_lea.vmem %s3514_s0, %s2874_s17  ;;  %vm400_vm6 = vsmask.f32 1280  ;;  %s192_s7 = scalar_lea.vmem %s3517_s3, %s2745_s4 }
  0x10   : > { %777 = vmatpush.bf16.msra.mxu3 %v2809_v3  ;;  %v2782_v12 = vld [vmem:[%s3515_s1 + $0x120] sm:$0xff]  ;;  %v2781_v16 = vld [vmem:[%s3515_s1 + $0x118] sm:$0xff]  ;;  %v2780_v20 = vld [vmem:[%s3515_s1 + $0x110] sm:$0xff]  ;;  %vm401_vm7 = vsmask.f32 3336 }
  0x11   : > { %736 = vmatpush.bf16.msra.mxu0 %v2784_v4  ;;  %v2790_v13 = vld [vmem:[%s3515_s1 + $0x160] sm:$0xff]  ;;  %v2789_v17 = vld [vmem:[%s3515_s1 + $0x158] sm:$0xff]  ;;  %v2788_v21 = vld [vmem:[%s3515_s1 + $0x150] sm:$0xff]  ;;  %vm403_vm8 = vsmask.f32 5392 }
  0x12   : > { %750 = vmatpush.bf16.msra.mxu1 %v2792_v5  ;;  %v2798_v14 = vld [vmem:[%s3515_s1 + $0x1a0] sm:$0xff]  ;;  %v2797_v18 = vld [vmem:[%s3515_s1 + $0x198] sm:$0xff]  ;;  %v322_v23 = vld [vmem:[%s3016_s28 + $0x8] sm:$0x77]  ;;  %vm405_vm9 = vsmask.f32 7448 }
  0x13   : > { %764 = vmatpush.bf16.msra.mxu2 %v2800_v6  ;;  %v2806_v15 = vld [vmem:[%s3515_s1 + $0x1e0] sm:$0xff]  ;;  %v2805_v19 = vld [vmem:[%s3515_s1 + $0x1d8] sm:$0xff]  ;;  %v323_v24 = vld [vmem:[%s3016_s28 + $0x10] sm:$0x77]  ;;  %v338_v31 = vrot.slane %v322_v23, 4  ;;  %v339_v34 = vrot.slane %v322_v23, 6 }
  0x14   : > { %778 = vmatpush.bf16.msra.mxu3 %v2808_v7  ;;  %v321_v22 = vld [vmem:[%s3016_s28] sm:$0x77]  ;;  %v324_v25 = vld [vmem:[%s3016_s28 + $0x18] sm:$0x77]  ;;  %v326_v27 = vld [vmem:[%s3016_s28 + $0x28] sm:$0x77] }
  0x15   : > { %737 = vmatpush.bf16.msra.mxu0 %v2783_v8  ;;  %v325_v26 = vld [vmem:[%s3016_s28 + $0x20] sm:$0x77]  ;;  %v327_v28 = vld [vmem:[%s3016_s28 + $0x30] sm:$0x77]  ;;  %v3044_v29 = vld [vmem:[%s3016_s28 + $0x38] sm:$0x77]  ;;  %v354_v44 = vsel %vm230_vm1, %v338_v31, %v339_v34  ;;  %v359_v50 = vsel %vm358_vm4, %v339_v34, %v338_v31 }
  0x16   : > { %751 = vmatpush.bf16.msra.mxu1 %v2791_v9  ;;  %v337_v30 = vrot.slane %v321_v22, 2  ;;  %v2796_v32 = vld [vmem:[%s3515_s1 + $0x190] sm:$0xff]  ;;  %v340_v35 = vrot.slane %v323_v24, 2  ;;  %v341_v36 = vrot.slane %v324_v25, 4  ;;  %v342_v37 = vrot.slane %v324_v25, 6  ;;  %v2779_v45 = vld [vmem:[%s3515_s1 + $0x108] sm:$0xff]  ;;  %vm3101_vm10 = vmor %vm400_vm6, %vm401_vm7 }
  0x17   : > { %765 = vmatpush.bf16.msra.mxu2 %v2799_v10  ;;  %v2804_v33 = vld [vmem:[%s3515_s1 + $0x1d0] sm:$0xff]  ;;  %v343_v38 = vrot.slane %v325_v26, 2  ;;  %v344_v39 = vrot.slane %v326_v27, 4  ;;  %v345_v40 = vrot.slane %v326_v27, 6  ;;  %v346_v41 = vrot.slane %v327_v28, 2  ;;  %v2787_v46 = vld [vmem:[%s3515_s1 + $0x148] sm:$0xff]  ;;  %vm3123_vm11 = vmor %vm3101_vm10, %vm403_vm8 }
  0x18   : > { %779 = vmatpush.bf16.msra.mxu3 %v2807_v11  ;;  %v347_v42 = vrot.slane %v3044_v29, 4  ;;  %v351_v43 = vsel %vm226_vm0, %v321_v22, %v337_v30  ;;  %v348_v47 = vrot.slane %v3044_v29, 6  ;;  %v357_v49 = vsel %vm356_vm3, %v321_v22, %v337_v30  ;;  %v2795_v51 = vld [vmem:[%s3515_s1 + $0x188] sm:$0xff]  ;;  %v2778_v1 = vld [vmem:[%s3515_s1 + $0x100] sm:$0xff]  ;;  %vm3142_vm12 = vmor %vm3123_vm11, %vm405_vm9 }
  0x19   : > { %738 = vmatpush.bf16.msra.mxu0 %v2782_v12  ;;  %v355_v48 = vsel %vm234_vm2, %v351_v43, %v354_v44  ;;  %v2803_v52 = vld [vmem:[%s3515_s1 + $0x1c8] sm:$0xff]  ;;  %v361_v53 = vsel %vm360_vm5, %v357_v49, %v359_v50  ;;  %v366_v54 = vsel %vm226_vm0, %v323_v24, %v340_v35  ;;  %v369_v55 = vsel %vm230_vm1, %v341_v36, %v342_v37  ;;  %v2786_v2 = vld [vmem:[%s3515_s1 + $0x140] sm:$0xff] }
  0x1a   : > { %752 = vmatpush.bf16.msra.mxu1 %v2790_v13  ;;  %v407_v56 = vshrl.u32 %v355_v48, 16  ;;  %v363_v57 = vrot.slane %v361_v53, 2  ;;  %v370_v58 = vsel %vm234_vm2, %v366_v54, %v369_v55  ;;  %v371_v59 = vsel %vm356_vm3, %v323_v24, %v340_v35  ;;  %v2794_v3 = vld [vmem:[%s3515_s1 + $0x180] sm:$0xff]  ;;  %v2752_v35 = vld [vmem:[%s3515_s1 + $0x30] sm:$0xff] }
  0x1b   : > { %766 = vmatpush.bf16.msra.mxu2 %v2798_v14  ;;  %v372_v60 = vsel %vm358_vm4, %v342_v37, %v341_v36  ;;  %v378_v62 = vsel %vm226_vm0, %v325_v26, %v343_v38  ;;  %v381_v63 = vsel %vm230_vm1, %v344_v39, %v345_v40  ;;  %v383_v0 = vsel %vm356_vm3, %v325_v26, %v343_v38  ;;  %v2802_v8 = vld [vmem:[%s3515_s1 + $0x1c0] sm:$0xff]  ;;  %v2753_v14 = vld [vmem:[%s3515_s1 + $0x38] sm:$0xff]  ;;  %v2760_v36 = vld [vmem:[%s3515_s1 + $0x70] sm:$0xff] }
  0x1c   : > { %780 = vmatpush.bf16.msra.mxu3 %v2806_v15  ;;  %v373_v61 = vsel %vm360_vm5, %v371_v59, %v372_v60  ;;  %v382_v5 = vsel %vm234_vm2, %v378_v62, %v381_v63  ;;  %v384_v6 = vsel %vm358_vm4, %v345_v40, %v344_v39  ;;  %v390_v7 = vsel %vm226_vm0, %v327_v28, %v346_v41  ;;  %v2761_v15 = vld [vmem:[%s3515_s1 + $0x78] sm:$0xff]  ;;  %v2774_v12 = vld [vmem:[%s3515_s1 + $0xe0] sm:$0xff] }
  0x1d   : > { %739 = vmatpush.bf16.msra.mxu0 %v2781_v16  ;;  %v375_v4 = vrot.slane %v373_v61, 2  ;;  %v385_v9 = vsel %vm360_vm5, %v383_v0, %v384_v6  ;;  %v393_v10 = vsel %vm230_vm1, %v347_v42, %v348_v47  ;;  %v395_v11 = vsel %vm356_vm3, %v327_v28, %v346_v41  ;;  %v2768_v41 = vld [vmem:[%s3515_s1 + $0xb0] sm:$0xff]  ;;  %v198_v0 = vld [vmem:[%s3016_s28] sm:$0x33] }
  0x1e   : > { %753 = vmatpush.bf16.msra.mxu1 %v2789_v17  ;;  %v409_v13 = vrot.slane %v407_v56, 6  ;;  %v387_v16 = vrot.slane %v385_v9, 2  ;;  %v394_v17 = vsel %vm234_vm2, %v390_v7, %v393_v10  ;;  %v416_v23 = vshll.u32 %v363_v57, 16  ;;  %v2759_v56 = vld [vmem:[%s3515_s1 + $0x68] sm:$0xff]  ;;  %v202_v9 = vld [vmem:[%s3016_s28 + $0x20] sm:$0x33] }
  0x1f   : > { %767 = vmatpush.bf16.msra.mxu2 %v2797_v18  ;;  %v396_v18 = vsel %vm358_vm4, %v348_v47, %v347_v42  ;;  %v420_v24 = vshrl.u32 %v370_v58, 16  ;;  %v423_v25 = vshll.u32 %v370_v58, 16  ;;  %v429_v29 = vshll.u32 %v375_v4, 16  ;;  %v2776_v42 = vld [vmem:[%s3515_s1 + $0xf0] sm:$0xff]  ;;  %v2767_v57 = vld [vmem:[%s3515_s1 + $0xa8] sm:$0xff]  ;;  %v2854_v43 = vld [vmem:[%s3515_s1 + $0x360] sm:$0xff] }
  0x20   : > { %781 = vmatpush.bf16.msra.mxu3 %v2805_v19  ;;  %v410_v19 = vshll.u32 %v355_v48, 16  ;;  %v397_v22 = vsel %vm360_vm5, %v395_v11, %v396_v18  ;;  %v433_v30 = vshrl.u32 %v382_v5, 16  ;;  %v418_v31 = vrot.slane %v416_v23, 7  ;;  %v2775_v58 = vld [vmem:[%s3515_s1 + $0xe8] sm:$0xff]  ;;  %v200_v4 = vld [vmem:[%s3016_s28 + $0x10] sm:$0x33] }
  0x21   : > { %740 = vmatpush.bf16.msra.mxu0 %v2780_v20  ;;  %v2769_v20 = vld [vmem:[%s3515_s1 + $0xb8] sm:$0xff]  ;;  %v399_v26 = vrot.slane %v397_v22, 2  ;;  %v436_v34 = vshll.u32 %v382_v5, 16  ;;  %v431_v38 = vrot.slane %v429_v29, 7  ;;  %v442_v40 = vshll.u32 %v387_v16, 16  ;;  %v2766_v5 = vld [vmem:[%s3515_s1 + $0xa0] sm:$0xff] }
  0x22   : > { %754 = vmatpush.bf16.msra.mxu1 %v2788_v21  ;;  %v2777_v21 = vld [vmem:[%s3515_s1 + $0xf8] sm:$0xff]  ;;  %v412_v28 = vrot.slane %v410_v19, 7  ;;  %v435_v39 = vrot.slane %v433_v30, 6  ;;  %v449_v47 = vshll.u32 %v394_v17, 16  ;;  %v203_v10 = vld [vmem:[%s3016_s28 + $0x28] sm:$0x33] }
  0x23   : > { %768 = vmatpush.bf16.msra.mxu2 %v2796_v32  ;;  %v422_v32 = vrot.slane %v420_v24, 6  ;;  %v444_v49 = vrot.slane %v442_v40, 7  ;;  %v455_v50 = vshll.u32 %v399_v26, 16  ;;  %v204_v11 = vld [vmem:[%s3016_s28 + $0x30] sm:$0x33]  ;;  %v217_v18 = vrot.slane %v200_v4, 2 }
  0x24   : > { %782 = vmatpush.bf16.msra.mxu3 %v2804_v33  ;;  %v425_v33 = vrot.slane %v423_v25, 7  ;;  %v413_v37 = vor.u32 %v412_v28, %v409_v13  ;;  %v451_v55 = vrot.slane %v449_v47, 7  ;;  %v221_v22 = vrot.slane %v203_v10, 4  ;;  %v2749_v24 = vld [vmem:[%s3515_s1 + $0x18] sm:$0xff]  ;;  %v2772_v40 = vld [vmem:[%s3515_s1 + $0xd0] sm:$0xff] }
  0x25   : > { %741 = vmatpush.bf16.msra.mxu0 %v2779_v45  ;;  %v438_v45 = vrot.slane %v436_v34, 7  ;;  %v457_v63 = vrot.slane %v455_v50, 7  ;;  %v222_v23 = vrot.slane %v203_v10, 6  ;;  %v2757_v25 = vld [vmem:[%s3515_s1 + $0x58] sm:$0xff]  ;;  %v223_v26 = vrot.slane %v204_v11, 2 }
  0x26   : > { %755 = vmatpush.bf16.msra.mxu1 %v2787_v46  ;;  %v426_v44 = vor.u32 %v425_v33, %v422_v32  ;;  %v446_v46 = vshrl.u32 %v394_v17, 16  ;;  %v414_v48 = vrot.slane %v413_v37, 2  ;;  %v2765_v29 = vld [vmem:[%s3515_s1 + $0x98] sm:$0xff]  ;;  %v238_v33 = vsel %vm226_vm0, %v200_v4, %v217_v18 }
  0x27   : > { %769 = vmatpush.bf16.msra.mxu2 %v2795_v51  ;;  %v2751_v51 = vld [vmem:[%s3515_s1 + $0x28] sm:$0xff]  ;;  %v439_v53 = vor.u32 %v438_v45, %v435_v39  ;;  %v2773_v30 = vld [vmem:[%s3515_s1 + $0xd8] sm:$0xff]  ;;  %v248_v37 = vsel %vm230_vm1, %v221_v22, %v222_v23  ;;  %v2764_v39 = vld [vmem:[%s3515_s1 + $0x90] sm:$0xff] }
  0x28   : > { %783 = vmatpush.bf16.msra.mxu3 %v2803_v52  ;;  %v427_v52 = vrot.slane %v426_v44, 2  ;;  %v448_v54 = vrot.slane %v446_v46, 6  ;;  %v419_v59 = vsel %vm3142_vm12, %v414_v48, %v418_v31  ;;  %v2348_v4 = vld [vmem:[%s3016_s28 + $0x38] sm:$0x33] }
  0x29   : > { %742 = vmatpush.bf16.msra.mxu0 %v2778_v1  ;;  %v440_v61 = vrot.slane %v439_v53, 2  ;;  %525 = vst [vmem:[#allocation1] ss:$4 sm:$0xff] %v419_v59  ;;  %v2750_v1 = vld [vmem:[%s3515_s1 + $0x20] sm:$0xff]  ;;  %v2755_v53 = vld [vmem:[%s3515_s1 + $0x48] sm:$0xff] }
  0x2a   : > { %756 = vmatpush.bf16.msra.mxu1 %v2786_v2  ;;  %v432_v60 = vsel %vm3142_vm12, %v427_v52, %v431_v38  ;;  %v452_v62 = vor.u32 %v451_v55, %v448_v54  ;;  %v2758_v2 = vld [vmem:[%s3515_s1 + $0x60] sm:$0xff]  ;;  %v2756_v38 = vld [vmem:[%s3515_s1 + $0x50] sm:$0xff]  ;;  %v2763_v54 = vld [vmem:[%s3515_s1 + $0x88] sm:$0xff] }
  0x2b   : > { %770 = vmatpush.bf16.msra.mxu2 %v2794_v3  ;;  %528 = vst [vmem:[#allocation1 + $0x1] ss:$4 sm:$0xff] %v432_v60  ;;  %v199_v3 = vld [vmem:[%s3016_s28 + $0x8] sm:$0x33]  ;;  %v445_v6 = vsel %vm3142_vm12, %v440_v61, %v444_v49  ;;  %v2343_v55 = vld [vmem:[%s3016_s28 + $0x10] sm:$0x33] }
  0x2c   : > { %784 = vmatpush.bf16.msra.mxu3 %v2802_v8  ;;  %v453_v7 = vrot.slane %v452_v62, 2  ;;  %v201_v8 = vld [vmem:[%s3016_s28 + $0x18] sm:$0x33]  ;;  %531 = vst [vmem:[#allocation1 + $0x2] ss:$4 sm:$0xff] %v445_v6  ;;  %v215_v16 = vrot.slane %v199_v3, 4 }
  0x2d   : > { %998 = vmatpush.bf16.msrb.mxu0 %v2753_v14  ;;  %v205_v14 = vld [vmem:[%s3016_s28 + $0x38] sm:$0x33]  ;;  %v216_v17 = vrot.slane %v199_v3, 6  ;;  %v218_v19 = vrot.slane %v201_v8, 4  ;;  %v2345_v59 = vld [vmem:[%s3016_s28 + $0x20] sm:$0x33] }
  0x2e   : > { %1012 = vmatpush.bf16.msrb.mxu1 %v2761_v15  ;;  %v458_v13 = vsel %vm3142_vm12, %v453_v7, %v457_v63  ;;  %v214_v15 = vrot.slane %v198_v0, 2  ;;  %v224_v27 = vrot.slane %v205_v14, 4  ;;  %v225_v28 = vrot.slane %v205_v14, 6  ;;  %v2346_v60 = vld [vmem:[%s3016_s28 + $0x28] sm:$0x33]  ;;  %v2746_v61 = vld [vmem:[%s3515_s1] sm:$0xff] }
  0x2f   : > { %1026 = vmatpush.bf16.msrb.mxu2 %v2769_v20  ;;  %534 = vst [vmem:[#allocation1 + $0x3] ss:$4 sm:$0xff] %v458_v13  ;;  %v219_v20 = vrot.slane %v201_v8, 6  ;;  %v233_v32 = vsel %vm230_vm1, %v215_v16, %v216_v17  ;;  %v2754_v62 = vld [vmem:[%s3515_s1 + $0x40] sm:$0xff]  ;;  %v2347_v3 = vld [vmem:[%s3016_s28 + $0x30] sm:$0x33] }
  0x30   : > { %1040 = vmatpush.bf16.msrb.mxu3 %v2777_v21  ;;  %v220_v21 = vrot.slane %v202_v9, 2  ;;  %v229_v31 = vsel %vm226_vm0, %v198_v0, %v214_v15  ;;  %v255_v44 = vsel %vm230_vm1, %v224_v27, %v225_v28  ;;  %v2762_v63 = vld [vmem:[%s3515_s1 + $0x80] sm:$0xff]  ;;  %v2350_v8 = vld [vmem:[%s3016_s28 + $0x48] sm:$0x33]  ;;  %v1079_v10 = vrot.slane %v2346_v60, 6  ;;  %v2817_v13 = vld [vmem:[%s3515_s1 + $0x238] sm:$0xff] }
  0x31   : > { %999 = vmatpush.bf16.msrb.mxu0 %v2752_v35  ;;  %v241_v34 = vsel %vm230_vm1, %v218_v19, %v219_v20  ;;  %v2748_v35 = vld [vmem:[%s3515_s1 + $0x10] sm:$0xff]  ;;  %v2770_v7 = vld [vmem:[%s3515_s1 + $0xc0] sm:$0xff]  ;;  %v2825_v14 = vld [vmem:[%s3515_s1 + $0x278] sm:$0xff]  ;;  %v1081_v15 = vrot.slane %v2348_v4, 4  ;;  %v1082_v16 = vrot.slane %v2348_v4, 6  ;;  %v1084_v18 = vrot.slane %v2350_v8, 4 }
  0x32   : > { %1013 = vmatpush.bf16.msrb.mxu1 %v2760_v36  ;;  %v245_v36 = vsel %vm226_vm0, %v202_v9, %v220_v21  ;;  %v242_v47 = vsel %vm234_vm2, %v238_v33, %v241_v34  ;;  %v1078_v9 = vrot.slane %v2346_v60, 4  ;;  %v2833_v19 = vld [vmem:[%s3515_s1 + $0x2b8] sm:$0xff]  ;;  %v1085_v21 = vrot.slane %v2350_v8, 6  ;;  %v2550_v4 = vld [vmem:[%s3016_s28 + $0x48] sm:$0x77] }
  0x33   : > { %1027 = vmatpush.bf16.msrb.mxu2 %v2768_v41  ;;  %v235_v41 = vsel %vm234_vm2, %v229_v31, %v233_v32  ;;  %v249_v50 = vsel %vm234_vm2, %v245_v36, %v248_v37  ;;  %v2841_v20 = vld [vmem:[%s3515_s1 + $0x2f8] sm:$0xff]  ;;  %v2816_v36 = vld [vmem:[%s3515_s1 + $0x230] sm:$0xff] }
  0x34   : > { %1041 = vmatpush.bf16.msrb.mxu3 %v2776_v42  ;;  %v252_v42 = vsel %vm226_vm0, %v204_v11, %v223_v26  ;;  %v1080_v11 = vrot.slane %v2347_v3, 2  ;;  %v1098_v23 = vsel %vm230_vm1, %v1078_v9, %v1079_v10  ;;  %v1105_v26 = vsel %vm230_vm1, %v1081_v15, %v1082_v16  ;;  %v2824_v37 = vld [vmem:[%s3515_s1 + $0x270] sm:$0xff]  ;;  %v2829_v60 = vld [vmem:[%s3515_s1 + $0x298] sm:$0xff] }
  0x35   : > { %1000 = vmatpush.bf16.msrb.mxu0 %v2751_v51  ;;  %v2747_v51 = vld [vmem:[%s3515_s1 + $0x8] sm:$0xff]  ;;  %v256_v52 = vsel %vm234_vm2, %v252_v42, %v255_v44  ;;  %v1112_v31 = vsel %vm230_vm1, %v1084_v18, %v1085_v21  ;;  %v1471_v15 = vrot.slane %v2550_v4, 6 }
  0x36   : > { %1014 = vmatpush.bf16.msrb.mxu1 %v2759_v56  ;;  %v535_v45 = vld.sshfl [vmem:[#allocation1] sm:$0xff pattern:$0x73625140]  ;;  %v537_v46 = vld.sshfl [vmem:[#allocation1 + $0x10] sm:$0xff pattern:$0x73625140] }
  0x37   : > { %1028 = vmatpush.bf16.msrb.mxu2 %v2767_v57  ;;  %743 = vmatmul.bf16.vlgmr.msra.gmra.mxu0 %v535_v45  ;;  %v536_v48 = vld.sshfl [vmem:[#allocation1 + $0x8] sm:$0xff pattern:$0x73625140]  ;;  %v538_v49 = vld.sshfl [vmem:[#allocation1 + $0x18] sm:$0xff pattern:$0x73625140] }
  0x38   : > { %1042 = vmatpush.bf16.msrb.mxu3 %v2775_v58  ;;  %771 = vmatmul.bf16.vlgmr.msra.gmra.mxu2 %v537_v46  ;;  %791 = vst [vmem:[#allocation1] ss:$4 sm:$0xff] %v235_v41  ;;  %v2771_v56 = vld [vmem:[%s3515_s1 + $0xc8] sm:$0xff]  ;;  %v2344_v57 = vld [vmem:[%s3016_s28 + $0x18] sm:$0x33]  ;;  %v1074_v58 = vrot.slane %v2343_v55, 2 }
  0x39   : > { %1001 = vmatpush.bf16.msrb.mxu0 %v2750_v1  ;;  %757 = vmatmul.bf16.vlgmr.msra.gmra.mxu1 %v536_v48  ;;  %793 = vst [vmem:[#allocation1 + $0x1] ss:$4 sm:$0xff] %v242_v47  ;;  %v1075_v0 = vrot.slane %v2344_v57, 4  ;;  %v1076_v1 = vrot.slane %v2344_v57, 6  ;;  %v2823_v41 = vld [vmem:[%s3515_s1 + $0x268] sm:$0xff]  ;;  %v2814_v45 = vld [vmem:[%s3515_s1 + $0x220] sm:$0xff] }
  0x3a   : > { %1015 = vmatpush.bf16.msrb.mxu1 %v2758_v2  ;;  %785 = vmatmul.bf16.vlgmr.msra.gmra.mxu3 %v538_v49  ;;  %795 = vst [vmem:[#allocation1 + $0x2] ss:$4 sm:$0xff] %v249_v50  ;;  %v1077_v2 = vrot.slane %v2345_v59, 2  ;;  %v1088_v6 = vsel %vm226_vm0, %v2343_v55, %v1074_v58  ;;  %v2831_v42 = vld [vmem:[%s3515_s1 + $0x2a8] sm:$0xff]  ;;  %v2822_v46 = vld [vmem:[%s3515_s1 + $0x260] sm:$0xff] }
  0x3b   : > { %1029 = vmatpush.bf16.msrb.mxu2 %v2766_v5  ;;  %797 = vst [vmem:[#allocation1 + $0x3] ss:$4 sm:$0xff] %v256_v52  ;;  %v2349_v5 = vld [vmem:[%s3016_s28 + $0x40] sm:$0x33]  ;;  %v2839_v44 = vld [vmem:[%s3515_s1 + $0x2e8] sm:$0xff]  ;;  %v2813_v52 = vld [vmem:[%s3515_s1 + $0x218] sm:$0xff] }
  0x3c   : > { %1043 = vmatpush.bf16.msrb.mxu3 %v2774_v12  ;;  %v1091_v12 = vsel %vm230_vm1, %v1075_v0, %v1076_v1  ;;  %v1083_v17 = vrot.slane %v2349_v5, 2  ;;  %v1095_v22 = vsel %vm226_vm0, %v2345_v59, %v1077_v2  ;;  %v2543_v47 = vld [vmem:[%s3016_s28 + $0x10] sm:$0x77]  ;;  %v2544_v48 = vld [vmem:[%s3016_s28 + $0x18] sm:$0x77]  ;;  %v2830_v49 = vld [vmem:[%s3515_s1 + $0x2a0] sm:$0xff] }
  0x3d   : > { %1002 = vmatpush.bf16.msrb.mxu0 %v2749_v24  ;;  %v1092_v24 = vsel %vm234_vm2, %v1088_v6, %v1091_v12  ;;  %v2838_v50 = vld [vmem:[%s3515_s1 + $0x2e0] sm:$0xff]  ;;  %v1462_v55 = vrot.slane %v2544_v48, 6  ;;  %v2546_v57 = vld [vmem:[%s3016_s28 + $0x28] sm:$0x77]  ;;  %v2547_v58 = vld [vmem:[%s3016_s28 + $0x30] sm:$0x77] }
  0x3e   : > { %1016 = vmatpush.bf16.msrb.mxu1 %v2757_v25  ;;  %v1102_v25 = vsel %vm226_vm0, %v2347_v3, %v1080_v11  ;;  %v1466_v0 = vrot.slane %v2547_v58, 2  ;;  %v2548_v2 = vld [vmem:[%s3016_s28 + $0x38] sm:$0x77]  ;;  %v2549_v3 = vld [vmem:[%s3016_s28 + $0x40] sm:$0x77]  ;;  %v1470_v12 = vrot.slane %v2550_v4, 4 }
  0x3f   : > { %1030 = vmatpush.bf16.msrb.mxu2 %v2765_v29  ;;  %v1099_v29 = vsel %vm234_vm2, %v1095_v22, %v1098_v23  ;;  %v1106_v34 = vsel %vm234_vm2, %v1102_v25, %v1105_v26  ;;  %v1467_v9 = vrot.slane %v2548_v2, 4  ;;  %v1468_v10 = vrot.slane %v2548_v2, 6  ;;  %v2873_v4 = vld [vmem:[%s3515_s1 + $0x3f8] sm:$0xff] }
  0x40   : > { %1044 = vmatpush.bf16.msrb.mxu3 %v2773_v30  ;;  %v1109_v30 = vsel %vm226_vm0, %v2349_v5, %v1083_v17  ;;  %v1469_v11 = vrot.slane %v2549_v3, 2  ;;  %v1498_v26 = vsel %vm226_vm0, %v2547_v58, %v1466_v0 }
  0x41   : > { %1003 = vmatpush.bf16.msrb.mxu0 %v2748_v35  ;;  %v1113_v35 = vsel %vm234_vm2, %v1109_v30, %v1112_v31  ;;  %v1504_v31 = vsel %vm358_vm4, %v1468_v10, %v1467_v9 }
  0x42   : > { %1017 = vmatpush.bf16.msrb.mxu1 %v2756_v38  ;;  %v798_v27 = vld.sshfl [vmem:[#allocation1] sm:$0xff pattern:$0x73625140]  ;;  %v800_v28 = vld.sshfl [vmem:[#allocation1 + $0x10] sm:$0xff pattern:$0x73625140] }
  0x43   : > { %1031 = vmatpush.bf16.msrb.mxu2 %v2764_v39  ;;  %v799_v32 = vld.sshfl [vmem:[#allocation1 + $0x8] sm:$0xff pattern:$0x73625140]  ;;  %v801_v33 = vld.sshfl [vmem:[#allocation1 + $0x18] sm:$0xff pattern:$0x73625140] }
  0x44   : > { %1045 = vmatpush.bf16.msrb.mxu3 %v2772_v40  ;;  %1179 = vst [vmem:[#allocation1] ss:$4 sm:$0xff] %v1092_v24  ;;  %v2832_v38 = vld [vmem:[%s3515_s1 + $0x2b0] sm:$0xff]  ;;  %v2815_v40 = vld [vmem:[%s3515_s1 + $0x228] sm:$0xff] }
  0x45   : > { %1004 = vmatpush.bf16.msrb.mxu0 %v2747_v51  ;;  %1181 = vst [vmem:[#allocation1 + $0x1] ss:$4 sm:$0xff] %v1099_v29  ;;  %v2840_v39 = vld [vmem:[%s3515_s1 + $0x2f0] sm:$0xff]  ;;  %v2545_v51 = vld [vmem:[%s3016_s28 + $0x20] sm:$0x77] }
  0x46   : > { %1018 = vmatpush.bf16.msrb.mxu1 %v2755_v53  ;;  %1183 = vst [vmem:[#allocation1 + $0x2] ss:$4 sm:$0xff] %v1106_v34  ;;  %v1460_v53 = vrot.slane %v2543_v47, 2  ;;  %v1463_v59 = vrot.slane %v2545_v51, 2  ;;  %v2819_v34 = vld [vmem:[%s3515_s1 + $0x248] sm:$0xff] }
  0x47   : > { %1032 = vmatpush.bf16.msrb.mxu2 %v2763_v54  ;;  %1185 = vst [vmem:[#allocation1 + $0x3] ss:$4 sm:$0xff] %v1113_v35  ;;  %v1461_v54 = vrot.slane %v2544_v48, 4 }
  0x48   : > { %1046 = vmatpush.bf16.msrb.mxu3 %v2771_v56  ;;  %v2821_v56 = vld [vmem:[%s3515_s1 + $0x258] sm:$0xff]  ;;  %v1474_v1 = vsel %vm226_vm0, %v2543_v47, %v1460_v53  ;;  %v1479_v6 = vsel %vm356_vm3, %v2543_v47, %v1460_v53  ;;  %v1486_v8 = vsel %vm226_vm0, %v2545_v51, %v1463_v59  ;;  %v1491_v23 = vsel %vm356_vm3, %v2545_v51, %v1463_v59 }
  0x49   : > { %1005 = vmatpush.bf16.msrb.mxu0 %v2746_v61  ;;  %v2837_v61 = vld [vmem:[%s3515_s1 + $0x2d8] sm:$0xff]  ;;  %v1477_v5 = vsel %vm230_vm1, %v1461_v54, %v1462_v55 }
  0x4a   : > { %1019 = vmatpush.bf16.msrb.mxu1 %v2754_v62  ;;  %v1464_v62 = vrot.slane %v2546_v57, 4  ;;  %v1478_v16 = vsel %vm234_vm2, %v1474_v1, %v1477_v5 }
  0x4b   : > { %1033 = vmatpush.bf16.msrb.mxu2 %v2762_v63  ;;  %v1465_v63 = vrot.slane %v2546_v57, 6 }
  0x4c   : > { %1047 = vmatpush.bf16.msrb.mxu3 %v2770_v7  ;;  %1006 = vmatmul.bf16.vlgmr.msrb.gmra.mxu0 %v798_v27  ;;  %v1480_v7 = vsel %vm358_vm4, %v1462_v55, %v1461_v54  ;;  %v1501_v27 = vsel %vm230_vm1, %v1467_v9, %v1468_v10  ;;  %v2810_v54 = vld [vmem:[%s3515_s1 + $0x200] sm:$0xff] }
  0x4d   : > { %1386 = vmatpush.bf16.msra.mxu0 %v2817_v13  ;;  %1020 = vmatmul.bf16.vlgmr.msrb.gmra.mxu1 %v799_v32  ;;  %v2812_v13 = vld [vmem:[%s3515_s1 + $0x210] sm:$0xff]  ;;  %v1481_v17 = vsel %vm360_vm5, %v1479_v6, %v1480_v7  ;;  %v1489_v18 = vsel %vm230_vm1, %v1464_v62, %v1465_v63  ;;  %v1492_v24 = vsel %vm358_vm4, %v1465_v63, %v1464_v62  ;;  %v2818_v55 = vld [vmem:[%s3515_s1 + $0x240] sm:$0xff]  ;;  %v2857_v62 = vld [vmem:[%s3515_s1 + $0x378] sm:$0xff] }
  0x4e   : > { %1400 = vmatpush.bf16.msra.mxu1 %v2825_v14  ;;  %1034 = vmatmul.bf16.vlgmr.msrb.gmra.mxu2 %v800_v28  ;;  %v2820_v14 = vld [vmem:[%s3515_s1 + $0x250] sm:$0xff]  ;;  %v1483_v21 = vrot.slane %v1481_v17, 2  ;;  %v1490_v22 = vsel %vm234_vm2, %v1486_v8, %v1489_v18  ;;  %v1493_v25 = vsel %vm360_vm5, %v1491_v23, %v1492_v24  ;;  %v1503_v28 = vsel %vm356_vm3, %v2547_v58, %v1466_v0  ;;  %v1189_v10 = vld.sshfl [vmem:[#allocation1 + $0x18] sm:$0xff pattern:$0x73625140] }
  0x4f   : > { %1414 = vmatpush.bf16.msra.mxu2 %v2833_v19  ;;  %1048 = vmatmul.bf16.vlgmr.msrb.gmra.mxu3 %v801_v33  ;;  %v2828_v19 = vld [vmem:[%s3515_s1 + $0x290] sm:$0xff]  ;;  %v1495_v29 = vrot.slane %v1493_v25, 2  ;;  %v1502_v30 = vsel %vm234_vm2, %v1498_v26, %v1501_v27  ;;  %v1510_v32 = vsel %vm226_vm0, %v2549_v3, %v1469_v11  ;;  %v2811_v33 = vld [vmem:[%s3515_s1 + $0x208] sm:$0xff]  ;;  %v1505_v35 = vsel %vm360_vm5, %v1503_v28, %v1504_v31 }
  0x50   : > { %1428 = vmatpush.bf16.msra.mxu3 %v2841_v20  ;;  %v2836_v20 = vld [vmem:[%s3515_s1 + $0x2d0] sm:$0xff]  ;;  %v1529_v48 = vshll.u32 %v1483_v21, 16  ;;  %v1546_v58 = vshrl.u32 %v1502_v30, 16  ;;  %v1549_v59 = vshll.u32 %v1502_v30, 16 }
  0x51   : > { %1387 = vmatpush.bf16.msra.mxu0 %v2816_v36  ;;  %v1513_v36 = vsel %vm230_vm1, %v1470_v12, %v1471_v15  ;;  %v1542_v53 = vshll.u32 %v1495_v29, 16  ;;  %v1188_v9 = vld.sshfl [vmem:[#allocation1 + $0x10] sm:$0xff pattern:$0x73625140] }
  0x52   : > { %1401 = vmatpush.bf16.msra.mxu1 %v2824_v37  ;;  %v1515_v37 = vsel %vm356_vm3, %v2549_v3, %v1469_v11  ;;  %v1531_v0 = vrot.slane %v1529_v48, 7  ;;  %v2865_v3 = vld [vmem:[%s3515_s1 + $0x3b8] sm:$0xff]  ;;  %v1548_v5 = vrot.slane %v1546_v58, 6  ;;  %v1551_v6 = vrot.slane %v1549_v59, 7  ;;  %v2848_v23 = vld [vmem:[%s3515_s1 + $0x330] sm:$0xff] }
  0x53   : > { %1415 = vmatpush.bf16.msra.mxu2 %v2832_v38  ;;  %v1520_v38 = vshrl.u32 %v1478_v16, 16  ;;  %v2856_v24 = vld [vmem:[%s3515_s1 + $0x370] sm:$0xff] }
  0x54   : > { %1429 = vmatpush.bf16.msra.mxu3 %v2840_v39  ;;  %v2827_v39 = vld [vmem:[%s3515_s1 + $0x288] sm:$0xff]  ;;  %v2864_v28 = vld [vmem:[%s3515_s1 + $0x3b0] sm:$0xff] }
  0x55   : > { %1388 = vmatpush.bf16.msra.mxu0 %v2815_v40  ;;  %v2835_v40 = vld [vmem:[%s3515_s1 + $0x2c8] sm:$0xff]  ;;  %v1522_v47 = vrot.slane %v1520_v38, 6  ;;  %v2872_v29 = vld [vmem:[%s3515_s1 + $0x3f0] sm:$0xff]  ;;  %v2846_v38 = vld [vmem:[%s3515_s1 + $0x320] sm:$0xff] }
  0x56   : > { %1402 = vmatpush.bf16.msra.mxu1 %v2823_v41  ;;  %v1507_v41 = vrot.slane %v1505_v35, 2  ;;  %v2860_v48 = vld [vmem:[%s3515_s1 + $0x390] sm:$0xff] }
  0x57   : > { %1416 = vmatpush.bf16.msra.mxu2 %v2831_v42  ;;  %v1514_v42 = vsel %vm234_vm2, %v1510_v32, %v1513_v36  ;;  %v2863_v36 = vld [vmem:[%s3515_s1 + $0x3a8] sm:$0xff] }
  0x58   : > { %1430 = vmatpush.bf16.msra.mxu3 %v2839_v44  ;;  %v1516_v44 = vsel %vm358_vm4, %v1471_v15, %v1470_v12  ;;  %v1555_v2 = vshll.u32 %v1507_v41, 16  ;;  %v1559_v7 = vshrl.u32 %v1514_v42, 16  ;;  %v1562_v8 = vshll.u32 %v1514_v42, 16  ;;  %v1186_v15 = vld.sshfl [vmem:[#allocation1] sm:$0xff pattern:$0x73625140] }
  0x59   : > { %1389 = vmatpush.bf16.msra.mxu0 %v2814_v45  ;;  %v1523_v45 = vshll.u32 %v1478_v16, 16  ;;  %v1552_v16 = vor.u32 %v1551_v6, %v1548_v5  ;;  %v2845_v41 = vld [vmem:[%s3515_s1 + $0x318] sm:$0xff] }
  0x5a   : > { %1403 = vmatpush.bf16.msra.mxu1 %v2822_v46  ;;  %v1517_v46 = vsel %vm360_vm5, %v1515_v37, %v1516_v44  ;;  %v1557_v17 = vrot.slane %v1555_v2, 7  ;;  %v1561_v18 = vrot.slane %v1559_v7, 6  ;;  %v2871_v37 = vld [vmem:[%s3515_s1 + $0x3e8] sm:$0xff]  ;;  %v2853_v42 = vld [vmem:[%s3515_s1 + $0x358] sm:$0xff] }
  0x5b   : > { %1417 = vmatpush.bf16.msra.mxu2 %v2830_v49  ;;  %v1533_v49 = vshrl.u32 %v1490_v22, 16  ;;  %v1525_v51 = vrot.slane %v1523_v45, 7  ;;  %v1553_v25 = vrot.slane %v1552_v16, 2  ;;  %v2861_v44 = vld [vmem:[%s3515_s1 + $0x398] sm:$0xff] }
  0x5c   : > { %1431 = vmatpush.bf16.msra.mxu3 %v2838_v50  ;;  %v1519_v50 = vrot.slane %v1517_v46, 2  ;;  %v2869_v45 = vld [vmem:[%s3515_s1 + $0x3d8] sm:$0xff]  ;;  %v2844_v46 = vld [vmem:[%s3515_s1 + $0x310] sm:$0xff] }
  0x5d   : > { %1390 = vmatpush.bf16.msra.mxu0 %v2813_v52  ;;  %v1536_v52 = vshll.u32 %v1490_v22, 16  ;;  %v1535_v57 = vrot.slane %v1533_v49, 6  ;;  %v1526_v63 = vor.u32 %v1525_v51, %v1522_v47  ;;  %v1558_v31 = vsel %vm3142_vm12, %v1553_v25, %v1557_v17  ;;  %v2852_v47 = vld [vmem:[%s3515_s1 + $0x350] sm:$0xff]  ;;  %v2851_v51 = vld [vmem:[%s3515_s1 + $0x348] sm:$0xff] }
  0x5e   : > { %1404 = vmatpush.bf16.msra.mxu1 %v2821_v56  ;;  %v2826_v56 = vld [vmem:[%s3515_s1 + $0x280] sm:$0xff]  ;;  %v2868_v49 = vld [vmem:[%s3515_s1 + $0x3d0] sm:$0xff] }
  0x5f   : > { %1418 = vmatpush.bf16.msra.mxu2 %v2829_v60  ;;  %v2834_v60 = vld [vmem:[%s3515_s1 + $0x2c0] sm:$0xff]  ;;  %v1538_v1 = vrot.slane %v1536_v52, 7  ;;  %v1527_v11 = vrot.slane %v1526_v63, 2  ;;  %v2859_v52 = vld [vmem:[%s3515_s1 + $0x388] sm:$0xff] }
  0x60   : > { %1432 = vmatpush.bf16.msra.mxu3 %v2837_v61  ;;  %v2849_v61 = vld [vmem:[%s3515_s1 + $0x338] sm:$0xff] }
  0x61   : > { %1391 = vmatpush.bf16.msra.mxu0 %v2812_v13  ;;  %v1539_v12 = vor.u32 %v1538_v1, %v1535_v57  ;;  %v1544_v13 = vrot.slane %v1542_v53, 7  ;;  %v1532_v21 = vsel %vm3142_vm12, %v1527_v11, %v1531_v0  ;;  %v2867_v53 = vld [vmem:[%s3515_s1 + $0x3c8] sm:$0xff]  ;;  %v2866_v57 = vld [vmem:[%s3515_s1 + $0x3c0] sm:$0xff] }
  0x62   : > { %1405 = vmatpush.bf16.msra.mxu1 %v2820_v14  ;;  %v1568_v14 = vshll.u32 %v1519_v50, 16  ;;  %v2843_v50 = vld [vmem:[%s3515_s1 + $0x308] sm:$0xff] }
  0x63   : > { %1419 = vmatpush.bf16.msra.mxu2 %v2828_v19  ;;  %v1564_v19 = vrot.slane %v1562_v8, 7  ;;  %v1540_v22 = vrot.slane %v1539_v12, 2 }
  0x64   : > { %1433 = vmatpush.bf16.msra.mxu3 %v2836_v20  ;;  %v1187_v20 = vld.sshfl [vmem:[#allocation1 + $0x8] sm:$0xff pattern:$0x73625140]  ;;  %v1570_v27 = vrot.slane %v1568_v14, 7 }
  0x65   : > { %1392 = vmatpush.bf16.msra.mxu0 %v2811_v33  ;;  %v1565_v26 = vor.u32 %v1564_v19, %v1561_v18  ;;  %1638 = vst [vmem:[#allocation1] ss:$4 sm:$0xff] %v1532_v21  ;;  %v1545_v30 = vsel %vm3142_vm12, %v1540_v22, %v1544_v13  ;;  %v2847_v33 = vld [vmem:[%s3515_s1 + $0x328] sm:$0xff] }
  0x66   : > { %1406 = vmatpush.bf16.msra.mxu1 %v2819_v34  ;;  %1641 = vst [vmem:[#allocation1 + $0x1] ss:$4 sm:$0xff] %v1545_v30  ;;  %v2855_v34 = vld [vmem:[%s3515_s1 + $0x368] sm:$0xff] }
  0x67   : > { %1420 = vmatpush.bf16.msra.mxu2 %v2827_v39  ;;  %v1566_v32 = vrot.slane %v1565_v26, 2  ;;  %1644 = vst [vmem:[#allocation1 + $0x2] ss:$4 sm:$0xff] %v1558_v31  ;;  %v2862_v39 = vld [vmem:[%s3515_s1 + $0x3a0] sm:$0xff] }
  0x68   : > { %1434 = vmatpush.bf16.msra.mxu3 %v2835_v40  ;;  %v2870_v40 = vld [vmem:[%s3515_s1 + $0x3e0] sm:$0xff] }
  0x69   : > { %1393 = vmatpush.bf16.msra.mxu0 %v2810_v54  ;;  %v1571_v35 = vsel %vm3142_vm12, %v1566_v32, %v1570_v27  ;;  %v2842_v54 = vld [vmem:[%s3515_s1 + $0x300] sm:$0xff] }
  0x6a   : > { %1407 = vmatpush.bf16.msra.mxu1 %v2818_v55  ;;  %1647 = vst [vmem:[#allocation1 + $0x3] ss:$4 sm:$0xff] %v1571_v35  ;;  %v2850_v55 = vld [vmem:[%s3515_s1 + $0x340] sm:$0xff] }
  0x6b   : > { %1421 = vmatpush.bf16.msra.mxu2 %v2826_v56  ;;  %v2858_v56 = vld [vmem:[%s3515_s1 + $0x380] sm:$0xff] }
  0x6c   : > { %1435 = vmatpush.bf16.msra.mxu3 %v2834_v60  ;;  %1394 = vmatmul.bf16.vlgmr.msra.gmra.mxu0 %v1186_v15 }
  0x6d   : > { %1848 = vmatpush.bf16.msrb.mxu0 %v2849_v61  ;;  %1408 = vmatmul.bf16.vlgmr.msra.gmra.mxu1 %v1187_v20 }
  0x6e   : > { %1862 = vmatpush.bf16.msrb.mxu1 %v2857_v62  ;;  %1422 = vmatmul.bf16.vlgmr.msra.gmra.mxu2 %v1188_v9 }
  0x6f   : > { %1876 = vmatpush.bf16.msrb.mxu2 %v2865_v3  ;;  %1436 = vmatmul.bf16.vlgmr.msra.gmra.mxu3 %v1189_v10 }
  0x70   : > { %1890 = vmatpush.bf16.msrb.mxu3 %v2873_v4 }
  0x71   : > { %1849 = vmatpush.bf16.msrb.mxu0 %v2848_v23  ;;  %v1648_v58 = vld.sshfl [vmem:[#allocation1] sm:$0xff pattern:$0x73625140]  ;;  %v1649_v59 = vld.sshfl [vmem:[#allocation1 + $0x8] sm:$0xff pattern:$0x73625140] }
  0x72   : > { %1863 = vmatpush.bf16.msrb.mxu1 %v2856_v24  ;;  %v1650_v60 = vld.sshfl [vmem:[#allocation1 + $0x10] sm:$0xff pattern:$0x73625140]  ;;  %v1651_v61 = vld.sshfl [vmem:[#allocation1 + $0x18] sm:$0xff pattern:$0x73625140] }
  0x73   : > { %1877 = vmatpush.bf16.msrb.mxu2 %v2864_v28 }
  0x74   : > { %1891 = vmatpush.bf16.msrb.mxu3 %v2872_v29 }
  0x75   : > { %1850 = vmatpush.bf16.msrb.mxu0 %v2847_v33 }
  0x76   : > { %1864 = vmatpush.bf16.msrb.mxu1 %v2855_v34 }
  0x77   : > { %1878 = vmatpush.bf16.msrb.mxu2 %v2863_v36 }
  0x78   : > { %1892 = vmatpush.bf16.msrb.mxu3 %v2871_v37 }
  0x79   : > { %1851 = vmatpush.bf16.msrb.mxu0 %v2846_v38 }
  0x7a   : > { %1865 = vmatpush.bf16.msrb.mxu1 %v2854_v43 }
  0x7b   : > { %1879 = vmatpush.bf16.msrb.mxu2 %v2862_v39 }
  0x7c   : > { %1893 = vmatpush.bf16.msrb.mxu3 %v2870_v40 }
  0x7d   : > { %1852 = vmatpush.bf16.msrb.mxu0 %v2845_v41 }
  0x7e   : > { %1866 = vmatpush.bf16.msrb.mxu1 %v2853_v42 }
  0x7f   : > { %1880 = vmatpush.bf16.msrb.mxu2 %v2861_v44 }
  0x80   : > { %1894 = vmatpush.bf16.msrb.mxu3 %v2869_v45 }
  0x81   : > { %1853 = vmatpush.bf16.msrb.mxu0 %v2844_v46 }
  0x82   : > { %1867 = vmatpush.bf16.msrb.mxu1 %v2852_v47  ;;  %v2899_v47 = vld [vmem:[%s3516_s2] ss:$0 sm:$0xff] }
  0x83   : > { %1881 = vmatpush.bf16.msrb.mxu2 %v2860_v48 }
  0x84   : > { %1895 = vmatpush.bf16.msrb.mxu3 %v2868_v49 }
  0x85   : > { %1854 = vmatpush.bf16.msrb.mxu0 %v2843_v50 }
  0x86   : > { %1868 = vmatpush.bf16.msrb.mxu1 %v2851_v51 }
  0x87   : > { %1882 = vmatpush.bf16.msrb.mxu2 %v2859_v52 }
  0x88   : > { %1896 = vmatpush.bf16.msrb.mxu3 %v2867_v53 }
  0x89   : > { %1855 = vmatpush.bf16.msrb.mxu0 %v2842_v54 }
  0x8a   : > { %1869 = vmatpush.bf16.msrb.mxu1 %v2850_v55 }
  0x8b   : > { %1883 = vmatpush.bf16.msrb.mxu2 %v2858_v56 }
  0x8c   : > { %1897 = vmatpush.bf16.msrb.mxu3 %v2866_v57  ;;  %1856 = vmatmul.bf16.vlgmr.msrb.gmra.mxu0 %v1648_v58 }
  0x8d   : > { %1870 = vmatmul.bf16.vlgmr.msrb.gmra.mxu1 %v1649_v59 }
  0x8e   : > { %1884 = vmatmul.bf16.vlgmr.msrb.gmra.mxu2 %v1650_v60 }
  0x8f   : > { %1898 = vmatmul.bf16.vlgmr.msrb.gmra.mxu3 %v1651_v61 }
  0xb4   : > { %v744_v62 = vpop.f32.mrf.mxu0 }
  0xb6   : > { %v758_v63 = vpop.f32.mrf.mxu1 }
  0xb7   : > { %v759_v16 = vadd.f32 %v758_v63, %v744_v62 }
  0xbb   : > { %v772_v0 = vpop.f32.mrf.mxu2 }
  0xbc   : > { %v746_v2 = vpop.f32.mrf.mxu0  ;;  %v773_v17 = vadd.f32 %v772_v0, %v759_v16 }
  0xbd   : > { %v786_v1 = vpop.f32.mrf.mxu3 }
  0xbe   : > { %v760_v3 = vpop.f32.mrf.mxu1  ;;  %v787_v20 = vadd.f32 %v786_v1, %v773_v17 }
  0xbf   : > { %v761_v23 = vadd.f32 %v760_v3, %v746_v2 }
  0xc3   : > { %v774_v4 = vpop.f32.mrf.mxu2 }
  0xc4   : > { %v775_v25 = vadd.f32 %v774_v4, %v761_v23 }
  0xc5   : > { %v788_v5 = vpop.f32.mrf.mxu3 }
  0xc6   : > { %v789_v32 = vadd.f32 %v788_v5, %v775_v25 }
  0xc9   : > { %v1007_v6 = vpop.f32.mrf.mxu0 }
  0xca   : > { %v1021_v7 = vpop.f32.mrf.mxu1  ;;  %v1008_v24 = vadd.f32 %v1007_v6, %v787_v20 }
  0xcc   : > { %v1022_v29 = vadd.f32 %v1021_v7, %v1008_v24 }
  0xd1   : > { %v1035_v8 = vpop.f32.mrf.mxu2  ;;  %v1009_v10 = vpop.f32.mrf.mxu0 }
  0xd2   : > { %v1049_v9 = vpop.f32.mrf.mxu3  ;;  %v1023_v11 = vpop.f32.mrf.mxu1  ;;  %v1036_v34 = vadd.f32 %v1035_v8, %v1022_v29  ;;  %v1010_v36 = vadd.f32 %v1009_v10, %v789_v32 }
  0xd4   : > { %v1050_v40 = vadd.f32 %v1049_v9, %v1036_v34  ;;  %v1024_v42 = vadd.f32 %v1023_v11, %v1010_v36 }
  0xd9   : > { %v1037_v12 = vpop.f32.mrf.mxu2 }
  0xda   : > { %v1051_v13 = vpop.f32.mrf.mxu3  ;;  %v1038_v50 = vadd.f32 %v1037_v12, %v1024_v42 }
  0xdc   : > { %v1052_v56 = vadd.f32 %v1051_v13, %v1038_v50 }
  0xe9   : > { %v1395_v14 = vpop.f32.mrf.mxu0 }
  0xea   : > { %v1409_v15 = vpop.f32.mrf.mxu1 }
  0xeb   : > { %v1410_v26 = vadd.f32 %v1409_v15, %v1395_v14 }
  0xf1   : > { %v1423_v18 = vpop.f32.mrf.mxu2  ;;  %v1397_v21 = vpop.f32.mrf.mxu0 }
  0xf2   : > { %v1437_v19 = vpop.f32.mrf.mxu3  ;;  %v1411_v22 = vpop.f32.mrf.mxu1  ;;  %v1424_v33 = vadd.f32 %v1423_v18, %v1410_v26 }
  0xf3   : > { %v1412_v38 = vadd.f32 %v1411_v22, %v1397_v21 }
  0xf4   : > { %v1438_v37 = vadd.f32 %v1437_v19, %v1424_v33 }
  0xf6   : > { %v1442_v44 = vadd.f32 %v1438_v37, %v1050_v40 }
  0xf9   : > { %v1425_v27 = vpop.f32.mrf.mxu2 }
  0xfa   : > { %v1439_v28 = vpop.f32.mrf.mxu3  ;;  %v1426_v45 = vadd.f32 %v1425_v27, %v1412_v38 }
  0xfc   : > { %v1440_v52 = vadd.f32 %v1439_v28, %v1426_v45 }
  0xfe   : > { %v1443_v60 = vadd.f32 %v1440_v52, %v1052_v56 }
 0x109   : > { %v1857_v30 = vpop.f32.mrf.mxu0 }
 0x10a   : > { %v1871_v31 = vpop.f32.mrf.mxu1 }
 0x10b   : > { %v1872_v35 = vadd.f32 %v1871_v31, %v1857_v30 }
 0x111   : > { %v1885_v43 = vpop.f32.mrf.mxu2  ;;  %v1859_v48 = vpop.f32.mrf.mxu0 }
 0x112   : > { %v1899_v39 = vpop.f32.mrf.mxu3  ;;  %v1886_v41 = vadd.f32 %v1885_v43, %v1872_v35  ;;  %v1873_v49 = vpop.f32.mrf.mxu1 }
 0x113   : > { %v1874_v54 = vadd.f32 %v1873_v49, %v1859_v48 }
 0x114   : > { %v1900_v46 = vadd.f32 %v1899_v39, %v1886_v41 }
 0x116   : > { %v1904_v51 = vadd.f32 %v1900_v46, %v1442_v44 }
 0x118   : > { %v1910_v53 = vadd.f32 %v2899_v47, %v1904_v51 }
 0x119   : > { %v1887_v55 = vpop.f32.mrf.mxu2 }
 0x11a   : > { %v1912_v57 = vmax.f32 %v1910_v53, 0.0  ;;  %v1888_v58 = vadd.f32 %v1887_v55, %v1874_v54  ;;  %v1901_v59 = vpop.f32.mrf.mxu3 }
 0x11c   : > { %v1916_v61 = vrot.slane %v1912_v57, 4  ;;  %v1920_v62 = vpack.c.bf16 %v1912_v57, %v1912_v57  ;;  %v1902_v63 = vadd.f32 %v1901_v59, %v1888_v58 }
 0x11e   : > { %v1921_v0 = vpack.c.bf16 %v1916_v61, %v1916_v61  ;;  %1924 = vst [vmem:[%s192_s7] sm:$0x3] %v1920_v62  ;;  %v1905_v1 = vadd.f32 %v1902_v63, %v1443_v60 }
 0x120   : > { %1925 = vst [vmem:[%s192_s7 + $0x2] sm:$0x3] %v1921_v0  ;;  %v1911_v2 = vadd.f32 %v2899_v47, %v1905_v1 }
 0x122   : > { %v1913_v3 = vmax.f32 %v1911_v2, 0.0 }
 0x124   : > { %v1917_v4 = vrot.slane %v1913_v3, 4  ;;  %v1922_v5 = vpack.c.bf16 %v1913_v3, %v1913_v3 }
 0x126   : > { %v1923_v6 = vpack.c.bf16 %v1917_v4, %v1917_v4  ;;  %1926 = vst [vmem:[%s192_s7 + $0x4] sm:$0x3] %v1922_v5 }
 0x128   : > { %1927 = vst [vmem:[%s192_s7 + $0x6] sm:$0x3] %v1923_v6 }
 0x129 PF: > { %s13_s14 = sadd.s32 1, %s2922_s14   ;;  %s3524_s12 = smov %s2918_s13 }
 0x12a   : > { %p10_p5 = scmp.ge.s32.totalorder %s13_s14, 4   ;;  %s3525_s13 = smov %s3527_s15 }
 0x12c   :  { %12 = sbr.rel (!%p10_p5) target bundleno = 2 (0x2), region = 79 }

// kernel: faster_rcnn_forward.7
= control target key start
LH: loop header
LB: loop body
LE: loop exit
PB: predicated region body
PF: predicated region fallthrough
CT: control target
= control target key end

     0   :  { %s2418_s18 = smov 0   ;;  %s2420_s19 = smov 0   ;;  %s2860_s0 = inlined_call_operand.vmem [shape: bf16[2,6,6,128], index: 0, kind: input, shape index: {}]   ;;  %s2861_s1 = inlined_call_operand.vmem [shape: bf16[9,128,128], index: 1, kind: input, shape index: {}]   ;;  %s2862_s2 = inlined_call_operand.vmem [shape: f32[1,128], index: 2, kind: input, shape index: {}]   ;;  %s2863_s3 = inlined_call_operand.vmem [shape: bf16[128,128], index: 3, kind: input, shape index: {}]   ;;  %s2864_s4 = inlined_call_operand.vmem [shape: f32[1,128], index: 4, kind: input, shape index: {}]   ;;  %s2865_s5 = inlined_call_operand.vmem [shape: f32[2,4,4,128], index: 5, kind: output, shape index: {}]  }
   0x1   :  { %s2422_s20 = smov 0  }
   0x2 LB: > { %s27_s21 = sadd.s32 1, %s2382_s19  ;;  %p1754_p0 = scmp.ge.s32.totalorder %s2386_s20, 1  ;;  %s2386_s20 = sphi %s2422_s20, %s15_s20   ;;  %s2382_s19 = sphi %s2420_s19, %s2875_s19   ;;  %s2378_s18 = sphi %s2418_s18, %s2874_s18  }
   0x3   : > { %p29_p1 = scmp.ge.s32.totalorder %s27_s21, 2  ;;  %p201_p2 = scmp.lt.s32.totalorder %s2386_s20, 3 }
   0x5   : > { %s2877_s21 = smov (%p29_p1, %s27_s21), 0  ;;  %p202_p3 = pnand %p1754_p0, %p201_p2 }
   0x6   : > { %p233_p4 = scmp.lt.s32.totalorder (!%p202_p3), %s2378_s18, 1 }
   0x7   : > { %205 = sbr.rel (%p202_p3) target bundleno = 413 (0x19d), region = 40 }
   0xc   : > { %v2272_v0 = vld [vmem:[%s2861_s1 + $0x78] sm:$0xff]  ;;  %v2271_v2 = vld [vmem:[%s2861_s1 + $0x70] sm:$0xff]  ;;  %s2879_s18 = smov (!%p233_p4, %s2378_s18), 1  ;;  %v2270_v8 = vld [vmem:[%s2861_s1 + $0x68] sm:$0xff]  ;;  %vm283_vm0 = vcmask 1041408   ;;  %vm287_vm1 = vcmask 1043458  }
   0xd   : > { %v2264_v1 = vld [vmem:[%s2861_s1 + $0x38] sm:$0xff]  ;;  %446 = vmatpush.bf16.msra.mxu0 %v2272_v0  ;;  %v2263_v3 = vld [vmem:[%s2861_s1 + $0x30] sm:$0xff]  ;;  %v2262_v9 = vld [vmem:[%s2861_s1 + $0x28] sm:$0xff]  ;;  %s2337_s17 = smul.u32 24, %s2879_s18  ;;  %vm309_vm2 = vsmask.f32 1280 }
   0xe   : > { %521 = vmatpush.bf16.msra.mxu1 %v2264_v1  ;;  %v2280_v4 = vld [vmem:[%s2861_s1 + $0xb8] sm:$0xff]  ;;  %v2279_v6 = vld [vmem:[%s2861_s1 + $0xb0] sm:$0xff]  ;;  %v2278_v10 = vld [vmem:[%s2861_s1 + $0xa8] sm:$0xff]  ;;  %vm310_vm3 = vsmask.f32 3336  ;;  %vm575_vm9 = vcmask 1040384  }
   0xf   : > { %v2288_v5 = vld [vmem:[%s2861_s1 + $0xf8] sm:$0xff]  ;;  %676 = vmatpush.bf16.msra.mxu2 %v2280_v4  ;;  %v2287_v7 = vld [vmem:[%s2861_s1 + $0xf0] sm:$0xff]  ;;  %v2286_v11 = vld [vmem:[%s2861_s1 + $0xe8] sm:$0xff]  ;;  %s2484_s7 = scalar_lea.vmem %s2860_s0, %s2337_s17  ;;  %vm312_vm4 = vsmask.f32 5392  ;;  %vm576_vm10 = vcmask 1042434  }
  0x10   : > { %777 = vmatpush.bf16.msra.mxu3 %v2288_v5  ;;  %v2269_v12 = vld [vmem:[%s2861_s1 + $0x60] sm:$0xff]  ;;  %v2268_v14 = vld [vmem:[%s2861_s1 + $0x58] sm:$0xff]  ;;  %v273_v19 = vld [vmem:[%s2484_s7 + $0x8] sm:$0x7]  ;;  %vm314_vm7 = vsmask.f32 7448 }
  0x11   : > { %447 = vmatpush.bf16.msra.mxu0 %v2271_v2  ;;  %v2261_v13 = vld [vmem:[%s2861_s1 + $0x20] sm:$0xff]  ;;  %v2260_v20 = vld [vmem:[%s2861_s1 + $0x18] sm:$0xff]  ;;  %v274_v21 = vld [vmem:[%s2484_s7 + $0xc] sm:$0x7]  ;;  %v281_v24 = vrot.slane %v273_v19, 2  ;;  %vm578_vm12 = vcmask 1044484  }
  0x12   : > { %522 = vmatpush.bf16.msra.mxu1 %v2263_v3  ;;  %v2277_v15 = vld [vmem:[%s2861_s1 + $0xa0] sm:$0xff]  ;;  %v282_v25 = vrot.slane %v274_v21, 2  ;;  %v2276_v26 = vld [vmem:[%s2861_s1 + $0x98] sm:$0xff]  ;;  %v2267_v31 = vld [vmem:[%s2861_s1 + $0x50] sm:$0xff]  ;;  %vm580_vm14 = vcmask 1046534   ;;  %s2256_s25 = sshll.u32 %s2879_s18, 4 }
  0x13   : > { %677 = vmatpush.bf16.msra.mxu2 %v2279_v6  ;;  %v2285_v16 = vld [vmem:[%s2861_s1 + $0xe0] sm:$0xff]  ;;  %v2284_v32 = vld [vmem:[%s2861_s1 + $0xd8] sm:$0xff]  ;;  %v299_v35 = vsel %vm283_vm0, %v273_v19, %v281_v24  ;;  %v300_v36 = vsel %vm287_vm1, %v273_v19, %v281_v24  ;;  %v2259_v37 = vld [vmem:[%s2861_s1 + $0x10] sm:$0xff]  ;;  %s246_s29 = scalar_lea.vmem %s2865_s5, %s2256_s25 }
  0x14   : > { %778 = vmatpush.bf16.msra.mxu3 %v2287_v7  ;;  %v271_v17 = vld [vmem:[%s2484_s7] sm:$0x7]  ;;  %v272_v18 = vld [vmem:[%s2484_s7 + $0x4] sm:$0x7]  ;;  %v2275_v38 = vld [vmem:[%s2861_s1 + $0x90] sm:$0xff]  ;;  %v302_v39 = vrot.slane %v300_v36, 2  ;;  %v305_v40 = vsel %vm283_vm0, %v274_v21, %v282_v25  ;;  %v306_v41 = vsel %vm287_vm1, %v274_v21, %v282_v25 }
  0x15   : > { %448 = vmatpush.bf16.msra.mxu0 %v2270_v8  ;;  %v279_v22 = vrot.slane %v271_v17, 2  ;;  %v280_v23 = vrot.slane %v272_v18, 2  ;;  %vm311_vm5 = vmor %vm309_vm2, %vm310_vm3  ;;  %v308_v43 = vrot.slane %v306_v41, 2  ;;  %v342_v50 = vshrl.u32 %v299_v35, 16  ;;  %v2283_v51 = vld [vmem:[%s2861_s1 + $0xd0] sm:$0xff]  ;;  %v2266_v56 = vld [vmem:[%s2861_s1 + $0x48] sm:$0xff] }
  0x16   : > { %523 = vmatpush.bf16.msra.mxu1 %v2262_v9  ;;  %vm2531_vm6 = vmor %vm311_vm5, %vm312_vm4  ;;  %v345_v55 = vshll.u32 %v299_v35, 16  ;;  %v2258_v57 = vld [vmem:[%s2861_s1 + $0x8] sm:$0xff]  ;;  %v351_v61 = vshll.u32 %v302_v39, 16  ;;  %v355_v0 = vshrl.u32 %v305_v40, 16  ;;  %v358_v1 = vshll.u32 %v305_v40, 16  ;;  %v2312_v24 = vld [vmem:[%s2861_s1 + $0x1b8] sm:$0xff] }
  0x17   : > { %678 = vmatpush.bf16.msra.mxu2 %v2278_v10  ;;  %v286_v27 = vsel %vm283_vm0, %v271_v17, %v279_v22  ;;  %v288_v28 = vsel %vm287_vm1, %v271_v17, %v279_v22  ;;  %v293_v29 = vsel %vm283_vm0, %v272_v18, %v280_v23  ;;  %v294_v30 = vsel %vm287_vm1, %v272_v18, %v280_v23  ;;  %v2274_v2 = vld [vmem:[%s2861_s1 + $0x88] sm:$0xff]  ;;  %vm2547_vm8 = vmor %vm2531_vm6, %vm314_vm7  ;;  %v2304_v17 = vld [vmem:[%s2861_s1 + $0x178] sm:$0xff] }
  0x18   : > { %779 = vmatpush.bf16.msra.mxu3 %v2286_v11  ;;  %v290_v33 = vrot.slane %v288_v28, 2  ;;  %v296_v34 = vrot.slane %v294_v30, 2  ;;  %v316_v42 = vshrl.u32 %v286_v27, 16  ;;  %v319_v44 = vshll.u32 %v286_v27, 16  ;;  %v2282_v8 = vld [vmem:[%s2861_s1 + $0xc8] sm:$0xff]  ;;  %v2273_v22 = vld [vmem:[%s2861_s1 + $0x80] sm:$0xff]  ;;  %vm577_vm11 = vmor %vm575_vm9, %vm576_vm10 }
  0x19   : > { %449 = vmatpush.bf16.msra.mxu0 %v2269_v12  ;;  %v329_v46 = vshrl.u32 %v293_v29, 16  ;;  %v332_v48 = vshll.u32 %v293_v29, 16  ;;  %v344_v60 = vrot.slane %v342_v50, 6  ;;  %v347_v63 = vrot.slane %v345_v55, 7  ;;  %v2281_v27 = vld [vmem:[%s2861_s1 + $0xc0] sm:$0xff]  ;;  %v2295_v28 = vld [vmem:[%s2861_s1 + $0x130] sm:$0xff]  ;;  %vm2622_vm13 = vmor %vm577_vm11, %vm578_vm12 }
  0x1a   : > { %524 = vmatpush.bf16.msra.mxu1 %v2261_v13  ;;  %v325_v45 = vshll.u32 %v290_v33, 16  ;;  %v318_v47 = vrot.slane %v316_v42, 6  ;;  %v338_v49 = vshll.u32 %v296_v34, 16  ;;  %v321_v53 = vrot.slane %v319_v44, 7  ;;  %v2265_v13 = vld [vmem:[%s2861_s1 + $0x40] sm:$0xff]  ;;  %v2303_v29 = vld [vmem:[%s2861_s1 + $0x170] sm:$0xff]  ;;  %vm2646_vm15 = vmor %vm2622_vm13, %vm580_vm14 }
  0x1b   : > { %679 = vmatpush.bf16.msra.mxu2 %v2277_v15  ;;  %v331_v54 = vrot.slane %v329_v46, 6  ;;  %v334_v59 = vrot.slane %v332_v48, 7  ;;  %v353_v6 = vrot.slane %v351_v61, 7  ;;  %v364_v7 = vshll.u32 %v308_v43, 16  ;;  %v2294_v33 = vld [vmem:[%s2861_s1 + $0x128] sm:$0xff]  ;;  %v2293_v41 = vld [vmem:[%s2861_s1 + $0x120] sm:$0xff] }
  0x1c   : > { %780 = vmatpush.bf16.msra.mxu3 %v2285_v16  ;;  %v327_v58 = vrot.slane %v325_v45, 7  ;;  %v322_v62 = vor.u32 %v321_v53, %v318_v47  ;;  %v340_v5 = vrot.slane %v338_v49, 7  ;;  %v348_v10 = vor.u32 %v347_v63, %v344_v60  ;;  %v2296_v16 = vld [vmem:[%s2861_s1 + $0x138] sm:$0xff]  ;;  %v2302_v34 = vld [vmem:[%s2861_s1 + $0x168] sm:$0xff]  ;;  %v536_v35 = vld [vmem:[%s2484_s7 + $0x4] sm:$0x6] }
  0x1d   : > { %450 = vmatpush.bf16.msra.mxu0 %v2268_v14  ;;  %v335_v4 = vor.u32 %v334_v59, %v331_v54  ;;  %v357_v11 = vrot.slane %v355_v0, 6  ;;  %v360_v12 = vrot.slane %v358_v1, 7  ;;  %v2257_v14 = vld [vmem:[%s2861_s1] sm:$0xff]  ;;  %v366_v21 = vrot.slane %v364_v7, 7  ;;  %v538_v39 = vld [vmem:[%s2484_s7 + $0xc] sm:$0x6] }
  0x1e   : > { %525 = vmatpush.bf16.msra.mxu1 %v2260_v20  ;;  %v323_v9 = vrot.slane %v322_v62, 2  ;;  %v349_v19 = vrot.slane %v348_v10, 2  ;;  %v251_v36 = vld [vmem:[%s2484_s7] sm:$0x3]  ;;  %v253_v42 = vld [vmem:[%s2484_s7 + $0x8] sm:$0x3] }
  0x1f   : > { %680 = vmatpush.bf16.msra.mxu2 %v2276_v26  ;;  %v336_v15 = vrot.slane %v335_v4, 2  ;;  %v361_v20 = vor.u32 %v360_v12, %v357_v11  ;;  %v254_v43 = vld [vmem:[%s2484_s7 + $0xc] sm:$0x3]  ;;  %v544_v44 = vrot.slane %v536_v35, 2  ;;  %v2301_v47 = vld [vmem:[%s2861_s1 + $0x160] sm:$0xff]  ;;  %v546_v48 = vrot.slane %v538_v39, 2 }
  0x20   : > { %781 = vmatpush.bf16.msra.mxu3 %v2284_v32  ;;  %v328_v18 = vsel %vm2547_vm8, %v323_v9, %v327_v58  ;;  %v354_v25 = vsel %vm2547_vm8, %v349_v19, %v353_v6  ;;  %v535_v32 = vld [vmem:[%s2484_s7] sm:$0x6]  ;;  %v2310_v49 = vld [vmem:[%s2861_s1 + $0x1a8] sm:$0xff]  ;;  %v2320_v50 = vld [vmem:[%s2861_s1 + $0x1f8] sm:$0xff] }
  0x21   : > { %451 = vmatpush.bf16.msra.mxu0 %v2267_v31  ;;  %v341_v23 = vsel %vm2547_vm8, %v336_v15, %v340_v5  ;;  %386 = vst [vmem:[#allocation1] ss:$4 sm:$0xff] %v328_v18  ;;  %v362_v26 = vrot.slane %v361_v20, 2  ;;  %v2311_v31 = vld [vmem:[%s2861_s1 + $0x1b0] sm:$0xff]  ;;  %v543_v40 = vrot.slane %v535_v32, 2  ;;  %v556_v53 = vsel %vm283_vm0, %v536_v35, %v544_v44  ;;  %v2292_v60 = vld [vmem:[%s2861_s1 + $0x118] sm:$0xff] }
  0x22   : > { %526 = vmatpush.bf16.msra.mxu1 %v2259_v37  ;;  %389 = vst [vmem:[#allocation1 + $0x1] ss:$4 sm:$0xff] %v341_v23  ;;  %v537_v37 = vld [vmem:[%s2484_s7 + $0x8] sm:$0x6]  ;;  %v558_v54 = vsel %vm287_vm1, %v536_v35, %v544_v44  ;;  %v2300_v61 = vld [vmem:[%s2861_s1 + $0x158] sm:$0xff]  ;;  %v570_v62 = vsel %vm283_vm0, %v538_v39, %v546_v48  ;;  %v572_v63 = vsel %vm287_vm1, %v538_v39, %v546_v48  ;;  %v1840_v5 = vrot.slane %v556_v53, 9 }
  0x23   : > { %681 = vmatpush.bf16.msra.mxu2 %v2275_v38  ;;  %392 = vst [vmem:[#allocation1 + $0x2] ss:$4 sm:$0xff] %v354_v25  ;;  %v367_v30 = vsel %vm2547_vm8, %v362_v26, %v366_v21  ;;  %v252_v38 = vld [vmem:[%s2484_s7 + $0x4] sm:$0x3]  ;;  %v545_v46 = vrot.slane %v537_v37, 2  ;;  %v551_v52 = vsel %vm287_vm1, %v535_v32, %v543_v40  ;;  %v1841_v6 = vrot.slane %v558_v54, 9 }
  0x24   : > { %782 = vmatpush.bf16.msra.mxu3 %v2283_v51  ;;  %395 = vst [vmem:[#allocation1 + $0x3] ss:$4 sm:$0xff] %v367_v30  ;;  %v549_v51 = vsel %vm283_vm0, %v535_v32, %v543_v40  ;;  %v1839_v1 = vrot.slane %v551_v52, 9  ;;  %v1947_v7 = vld [vmem:[%s2484_s7 + $0x8] sm:$0x7]  ;;  %v2308_v10 = vld [vmem:[%s2861_s1 + $0x198] sm:$0xff] }
  0x25   : > { %452 = vmatpush.bf16.msra.mxu0 %v2266_v56  ;;  %v2309_v56 = vld [vmem:[%s2861_s1 + $0x1a0] sm:$0xff]  ;;  %v563_v58 = vsel %vm283_vm0, %v537_v37, %v545_v46  ;;  %v565_v59 = vsel %vm287_vm1, %v537_v37, %v545_v46  ;;  %v1838_v0 = vrot.slane %v549_v51, 9  ;;  %v2318_v11 = vld [vmem:[%s2861_s1 + $0x1e8] sm:$0xff]  ;;  %v2291_v15 = vld [vmem:[%s2861_s1 + $0x110] sm:$0xff]  ;;  %v802_v20 = vrot.slane %v1947_v7, 2 }
  0x26   : > { %527 = vmatpush.bf16.msra.mxu1 %v2258_v57  ;;  %v2319_v57 = vld [vmem:[%s2861_s1 + $0x1f0] sm:$0xff]  ;;  %v1843_v9 = vrot.slane %v565_v59, 9  ;;  %v1948_v12 = vld [vmem:[%s2484_s7 + $0xc] sm:$0x7]  ;;  %v589_v21 = vsel %vm2646_vm15, %v1840_v5, %v1841_v6  ;;  %v2317_v32 = vld [vmem:[%s2861_s1 + $0x1e0] sm:$0xff] }
  0x27   : > { %682 = vmatpush.bf16.msra.mxu2 %v2274_v2  ;;  %v1946_v2 = vld [vmem:[%s2484_s7 + $0x4] sm:$0x7]  ;;  %v585_v18 = vsel %vm2646_vm15, %v1838_v0, %v1839_v1  ;;  %v2299_v19 = vld [vmem:[%s2861_s1 + $0x150] sm:$0xff]  ;;  %v813_v30 = vsel %vm283_vm0, %v1947_v7, %v802_v20  ;;  %v1896_v55 = vld [vmem:[%s2484_s7 + $0xc] sm:$0x3] }
  0x28   : > { %783 = vmatpush.bf16.msra.mxu3 %v2282_v8  ;;  %v1842_v8 = vrot.slane %v563_v58, 9  ;;  %v2289_v37 = vld [vmem:[%s2861_s1 + $0x100] sm:$0xff]  ;;  %v842_v39 = vshrl.u32 %v813_v30, 16  ;;  %v845_v40 = vshll.u32 %v813_v30, 16  ;;  %v1897_v59 = vld [vmem:[%s2484_s7 + $0x10] sm:$0x3] }
  0x29   : > { %453 = vmatpush.bf16.msra.mxu0 %v2265_v13  ;;  %v1844_v13 = vrot.slane %v570_v62, 9  ;;  %v1894_v46 = vld [vmem:[%s2484_s7 + $0x4] sm:$0x3]  ;;  %v2000_v30 = vld [vmem:[%s2484_s7 + $0xc] sm:$0x6] }
  0x2a   : > { %528 = vmatpush.bf16.msra.mxu1 %v2257_v14  ;;  %v1845_v14 = vrot.slane %v572_v63, 9  ;;  %v847_v58 = vrot.slane %v845_v40, 7  ;;  %v2327_v63 = vld [vmem:[%s2861_s1 + $0x230] sm:$0xff]  ;;  %v2334_v4 = vld [vmem:[%s2863_s3 + $0x28] sm:$0xff] }
  0x2b   : > { %683 = vmatpush.bf16.msra.mxu2 %v2273_v22  ;;  %v396_v45 = vld.sshfl [vmem:[#allocation1] sm:$0xff pattern:$0x73625140]  ;;  %v803_v22 = vrot.slane %v1948_v12, 2 }
  0x2c   : > { %784 = vmatpush.bf16.msra.mxu3 %v2281_v27  ;;  %454 = vmatmul.bf16.vlgmr.msra.gmra.mxu0 %v396_v45  ;;  %461 = vst [vmem:[#allocation1] ss:$4 sm:$0xff] %v251_v36  ;;  %v597_v26 = vsel %vm2646_vm15, %v1844_v13, %v1845_v14  ;;  %v2290_v27 = vld [vmem:[%s2861_s1 + $0x108] sm:$0xff]  ;;  %v2297_v45 = vld [vmem:[%s2861_s1 + $0x140] sm:$0xff] }
  0x2d   : > { %959 = vmatpush.bf16.msrb.mxu0 %v2296_v16  ;;  %464 = vst [vmem:[#allocation1 + $0x1] ss:$4 sm:$0xff] %v252_v38  ;;  %v1949_v16 = vld [vmem:[%s2484_s7 + $0x10] sm:$0x7]  ;;  %v2326_v14 = vld [vmem:[%s2861_s1 + $0x228] sm:$0xff] }
  0x2e   : > { %1109 = vmatpush.bf16.msrb.mxu1 %v2304_v17  ;;  %467 = vst [vmem:[#allocation1 + $0x2] ss:$4 sm:$0xff] %v253_v42  ;;  %v801_v17 = vrot.slane %v1946_v2, 2  ;;  %v804_v25 = vrot.slane %v1949_v16, 2  ;;  %v814_v42 = vsel %vm287_vm1, %v1947_v7, %v802_v20 }
  0x2f   : > { %1210 = vmatpush.bf16.msrb.mxu2 %v2312_v24  ;;  %470 = vst [vmem:[#allocation1 + $0x3] ss:$4 sm:$0xff] %v254_v43  ;;  %v593_v24 = vsel %vm2646_vm15, %v1842_v8, %v1843_v9  ;;  %v2306_v8 = vld [vmem:[%s2861_s1 + $0x188] sm:$0xff]  ;;  %v2316_v9 = vld [vmem:[%s2861_s1 + $0x1d8] sm:$0xff] }
  0x30   : > { %1392 = vmatpush.bf16.msrb.mxu3 %v2320_v50  ;;  %v808_v38 = vsel %vm287_vm1, %v1946_v2, %v801_v17  ;;  %v1895_v50 = vld [vmem:[%s2484_s7 + $0x8] sm:$0x3]  ;;  %v826_v52 = vsel %vm287_vm1, %v1949_v16, %v804_v25 }
  0x31   : > { %960 = vmatpush.bf16.msrb.mxu0 %v2295_v28  ;;  %v807_v28 = vsel %vm283_vm0, %v1946_v2, %v801_v17  ;;  %v810_v51 = vrot.slane %v808_v38, 2  ;;  %v828_v1 = vrot.slane %v826_v52, 2  ;;  %v985_v38 = vrot.slane %v2000_v30, 2 }
  0x32   : > { %1110 = vmatpush.bf16.msrb.mxu1 %v2303_v29  ;;  %v2298_v29 = vld [vmem:[%s2861_s1 + $0x148] sm:$0xff]  ;;  %v829_v35 = vshrl.u32 %v807_v28, 16  ;;  %v832_v36 = vshll.u32 %v807_v28, 16 }
  0x33   : > { %1211 = vmatpush.bf16.msrb.mxu2 %v2311_v31  ;;  %v2307_v31 = vld [vmem:[%s2861_s1 + $0x190] sm:$0xff]  ;;  %v838_v7 = vshll.u32 %v810_v51, 16  ;;  %v877_v17 = vshll.u32 %v828_v1, 16 }
  0x34   : > { %1393 = vmatpush.bf16.msrb.mxu3 %v2319_v57  ;;  %v831_v53 = vrot.slane %v829_v35, 6  ;;  %v834_v54 = vrot.slane %v832_v36, 7  ;;  %v844_v57 = vrot.slane %v842_v39, 6 }
  0x35   : > { %961 = vmatpush.bf16.msrb.mxu0 %v2294_v33  ;;  %v819_v33 = vsel %vm283_vm0, %v1948_v12, %v803_v22  ;;  %v840_v20 = vrot.slane %v838_v7, 7 }
  0x36   : > { %1111 = vmatpush.bf16.msrb.mxu1 %v2302_v34  ;;  %v471_v23 = vld.sshfl [vmem:[#allocation1] sm:$0xff pattern:$0x73625140]  ;;  %v825_v34 = vsel %vm283_vm0, %v1949_v16, %v804_v25  ;;  %v855_v43 = vshrl.u32 %v819_v33, 16  ;;  %v858_v44 = vshll.u32 %v819_v33, 16  ;;  %v835_v6 = vor.u32 %v834_v54, %v831_v53 }
  0x37   : > { %1212 = vmatpush.bf16.msrb.mxu2 %v2310_v49  ;;  %616 = vst [vmem:[#allocation1] ss:$4 sm:$0xff] %v585_v18  ;;  %529 = vmatmul.bf16.vlgmr.msra.gmra.mxu1 %v471_v23  ;;  %v868_v48 = vshrl.u32 %v825_v34, 16  ;;  %v871_v49 = vshll.u32 %v825_v34, 16  ;;  %v2315_v18 = vld [vmem:[%s2861_s1 + $0x1d0] sm:$0xff] }
  0x38   : > { %1394 = vmatpush.bf16.msrb.mxu3 %v2318_v11  ;;  %619 = vst [vmem:[#allocation1 + $0x1] ss:$4 sm:$0xff] %v589_v21  ;;  %v860_v62 = vrot.slane %v858_v44, 7  ;;  %v1998_v23 = vld [vmem:[%s2484_s7 + $0x4] sm:$0x6] }
  0x39   : > { %962 = vmatpush.bf16.msrb.mxu0 %v2293_v41  ;;  %622 = vst [vmem:[#allocation1 + $0x2] ss:$4 sm:$0xff] %v593_v24  ;;  %v2328_v41 = vld [vmem:[%s2861_s1 + $0x238] sm:$0xff]  ;;  %v870_v2 = vrot.slane %v868_v48, 6  ;;  %v873_v5 = vrot.slane %v871_v49, 7  ;;  %v983_v33 = vrot.slane %v1998_v23, 2  ;;  %v1003_v48 = vsel %vm283_vm0, %v2000_v30, %v985_v38 }
  0x3a   : > { %1112 = vmatpush.bf16.msrb.mxu1 %v2301_v47  ;;  %625 = vst [vmem:[#allocation1 + $0x3] ss:$4 sm:$0xff] %v597_v26  ;;  %v820_v47 = vsel %vm287_vm1, %v1948_v12, %v803_v22  ;;  %v1999_v26 = vld [vmem:[%s2484_s7 + $0x8] sm:$0x6]  ;;  %v1005_v49 = vsel %vm287_vm1, %v2000_v30, %v985_v38  ;;  %v2060_v38 = vld [vmem:[%s2484_s7 + $0x10] sm:$0x3] }
  0x3b   : > { %1213 = vmatpush.bf16.msrb.mxu2 %v2309_v56  ;;  %v816_v56 = vrot.slane %v814_v42, 2  ;;  %v874_v16 = vor.u32 %v873_v5, %v870_v2  ;;  %v984_v35 = vrot.slane %v1999_v26, 2  ;;  %v2324_v42 = vld [vmem:[%s2861_s1 + $0x218] sm:$0xff]  ;;  %v991_v44 = vsel %vm287_vm1, %v1998_v23, %v983_v33 }
  0x3c   : > { %1395 = vmatpush.bf16.msrb.mxu3 %v2317_v32  ;;  %v2001_v32 = vld [vmem:[%s2484_s7 + $0x10] sm:$0x6]  ;;  %v2003_v54 = vrot.slane %v991_v44, 9 }
  0x3d   : > { %963 = vmatpush.bf16.msrb.mxu0 %v2292_v60  ;;  %v822_v60 = vrot.slane %v820_v47, 2  ;;  %v851_v11 = vshll.u32 %v816_v56, 16  ;;  %v875_v28 = vrot.slane %v874_v16, 2  ;;  %v986_v40 = vrot.slane %v2001_v32, 2  ;;  %v2313_v47 = vld [vmem:[%s2861_s1 + $0x1c0] sm:$0xff] }
  0x3e   : > { %1113 = vmatpush.bf16.msrb.mxu1 %v2300_v61  ;;  %v857_v61 = vrot.slane %v855_v43, 6  ;;  %v989_v43 = vsel %vm283_vm0, %v1998_v23, %v983_v33 }
  0x3f   : > { %1214 = vmatpush.bf16.msrb.mxu2 %v2308_v10  ;;  %v848_v10 = vor.u32 %v847_v58, %v844_v57  ;;  %v864_v13 = vshll.u32 %v822_v60, 16  ;;  %v853_v22 = vrot.slane %v851_v11, 7  ;;  %v1010_v51 = vsel %vm283_vm0, %v2001_v32, %v986_v40  ;;  %v2111_v58 = vld [vmem:[%s2484_s7 + $0xc] sm:$0x7] }
  0x40   : > { %v861_v12 = vor.u32 %v860_v62, %v857_v61  ;;  %1396 = vmatpush.bf16.msrb.mxu3 %v2316_v9  ;;  %v1012_v52 = vsel %vm287_vm1, %v2001_v32, %v986_v40  ;;  %v2002_v53 = vrot.slane %v989_v43, 9  ;;  %v2007_v60 = vrot.slane %v1005_v49, 9  ;;  %v2112_v61 = vld [vmem:[%s2484_s7 + $0x10] sm:$0x7] }
  0x41   : > { %964 = vmatpush.bf16.msrb.mxu0 %v2291_v15  ;;  %v626_v0 = vld.sshfl [vmem:[#allocation1] sm:$0xff pattern:$0x73625140]  ;;  %v849_v21 = vrot.slane %v848_v10, 2  ;;  %v866_v25 = vrot.slane %v864_v13, 7  ;;  %v2008_v62 = vrot.slane %v1010_v51, 9 }
  0x42   : > { %1114 = vmatpush.bf16.msrb.mxu1 %v2299_v19  ;;  %684 = vmatmul.bf16.vlgmr.msra.gmra.mxu2 %v626_v0  ;;  %717 = vst [vmem:[#allocation1] ss:$4 sm:$0xff] %v1894_v46  ;;  %v2305_v15 = vld [vmem:[%s2861_s1 + $0x180] sm:$0xff]  ;;  %v836_v19 = vrot.slane %v835_v6, 2  ;;  %v862_v24 = vrot.slane %v861_v12, 2  ;;  %v998_v46 = vsel %vm287_vm1, %v1999_v26, %v984_v35  ;;  %v1018_v2 = vsel %vm2646_vm15, %v2002_v53, %v2003_v54 }
  0x43   : > { %1215 = vmatpush.bf16.msrb.mxu2 %v2307_v31  ;;  %720 = vst [vmem:[#allocation1 + $0x1] ss:$4 sm:$0xff] %v1895_v50  ;;  %v854_v34 = vsel %vm2547_vm8, %v849_v21, %v853_v22  ;;  %v2323_v50 = vld [vmem:[%s2861_s1 + $0x210] sm:$0xff]  ;;  %v2005_v57 = vrot.slane %v998_v46, 9  ;;  %v1235_v5 = vrot.slane %v2111_v58, 2  ;;  %v1236_v7 = vrot.slane %v2112_v61, 2 }
  0x44   : > { %723 = vst [vmem:[#allocation1 + $0x2] ss:$4 sm:$0xff] %v1896_v55  ;;  %1397 = vmatpush.bf16.msrb.mxu3 %v2315_v18  ;;  %v841_v31 = vsel %vm2547_vm8, %v836_v19, %v840_v20  ;;  %v2110_v55 = vld [vmem:[%s2484_s7 + $0x8] sm:$0x7]  ;;  %v2113_v0 = vld [vmem:[%s2484_s7 + $0x14] sm:$0x7] }
  0x45   : > { %965 = vmatpush.bf16.msrb.mxu0 %v2290_v27  ;;  %726 = vst [vmem:[#allocation1 + $0x3] ss:$4 sm:$0xff] %v1897_v59  ;;  %v2325_v27 = vld [vmem:[%s2861_s1 + $0x220] sm:$0xff]  ;;  %v2006_v59 = vrot.slane %v1003_v48, 9  ;;  %v1234_v1 = vrot.slane %v2110_v55, 2  ;;  %v1237_v10 = vrot.slane %v2113_v0, 2  ;;  %v1246_v13 = vsel %vm283_vm0, %v2111_v58, %v1235_v5 }
  0x46   : > { %1115 = vmatpush.bf16.msrb.mxu1 %v2298_v29  ;;  %v879_v29 = vrot.slane %v877_v17, 7  ;;  %v2322_v18 = vld [vmem:[%s2861_s1 + $0x208] sm:$0xff]  ;;  %v1275_v20 = vshrl.u32 %v1246_v13, 16  ;;  %v1278_v21 = vshll.u32 %v1246_v13, 16  ;;  %v1247_v22 = vsel %vm287_vm1, %v2111_v58, %v1235_v5  ;;  %v2061_v46 = vld [vmem:[%s2484_s7 + $0x14] sm:$0x3] }
  0x47   : > { %1216 = vmatpush.bf16.msrb.mxu2 %v2306_v8  ;;  %v1026_v9 = vsel %vm2646_vm15, %v2006_v59, %v2007_v60  ;;  %v1240_v12 = vsel %vm283_vm0, %v2110_v55, %v1234_v1  ;;  %v1241_v19 = vsel %vm287_vm1, %v2110_v55, %v1234_v1  ;;  %v2162_v59 = vld [vmem:[%s2484_s7 + $0x8] sm:$0x6]  ;;  %v2164_v1 = vld [vmem:[%s2484_s7 + $0x10] sm:$0x6]  ;;  %v2165_v5 = vld [vmem:[%s2484_s7 + $0x14] sm:$0x6] }
  0x48   : > { %v880_v39 = vsel %vm2547_vm8, %v875_v28, %v879_v29  ;;  %v1262_v16 = vshrl.u32 %v1240_v12, 16  ;;  %v1265_v17 = vshll.u32 %v1240_v12, 16  ;;  %v2058_v29 = vld [vmem:[%s2484_s7 + $0x8] sm:$0x3]  ;;  %v1243_v30 = vrot.slane %v1241_v19, 2 }
  0x49   : > { %966 = vmatpush.bf16.msrb.mxu0 %v2289_v37  ;;  %v867_v37 = vsel %vm2547_vm8, %v862_v24, %v866_v25  ;;  %v2321_v25 = vld [vmem:[%s2861_s1 + $0x200] sm:$0xff]  ;;  %v1419_v13 = vrot.slane %v2165_v5, 2 }
  0x4a   : > { %1116 = vmatpush.bf16.msrb.mxu1 %v2297_v45  ;;  %v996_v45 = vsel %vm283_vm0, %v1999_v26, %v984_v35  ;;  %v1253_v26 = vsel %vm287_vm1, %v2112_v61, %v1236_v7  ;;  %v1264_v32 = vrot.slane %v1262_v16, 6  ;;  %v1267_v33 = vrot.slane %v1265_v17, 7 }
  0x4b   : > { %1217 = vmatpush.bf16.msrb.mxu2 %v2305_v15  ;;  %v2004_v56 = vrot.slane %v996_v45, 9  ;;  %v1258_v15 = vsel %vm283_vm0, %v2113_v0, %v1237_v10  ;;  %v1249_v35 = vrot.slane %v1247_v22, 2  ;;  %v1271_v48 = vshll.u32 %v1243_v30, 16 }
  0x4c   : > { %v727_v36 = vld.sshfl [vmem:[#allocation1] sm:$0xff pattern:$0x73625140]  ;;  %v1304_v28 = vshll.u32 %v1258_v15, 16  ;;  %v1443_v3 = vsel %vm283_vm0, %v2165_v5, %v1419_v13 }
  0x4d   : > { %1542 = vmatpush.bf16.msra.mxu0 %v2328_v41  ;;  %785 = vmatmul.bf16.vlgmr.msra.gmra.mxu3 %v727_v36  ;;  %899 = vst [vmem:[#allocation1] ss:$4 sm:$0xff] %v841_v31  ;;  %v2314_v41 = vld [vmem:[%s2861_s1 + $0x1c8] sm:$0xff]  ;;  %v1022_v6 = vsel %vm2646_vm15, %v2004_v56, %v2005_v57  ;;  %v1259_v31 = vsel %vm287_vm1, %v2113_v0, %v1237_v10  ;;  %v1277_v36 = vrot.slane %v1275_v20, 6  ;;  %v1273_v56 = vrot.slane %v1271_v48, 7 }
  0x4e   : > { %902 = vst [vmem:[#allocation1 + $0x1] ss:$4 sm:$0xff] %v854_v34  ;;  %1398 = vmatpush.bf16.msrb.mxu3 %v2314_v41  ;;  %v2059_v34 = vld [vmem:[%s2484_s7 + $0xc] sm:$0x3]  ;;  %v1261_v43 = vrot.slane %v1259_v31, 2  ;;  %v1306_v45 = vrot.slane %v1304_v28, 7  ;;  %v1445_v20 = vsel %vm287_vm1, %v2165_v5, %v1419_v13 }
  0x4f   : > { %905 = vst [vmem:[#allocation1 + $0x2] ss:$4 sm:$0xff] %v867_v37  ;;  %v1280_v37 = vrot.slane %v1278_v21, 7  ;;  %v2173_v28 = vrot.slane %v1445_v20, 9 }
  0x50   : > { %908 = vst [vmem:[#allocation1 + $0x3] ss:$4 sm:$0xff] %v880_v39  ;;  %v1255_v39 = vrot.slane %v1253_v26, 2  ;;  %v1310_v54 = vshll.u32 %v1261_v43, 16  ;;  %v2331_v43 = vld [vmem:[%s2863_s3 + $0x10] sm:$0xff] }
  0x51   : > { %1543 = vmatpush.bf16.msra.mxu0 %v2327_v63  ;;  %v2009_v63 = vrot.slane %v1012_v52, 9  ;;  %v1281_v49 = vor.u32 %v1280_v37, %v1277_v36  ;;  %v2335_v36 = vld [vmem:[%s2863_s3 + $0x30] sm:$0xff] }
  0x52   : > { %1399 = vmatpush.bf16.msrb.mxu3 %v2313_v47  ;;  %v1268_v47 = vor.u32 %v1267_v33, %v1264_v32  ;;  %v1297_v52 = vshll.u32 %v1255_v39, 16  ;;  %v1312_v0 = vrot.slane %v1310_v54, 7 }
  0x53   : > { %v1030_v11 = vsel %vm2646_vm15, %v2008_v62, %v2009_v63  ;;  %v1282_v57 = vrot.slane %v1281_v49, 2  ;;  %v2163_v62 = vld [vmem:[%s2484_s7 + $0xc] sm:$0x6] }
  0x54   : > { %v1269_v55 = vrot.slane %v1268_v47, 2  ;;  %v2329_v47 = vld [vmem:[%s2863_s3] sm:$0xff] }
  0x55   : > { %1544 = vmatpush.bf16.msra.mxu0 %v2326_v14  ;;  %v1252_v14 = vsel %vm283_vm0, %v2112_v61, %v1236_v7  ;;  %v1299_v61 = vrot.slane %v1297_v52, 7 }
  0x56   : > { %v1288_v23 = vshrl.u32 %v1252_v14, 16  ;;  %v1291_v24 = vshll.u32 %v1252_v14, 16 }
  0x57   : > { %v909_v8 = vld.sshfl [vmem:[#allocation1] sm:$0xff pattern:$0x73625140] }
  0x58   : > { %967 = vmatmul.bf16.vlgmr.msrb.gmra.mxu0 %v909_v8  ;;  %1049 = vst [vmem:[#allocation1] ss:$4 sm:$0xff] %v1018_v2  ;;  %v1290_v40 = vrot.slane %v1288_v23, 6  ;;  %v1293_v41 = vrot.slane %v1291_v24, 7  ;;  %v1274_v2 = vsel %vm2547_vm8, %v1269_v55, %v1273_v56  ;;  %v1417_v8 = vrot.slane %v2163_v62, 2 }
  0x59   : > { %1545 = vmatpush.bf16.msra.mxu0 %v2325_v27  ;;  %1052 = vst [vmem:[#allocation1 + $0x1] ss:$4 sm:$0xff] %v1022_v6  ;;  %v1301_v27 = vshrl.u32 %v1258_v15, 16  ;;  %v1416_v6 = vrot.slane %v2162_v59, 2 }
  0x5a   : > { %1055 = vst [vmem:[#allocation1 + $0x2] ss:$4 sm:$0xff] %v1026_v9  ;;  %v1294_v51 = vor.u32 %v1293_v41, %v1290_v40  ;;  %v1429_v16 = vsel %vm283_vm0, %v2163_v62, %v1417_v8  ;;  %v1431_v17 = vsel %vm287_vm1, %v2163_v62, %v1417_v8  ;;  %v2332_v40 = vld [vmem:[%s2863_s3 + $0x18] sm:$0xff] }
  0x5b   : > { %1058 = vst [vmem:[#allocation1 + $0x3] ss:$4 sm:$0xff] %v1030_v11  ;;  %v1303_v44 = vrot.slane %v1301_v27, 6  ;;  %v1418_v11 = vrot.slane %v2164_v1, 2  ;;  %v1422_v14 = vsel %vm283_vm0, %v2162_v59, %v1416_v6  ;;  %v1424_v15 = vsel %vm287_vm1, %v2162_v59, %v1416_v6 }
  0x5c   : > { %v1295_v60 = vrot.slane %v1294_v51, 2  ;;  %v2166_v21 = vrot.slane %v1422_v14, 9  ;;  %v2167_v22 = vrot.slane %v1424_v15, 9  ;;  %v2168_v23 = vrot.slane %v1429_v16, 9 }
  0x5d   : > { %1546 = vmatpush.bf16.msra.mxu0 %v2324_v42  ;;  %v1307_v53 = vor.u32 %v1306_v45, %v1303_v44  ;;  %v1438_v19 = vsel %vm287_vm1, %v2164_v1, %v1418_v11  ;;  %v2169_v24 = vrot.slane %v1431_v17, 9  ;;  %v2172_v27 = vrot.slane %v1443_v3, 9  ;;  %v2330_v44 = vld [vmem:[%s2863_s3 + $0x8] sm:$0xff]  ;;  %v2363_v3 = vld [vmem:[%s2864_s4] ss:$0 sm:$0xff] }
  0x5e   : > { %v1300_v10 = vsel %vm2547_vm8, %v1295_v60, %v1299_v61  ;;  %v2171_v26 = vrot.slane %v1438_v19, 9 }
  0x5f   : > { %v1308_v63 = vrot.slane %v1307_v53, 2  ;;  %v1455_v30 = vsel %vm2646_vm15, %v2168_v23, %v2169_v24  ;;  %v1463_v33 = vsel %vm2646_vm15, %v2172_v27, %v2173_v28 }
  0x61   : > { %1547 = vmatpush.bf16.msra.mxu0 %v2323_v50  ;;  %v1284_v50 = vshll.u32 %v1249_v35, 16  ;;  %v1313_v12 = vsel %vm2547_vm8, %v1308_v63, %v1312_v0  ;;  %v2336_v35 = vld [vmem:[%s2863_s3 + $0x38] sm:$0xff] }
  0x62   : > { %v1059_v42 = vld.sshfl [vmem:[#allocation1] sm:$0xff pattern:$0x73625140]  ;;  %1635 = vmatpush.bf16.msra.mxu1 %v2336_v35 }
  0x63   : > { %1117 = vmatmul.bf16.vlgmr.msrb.gmra.mxu1 %v1059_v42  ;;  %1150 = vst [vmem:[#allocation1] ss:$4 sm:$0xff] %v2058_v29  ;;  %v1286_v58 = vrot.slane %v1284_v50, 7  ;;  %v1451_v29 = vsel %vm2646_vm15, %v2166_v21, %v2167_v22 }
  0x64   : > { %1153 = vst [vmem:[#allocation1 + $0x1] ss:$4 sm:$0xff] %v2059_v34 }
  0x65   : > { %1548 = vmatpush.bf16.msra.mxu0 %v2322_v18  ;;  %1156 = vst [vmem:[#allocation1 + $0x2] ss:$4 sm:$0xff] %v2060_v38  ;;  %v1287_v7 = vsel %vm2547_vm8, %v1282_v57, %v1286_v58  ;;  %v1436_v18 = vsel %vm283_vm0, %v2164_v1, %v1418_v11  ;;  %v2333_v38 = vld [vmem:[%s2863_s3 + $0x20] sm:$0xff] }
  0x66   : > { %1159 = vst [vmem:[#allocation1 + $0x3] ss:$4 sm:$0xff] %v2061_v46  ;;  %1636 = vmatpush.bf16.msra.mxu1 %v2335_v36  ;;  %v2362_v11 = vld [vmem:[%s2862_s2] ss:$0 sm:$0xff] }
  0x69   : > { %1549 = vmatpush.bf16.msra.mxu0 %v2321_v25  ;;  %v2170_v25 = vrot.slane %v1436_v18, 9 }
  0x6a   : > { %1637 = vmatpush.bf16.msra.mxu1 %v2334_v4 }
  0x6b   : > { %v1459_v32 = vsel %vm2646_vm15, %v2170_v25, %v2171_v26 }
  0x6d   : > { %v1160_v9 = vld.sshfl [vmem:[#allocation1] sm:$0xff pattern:$0x73625140] }
  0x6e   : > { %1218 = vmatmul.bf16.vlgmr.msrb.gmra.mxu2 %v1160_v9  ;;  %1332 = vst [vmem:[#allocation1] ss:$4 sm:$0xff] %v1274_v2  ;;  %1638 = vmatpush.bf16.msra.mxu1 %v2333_v38 }
  0x6f   : > { %1335 = vst [vmem:[#allocation1 + $0x1] ss:$4 sm:$0xff] %v1287_v7 }
  0x70   : > { %1338 = vst [vmem:[#allocation1 + $0x2] ss:$4 sm:$0xff] %v1300_v10 }
  0x71   : > { %1341 = vst [vmem:[#allocation1 + $0x3] ss:$4 sm:$0xff] %v1313_v12 }
  0x72   : > { %1639 = vmatpush.bf16.msra.mxu1 %v2332_v40 }
  0x76   : > { %1640 = vmatpush.bf16.msra.mxu1 %v2331_v43 }
  0x78   : > { %v1342_v31 = vld.sshfl [vmem:[#allocation1] sm:$0xff pattern:$0x73625140] }
  0x79   : > { %1400 = vmatmul.bf16.vlgmr.msrb.gmra.mxu3 %v1342_v31  ;;  %1482 = vst [vmem:[#allocation1] ss:$4 sm:$0xff] %v1451_v29 }
  0x7a   : > { %1485 = vst [vmem:[#allocation1 + $0x1] ss:$4 sm:$0xff] %v1455_v30  ;;  %1641 = vmatpush.bf16.msra.mxu1 %v2330_v44 }
  0x7b   : > { %1488 = vst [vmem:[#allocation1 + $0x2] ss:$4 sm:$0xff] %v1459_v32 }
  0x7c   : > { %1491 = vst [vmem:[#allocation1 + $0x3] ss:$4 sm:$0xff] %v1463_v33 }
  0x7e   : > { %1642 = vmatpush.bf16.msra.mxu1 %v2329_v47 }
  0x83   : > { %v1492_v34 = vld.sshfl [vmem:[#allocation1] sm:$0xff pattern:$0x73625140] }
  0x84   : > { %1550 = vmatmul.bf16.vlgmr.msra.gmra.mxu0 %v1492_v34 }
  0xa9   : > { %v455_v37 = vpop.f32.mrf.mxu0 }
  0xb1   : > { %v457_v42 = vpop.f32.mrf.mxu0 }
  0xb4   : > { %v530_v39 = vpop.f32.mrf.mxu1 }
  0xb5   : > { %v531_v48 = vadd.f32 %v530_v39, %v455_v37 }
  0xbc   : > { %v532_v46 = vpop.f32.mrf.mxu1 }
  0xbd   : > { %v533_v56 = vadd.f32 %v532_v46, %v457_v42 }
  0xc5   : > { %v685_v41 = vpop.f32.mrf.mxu2 }
  0xc6   : > { %v690_v51 = vadd.f32 %v685_v41, %v531_v48 }
  0xcd   : > { %v687_v49 = vpop.f32.mrf.mxu2 }
  0xce   : > { %v691_v59 = vadd.f32 %v687_v49, %v533_v56 }
  0xd0   : > { %v786_v45 = vpop.f32.mrf.mxu3 }
  0xd1   : > { %v791_v54 = vadd.f32 %v786_v45, %v690_v51 }
  0xd5   : > { %v968_v50 = vpop.f32.mrf.mxu0 }
  0xd6   : > { %v973_v58 = vadd.f32 %v968_v50, %v791_v54 }
  0xd8   : > { %v788_v52 = vpop.f32.mrf.mxu3 }
  0xd9   : > { %v792_v61 = vadd.f32 %v788_v52, %v691_v59 }
  0xdd   : > { %v970_v57 = vpop.f32.mrf.mxu0 }
  0xde   : > { %v974_v0 = vadd.f32 %v970_v57, %v792_v61 }
  0xe0   : > { %v1118_v53 = vpop.f32.mrf.mxu1 }
  0xe1   : > { %v1123_v62 = vadd.f32 %v1118_v53, %v973_v58 }
  0xe8   : > { %v1120_v63 = vpop.f32.mrf.mxu1 }
  0xe9   : > { %v1124_v6 = vadd.f32 %v1120_v63, %v974_v0 }
  0xf1   : > { %v1219_v55 = vpop.f32.mrf.mxu2 }
  0xf2   : > { %v1224_v1 = vadd.f32 %v1219_v55, %v1123_v62 }
  0xf9   : > { %v1221_v2 = vpop.f32.mrf.mxu2 }
  0xfa   : > { %v1225_v8 = vadd.f32 %v1221_v2, %v1124_v6 }
  0xfc   : > { %v1401_v60 = vpop.f32.mrf.mxu3 }
  0xfd   : > { %v1406_v7 = vadd.f32 %v1401_v60, %v1224_v1 }
 0x101   : > { %v1551_v5 = vpop.f32.mrf.mxu0 }
 0x102   : > { %v1556_v10 = vadd.f32 %v1551_v5, %v1406_v7 }
 0x104   : > { %v1403_v9 = vpop.f32.mrf.mxu3  ;;  %v1562_v14 = vadd.f32 %v2362_v11, %v1556_v10 }
 0x105   : > { %v1407_v12 = vadd.f32 %v1403_v9, %v1225_v8 }
 0x106   : > { %v1564_v17 = vmax.f32 %v1562_v14, 0.0 }
 0x109   : > { %v1553_v13 = vpop.f32.mrf.mxu0 }
 0x10a   : > { %v1557_v15 = vadd.f32 %v1553_v13, %v1407_v12 }
 0x10c   : > { %v1563_v16 = vadd.f32 %v2362_v11, %v1557_v15 }
 0x10e   : > { %v1565_v18 = vmax.f32 %v1563_v16, 0.0 }
 0x110   : > { %v1566_v19 = vpack.c.bf16 %v1565_v18, %v1564_v17 }
 0x112   : > { %1643 = vmatmul.bf16.vlgmr.msra.gmra.mxu1 %v1566_v19 }
 0x18f   : > { %v1644_v20 = vpop.f32.mrf.mxu1 }
 0x190   : > { %v1645_v21 = vadd.f32 %v2363_v3, %v1644_v20 }
 0x192   : > { %v1651_v22 = vrot.slane %v1645_v21, 4  ;;  %1655 = vst [vmem:[%s246_s29] sm:$0xf] %v1645_v21 }
 0x194   : > { %1656 = vst [vmem:[%s246_s29 + $0x4] sm:$0xf] %v1651_v22 }
 0x197   : > { %v1646_v23 = vpop.f32.mrf.mxu1 }
 0x198   : > { %v1647_v24 = vadd.f32 %v2363_v3, %v1646_v23 }
 0x19a   : > { %v1652_v25 = vrot.slane %v1647_v24, 4  ;;  %1657 = vst [vmem:[%s246_s29 + $0x8] sm:$0xf] %v1647_v24 }
 0x19c   : > { %1658 = vst [vmem:[%s246_s29 + $0xc] sm:$0xf] %v1652_v25 }
 0x19d PF: > { %s15_s20 = sadd.s32 1, %s2386_s20   ;;  %s2874_s18 = smov %s2382_s19 }
 0x19e   : > { %p12_p5 = scmp.ge.s32.totalorder %s15_s20, 4   ;;  %s2875_s19 = smov %s2877_s21 }
 0x1a0   :  { %14 = sbr.rel (!%p12_p5) target bundleno = 2 (0x2), region = 108 }

// kernel: faster_rcnn_forward.8
= control target key start
LH: loop header
LB: loop body
LE: loop exit
PB: predicated region body
PF: predicated region fallthrough
CT: control target
= control target key end

     0   :  { %v53_v2 = vmov 0.0   ;;  %s84_s0 = inlined_call_operand.vmem [shape: f32[8,128], index: 0, kind: input, shape index: {}]   ;;  %s85_s1 = inlined_call_operand.vmem [shape: f32[8,128], index: 1, kind: input, shape index: {}]   ;;  %s86_s2 = inlined_call_operand.vmem [shape: f32[8,128], index: 2, kind: output, shape index: {}]  }
   0x1   :  { %v11_v0 = vld [vmem:[%s84_s0] sm:$0xff]  ;;  %45 = vst [vmem:[%s86_s2 + $0x4] sm:$0xf] %v53_v2 }
   0x2   :  { %v12_v1 = vld [vmem:[%s85_s1] sm:$0xff]  ;;  %v14_v3 = vrot.slane %v11_v0, 6 }
   0x3   :  { %v27_v4 = vmin.f32 %v12_v1, 10.0 }
   0x4   :  { %v16_v5 = vsub.f32 %v11_v0, %v14_v3 }
   0x5   :  { %v28_v6 = vmul.f32 1.442695, %v27_v4 }
   0x6   :  { %v17_v7 = vmul.f32 0.5, %v16_v5  ;;  %v23_v8 = vrot.slane %v16_v5, 2 }
   0x7   :  { %51 = vpow2.f32 %v28_v6 }
   0x8   :  { %v19_v9 = vrot.slane %v17_v7, 2  ;;  %v25_v11 = vmul.f32 %v23_v8, %v12_v1 }
   0xa   :  { %v21_v10 = vadd.f32 %v19_v9, %v11_v0 }
   0xc   :  { %v26_v14 = vadd.f32 %v25_v11, %v21_v10 }
   0xd   :  { %v52_v12 = vpop.eup %51 }
   0xe   :  { %v30_v13 = vmul.f32 %v52_v12, %v16_v5 }
  0x10   :  { %v31_v15 = vmul.f32 0.5, %v30_v13 }
  0x12   :  { %v33_v16 = vrot.slane %v31_v15, 2 }
  0x14   :  { %v35_v17 = vsub.f32 %v26_v14, %v33_v16  ;;  %v40_v18 = vadd.f32 %v33_v16, %v26_v14 }
  0x16   :  { %v36_v19 = vmax.f32 %v35_v17, 0.0  ;;  %v41_v20 = vmax.f32 %v40_v18, 0.0 }
  0x18   :  { %v37_v21 = vmin.f32 %v36_v19, 16.0  ;;  %v42_v22 = vmin.f32 %v41_v20, 16.0 }
  0x1a   :  { %38 = vst [vmem:[%s86_s2] sm:$0x3] %v37_v21  }
  0x1b   :  { %43 = vst [vmem:[%s86_s2 + $0x2] sm:$0x3] %v42_v22  }

// kernel: faster_rcnn_forward.9
= control target key start
LH: loop header
LB: loop body
LE: loop exit
PB: predicated region body
PF: predicated region fallthrough
CT: control target
= control target key end

     0   :  { %s8219_s1 = inlined_call_operand.vmem [shape: bf16[6272,128], index: 1, kind: input, shape index: {}]   ;;  %s8220_s0 = inlined_call_operand.vmem [shape: bf16[16,6272], index: 0, kind: input, shape index: {}]   ;;  %s8221_s2 = inlined_call_operand.vmem [shape: f32[1,128], index: 2, kind: input, shape index: {}]   ;;  %s8222_s4 = inlined_call_operand.vmem [shape: f32[1,128], index: 4, kind: input, shape index: {}]   ;;  %s8223_s3 = inlined_call_operand.vmem [shape: bf16[128,128], index: 3, kind: input, shape index: {}]   ;;  %s8224_s5 = inlined_call_operand.vmem [shape: bf16[128,128], index: 5, kind: input, shape index: {}]   ;;  %s8225_s6 = inlined_call_operand.vmem [shape: f32[1,128], index: 6, kind: input, shape index: {}]   ;;  %s8226_s7 = inlined_call_operand.vmem [shape: f32[16,128], index: 7, kind: output, shape index: {}]  }
   0x1   :  { %v6208_v0 = vld [vmem:[%s8219_s1 + $0x38] sm:$0xff]  ;;  %v6207_v4 = vld [vmem:[%s8219_s1 + $0x30] sm:$0xff]  ;;  %v6206_v8 = vld [vmem:[%s8219_s1 + $0x28] sm:$0xff] }
   0x2   :  { %v6224_v1 = vld [vmem:[%s8219_s1 + $0xb8] sm:$0xff]  ;;  %3462 = vmatpush.bf16.msra.mxu0 %v6208_v0  ;;  %v6223_v5 = vld [vmem:[%s8219_s1 + $0xb0] sm:$0xff]  ;;  %v6222_v9 = vld [vmem:[%s8219_s1 + $0xa8] sm:$0xff] }
   0x3   :  { %v6216_v2 = vld [vmem:[%s8219_s1 + $0x78] sm:$0xff]  ;;  %3490 = vmatpush.bf16.msra.mxu2 %v6224_v1  ;;  %v6215_v6 = vld [vmem:[%s8219_s1 + $0x70] sm:$0xff]  ;;  %v6214_v10 = vld [vmem:[%s8219_s1 + $0x68] sm:$0xff] }
   0x4   :  { %v6232_v3 = vld [vmem:[%s8219_s1 + $0xf8] sm:$0xff]  ;;  %3476 = vmatpush.bf16.msra.mxu1 %v6216_v2  ;;  %v6231_v7 = vld [vmem:[%s8219_s1 + $0xf0] sm:$0xff]  ;;  %v6230_v11 = vld [vmem:[%s8219_s1 + $0xe8] sm:$0xff] }
   0x5   :  { %3504 = vmatpush.bf16.msra.mxu3 %v6232_v3  ;;  %v6205_v12 = vld [vmem:[%s8219_s1 + $0x20] sm:$0xff]  ;;  %v6204_v16 = vld [vmem:[%s8219_s1 + $0x18] sm:$0xff]  ;;  %v6203_v20 = vld [vmem:[%s8219_s1 + $0x10] sm:$0xff] }
   0x6   :  { %3463 = vmatpush.bf16.msra.mxu0 %v6207_v4  ;;  %v6221_v13 = vld [vmem:[%s8219_s1 + $0xa0] sm:$0xff]  ;;  %v6220_v17 = vld [vmem:[%s8219_s1 + $0x98] sm:$0xff]  ;;  %v6219_v21 = vld [vmem:[%s8219_s1 + $0x90] sm:$0xff] }
   0x7   :  { %3491 = vmatpush.bf16.msra.mxu2 %v6223_v5  ;;  %v6213_v14 = vld [vmem:[%s8219_s1 + $0x60] sm:$0xff]  ;;  %v6212_v18 = vld [vmem:[%s8219_s1 + $0x58] sm:$0xff]  ;;  %v6211_v22 = vld [vmem:[%s8219_s1 + $0x50] sm:$0xff] }
   0x8   :  { %3477 = vmatpush.bf16.msra.mxu1 %v6215_v6  ;;  %v6229_v15 = vld [vmem:[%s8219_s1 + $0xe0] sm:$0xff]  ;;  %v6228_v19 = vld [vmem:[%s8219_s1 + $0xd8] sm:$0xff]  ;;  %v6227_v23 = vld [vmem:[%s8219_s1 + $0xd0] sm:$0xff] }
   0x9   :  { %3505 = vmatpush.bf16.msra.mxu3 %v6231_v7  ;;  %v6202_v24 = vld [vmem:[%s8219_s1 + $0x8] sm:$0xff]  ;;  %v6201_v28 = vld [vmem:[%s8219_s1] sm:$0xff]  ;;  %v6240_v30 = vld [vmem:[%s8219_s1 + $0x138] sm:$0xff] }
   0xa   :  { %3464 = vmatpush.bf16.msra.mxu0 %v6206_v8  ;;  %v6218_v25 = vld [vmem:[%s8219_s1 + $0x88] sm:$0xff]  ;;  %v6217_v29 = vld [vmem:[%s8219_s1 + $0x80] sm:$0xff]  ;;  %v6256_v31 = vld [vmem:[%s8219_s1 + $0x1b8] sm:$0xff] }
   0xb   :  { %3492 = vmatpush.bf16.msra.mxu2 %v6222_v9  ;;  %v6210_v26 = vld [vmem:[%s8219_s1 + $0x48] sm:$0xff]  ;;  %v6209_v32 = vld [vmem:[%s8219_s1 + $0x40] sm:$0xff]  ;;  %v6248_v38 = vld [vmem:[%s8219_s1 + $0x178] sm:$0xff] }
   0xc   :  { %3478 = vmatpush.bf16.msra.mxu1 %v6214_v10  ;;  %v6226_v27 = vld [vmem:[%s8219_s1 + $0xc8] sm:$0xff]  ;;  %v6225_v33 = vld [vmem:[%s8219_s1 + $0xc0] sm:$0xff]  ;;  %v6264_v39 = vld [vmem:[%s8219_s1 + $0x1f8] sm:$0xff] }
   0xd   :  { %3506 = vmatpush.bf16.msra.mxu3 %v6230_v11  ;;  %v4326_v34 = vld [vmem:[%s8220_s0] sm:$0xf]  ;;  %v6176_v35 = vld [vmem:[%s8220_s0 + $0xc0] sm:$0xf0]  ;;  %v4334_v36 = vld [vmem:[%s8220_s0 + $0x8] sm:$0xf] }
   0xe   :  { %3465 = vmatpush.bf16.msra.mxu0 %v6205_v12  ;;  %v6177_v37 = vld [vmem:[%s8220_s0 + $0xc8] sm:$0xf0]  ;;  %v6152_v40 = vld [vmem:[%s8220_s0 + $0x4] sm:$0xf]  ;;  %v4328_v41 = vld [vmem:[%s8220_s0 + $0xc4] sm:$0xf0]  ;;  %v4327_v44 = vor.u32 %v6176_v35, %v4326_v34 }
   0xf   :  { %3493 = vmatpush.bf16.msra.mxu2 %v6221_v13  ;;  %v6153_v42 = vld [vmem:[%s8220_s0 + $0xc] sm:$0xf]  ;;  %v4336_v43 = vld [vmem:[%s8220_s0 + $0xcc] sm:$0xf0]  ;;  %v4335_v45 = vor.u32 %v6177_v37, %v4334_v36  ;;  %v4331_v48 = vor.u32 %v6152_v40, %v4328_v41  ;;  %v6237_v56 = vld [vmem:[%s8219_s1 + $0x120] sm:$0xff] }
  0x10   :  { %3479 = vmatpush.bf16.msra.mxu1 %v6213_v14  ;;  %v6239_v46 = vld [vmem:[%s8219_s1 + $0x130] sm:$0xff]  ;;  %v4339_v49 = vor.u32 %v6153_v42, %v4336_v43  ;;  %v6238_v52 = vld [vmem:[%s8219_s1 + $0x128] sm:$0xff]  ;;  %v6253_v57 = vld [vmem:[%s8219_s1 + $0x1a0] sm:$0xff] }
  0x11   :  { %3507 = vmatpush.bf16.msra.mxu3 %v6229_v15  ;;  %v6255_v47 = vld [vmem:[%s8219_s1 + $0x1b0] sm:$0xff]  ;;  %v6254_v53 = vld [vmem:[%s8219_s1 + $0x1a8] sm:$0xff]  ;;  %v6245_v58 = vld [vmem:[%s8219_s1 + $0x160] sm:$0xff] }
  0x12   :  { %3466 = vmatpush.bf16.msra.mxu0 %v6204_v16  ;;  %v6247_v50 = vld [vmem:[%s8219_s1 + $0x170] sm:$0xff]  ;;  %v6246_v54 = vld [vmem:[%s8219_s1 + $0x168] sm:$0xff]  ;;  %v6261_v59 = vld [vmem:[%s8219_s1 + $0x1e0] sm:$0xff] }
  0x13   :  { %3494 = vmatpush.bf16.msra.mxu2 %v6220_v17  ;;  %v6263_v51 = vld [vmem:[%s8219_s1 + $0x1f0] sm:$0xff]  ;;  %v6262_v55 = vld [vmem:[%s8219_s1 + $0x1e8] sm:$0xff]  ;;  %v6236_v60 = vld [vmem:[%s8219_s1 + $0x118] sm:$0xff] }
  0x14   :  { %3480 = vmatpush.bf16.msra.mxu1 %v6212_v18  ;;  %v6252_v61 = vld [vmem:[%s8219_s1 + $0x198] sm:$0xff]  ;;  %v6235_v0 = vld [vmem:[%s8219_s1 + $0x110] sm:$0xff]  ;;  %v6234_v4 = vld [vmem:[%s8219_s1 + $0x108] sm:$0xff] }
  0x15   :  { %3508 = vmatpush.bf16.msra.mxu3 %v6228_v19  ;;  %v6244_v62 = vld [vmem:[%s8219_s1 + $0x158] sm:$0xff]  ;;  %v6251_v1 = vld [vmem:[%s8219_s1 + $0x190] sm:$0xff]  ;;  %v6250_v5 = vld [vmem:[%s8219_s1 + $0x188] sm:$0xff] }
  0x16   :  { %3467 = vmatpush.bf16.msra.mxu0 %v6203_v20  ;;  %v6260_v63 = vld [vmem:[%s8219_s1 + $0x1d8] sm:$0xff]  ;;  %v6243_v2 = vld [vmem:[%s8219_s1 + $0x150] sm:$0xff]  ;;  %v6242_v6 = vld [vmem:[%s8219_s1 + $0x148] sm:$0xff] }
  0x17   :  { %3495 = vmatpush.bf16.msra.mxu2 %v6219_v21  ;;  %v6259_v3 = vld [vmem:[%s8219_s1 + $0x1d0] sm:$0xff]  ;;  %v6258_v7 = vld [vmem:[%s8219_s1 + $0x1c8] sm:$0xff]  ;;  %v6233_v8 = vld [vmem:[%s8219_s1 + $0x100] sm:$0xff] }
  0x18   :  { %3481 = vmatpush.bf16.msra.mxu1 %v6211_v22  ;;  %v6249_v9 = vld [vmem:[%s8219_s1 + $0x180] sm:$0xff]  ;;  %v6272_v10 = vld [vmem:[%s8219_s1 + $0x238] sm:$0xff]  ;;  %v4342_v12 = vld [vmem:[%s8220_s0 + $0x10] sm:$0xf] }
  0x19   :  { %3509 = vmatpush.bf16.msra.mxu3 %v6227_v23  ;;  %v6288_v11 = vld [vmem:[%s8219_s1 + $0x2b8] sm:$0xff]  ;;  %v6178_v13 = vld [vmem:[%s8220_s0 + $0xd0] sm:$0xf0]  ;;  %v6241_v16 = vld [vmem:[%s8219_s1 + $0x140] sm:$0xff] }
  0x1a   :  { %3468 = vmatpush.bf16.msra.mxu0 %v6202_v24  ;;  %v4350_v14 = vld [vmem:[%s8220_s0 + $0x18] sm:$0xf]  ;;  %v6179_v15 = vld [vmem:[%s8220_s0 + $0xd8] sm:$0xf0]  ;;  %v6257_v17 = vld [vmem:[%s8219_s1 + $0x1c0] sm:$0xff]  ;;  %v4343_v22 = vor.u32 %v6178_v13, %v4342_v12 }
  0x1b   :  { %3496 = vmatpush.bf16.msra.mxu2 %v6218_v25  ;;  %v6154_v18 = vld [vmem:[%s8220_s0 + $0x14] sm:$0xf]  ;;  %v4344_v19 = vld [vmem:[%s8220_s0 + $0xd4] sm:$0xf0]  ;;  %v6155_v20 = vld [vmem:[%s8220_s0 + $0x1c] sm:$0xf]  ;;  %v4351_v23 = vor.u32 %v6179_v15, %v4350_v14 }
  0x1c   :  { %3482 = vmatpush.bf16.msra.mxu1 %v6210_v26  ;;  %v4352_v21 = vld [vmem:[%s8220_s0 + $0xdc] sm:$0xf0]  ;;  %v6280_v24 = vld [vmem:[%s8219_s1 + $0x278] sm:$0xff]  ;;  %v4347_v26 = vor.u32 %v6154_v18, %v4344_v19  ;;  %v6278_v34 = vld [vmem:[%s8219_s1 + $0x268] sm:$0xff] }
  0x1d   :  { %3510 = vmatpush.bf16.msra.mxu3 %v6226_v27  ;;  %v6296_v25 = vld [vmem:[%s8219_s1 + $0x2f8] sm:$0xff]  ;;  %v4355_v27 = vor.u32 %v6155_v20, %v4352_v21  ;;  %v6294_v35 = vld [vmem:[%s8219_s1 + $0x2e8] sm:$0xff]  ;;  %v6269_v36 = vld [vmem:[%s8219_s1 + $0x220] sm:$0xff] }
  0x1e   :  { %3469 = vmatpush.bf16.msra.mxu0 %v6201_v28  ;;  %v6271_v28 = vld [vmem:[%s8219_s1 + $0x230] sm:$0xff]  ;;  %v6285_v37 = vld [vmem:[%s8219_s1 + $0x2a0] sm:$0xff]  ;;  %v6268_v40 = vld [vmem:[%s8219_s1 + $0x218] sm:$0xff] }
  0x1f   :  { %3497 = vmatpush.bf16.msra.mxu2 %v6217_v29  ;;  %v6287_v29 = vld [vmem:[%s8219_s1 + $0x2b0] sm:$0xff]  ;;  %v6284_v41 = vld [vmem:[%s8219_s1 + $0x298] sm:$0xff]  ;;  %v6302_v12 = vld [vmem:[%s8219_s1 + $0x328] sm:$0xff] }
  0x20   :  { %3483 = vmatpush.bf16.msra.mxu1 %v6209_v32  ;;  %v6270_v32 = vld [vmem:[%s8219_s1 + $0x228] sm:$0xff]  ;;  %v6276_v42 = vld [vmem:[%s8219_s1 + $0x258] sm:$0xff]  ;;  %v6309_v18 = vld [vmem:[%s8219_s1 + $0x360] sm:$0xff] }
  0x21   :  { %3511 = vmatpush.bf16.msra.mxu3 %v6225_v33  ;;  %3470 = vmatmul.bf16.vlgmr.msra.gmra.mxu0 %v4327_v44  ;;  %v6286_v33 = vld [vmem:[%s8219_s1 + $0x2a8] sm:$0xff]  ;;  %v6292_v43 = vld [vmem:[%s8219_s1 + $0x2d8] sm:$0xff]  ;;  %v6267_v44 = vld [vmem:[%s8219_s1 + $0x210] sm:$0xff] }
  0x22   :  { %3518 = vmatpush.bf16.msrb.mxu0 %v6240_v30  ;;  %3498 = vmatmul.bf16.vlgmr.msra.gmra.mxu2 %v4335_v45  ;;  %v6279_v30 = vld [vmem:[%s8219_s1 + $0x270] sm:$0xff]  ;;  %v6318_v13 = vld [vmem:[%s8219_s1 + $0x3a8] sm:$0xff]  ;;  %v6325_v19 = vld [vmem:[%s8219_s1 + $0x3e0] sm:$0xff] }
  0x23   :  { %3546 = vmatpush.bf16.msrb.mxu2 %v6256_v31  ;;  %3484 = vmatmul.bf16.vlgmr.msra.gmra.mxu1 %v4331_v48  ;;  %v6295_v31 = vld [vmem:[%s8219_s1 + $0x2f0] sm:$0xff]  ;;  %v6266_v48 = vld [vmem:[%s8219_s1 + $0x208] sm:$0xff]  ;;  %v6300_v20 = vld [vmem:[%s8219_s1 + $0x318] sm:$0xff] }
  0x24   :  { %3532 = vmatpush.bf16.msrb.mxu1 %v6248_v38  ;;  %3512 = vmatmul.bf16.vlgmr.msra.gmra.mxu3 %v4339_v49  ;;  %v6277_v38 = vld [vmem:[%s8219_s1 + $0x260] sm:$0xff]  ;;  %v6283_v45 = vld [vmem:[%s8219_s1 + $0x290] sm:$0xff]  ;;  %v6282_v49 = vld [vmem:[%s8219_s1 + $0x288] sm:$0xff] }
  0x25   :  { %3560 = vmatpush.bf16.msrb.mxu3 %v6264_v39  ;;  %v6293_v39 = vld [vmem:[%s8219_s1 + $0x2e0] sm:$0xff]  ;;  %v6310_v14 = vld [vmem:[%s8219_s1 + $0x368] sm:$0xff]  ;;  %v6316_v21 = vld [vmem:[%s8219_s1 + $0x398] sm:$0xff] }
  0x26   :  { %3519 = vmatpush.bf16.msrb.mxu0 %v6239_v46  ;;  %v6275_v46 = vld [vmem:[%s8219_s1 + $0x250] sm:$0xff]  ;;  %v6326_v15 = vld [vmem:[%s8219_s1 + $0x3e8] sm:$0xff] }
  0x27   :  { %3547 = vmatpush.bf16.msrb.mxu2 %v6255_v47  ;;  %v6291_v47 = vld [vmem:[%s8219_s1 + $0x2d0] sm:$0xff] }
  0x28   :  { %3533 = vmatpush.bf16.msrb.mxu1 %v6247_v50  ;;  %v6274_v50 = vld [vmem:[%s8219_s1 + $0x248] sm:$0xff] }
  0x29   :  { %3561 = vmatpush.bf16.msrb.mxu3 %v6263_v51  ;;  %v6290_v51 = vld [vmem:[%s8219_s1 + $0x2c8] sm:$0xff] }
  0x2a   :  { %3520 = vmatpush.bf16.msrb.mxu0 %v6238_v52  ;;  %v6265_v52 = vld [vmem:[%s8219_s1 + $0x200] sm:$0xff] }
  0x2b   :  { %3548 = vmatpush.bf16.msrb.mxu2 %v6254_v53  ;;  %v6281_v53 = vld [vmem:[%s8219_s1 + $0x280] sm:$0xff] }
  0x2c   :  { %3534 = vmatpush.bf16.msrb.mxu1 %v6246_v54  ;;  %v6304_v54 = vld [vmem:[%s8219_s1 + $0x338] sm:$0xff] }
  0x2d   :  { %3562 = vmatpush.bf16.msrb.mxu3 %v6262_v55  ;;  %v6320_v55 = vld [vmem:[%s8219_s1 + $0x3b8] sm:$0xff] }
  0x2e   :  { %3521 = vmatpush.bf16.msrb.mxu0 %v6237_v56  ;;  %v4358_v56 = vld [vmem:[%s8220_s0 + $0x20] sm:$0xf] }
  0x2f   :  { %3549 = vmatpush.bf16.msrb.mxu2 %v6253_v57  ;;  %v6180_v57 = vld [vmem:[%s8220_s0 + $0xe0] sm:$0xf0] }
  0x30   :  { %3535 = vmatpush.bf16.msrb.mxu1 %v6245_v58  ;;  %v4366_v58 = vld [vmem:[%s8220_s0 + $0x28] sm:$0xf] }
  0x31   :  { %3563 = vmatpush.bf16.msrb.mxu3 %v6261_v59  ;;  %v6181_v59 = vld [vmem:[%s8220_s0 + $0xe8] sm:$0xf0] }
  0x32   :  { %3522 = vmatpush.bf16.msrb.mxu0 %v6236_v60  ;;  %v6273_v60 = vld [vmem:[%s8219_s1 + $0x240] sm:$0xff] }
  0x33   :  { %3550 = vmatpush.bf16.msrb.mxu2 %v6252_v61  ;;  %v6289_v61 = vld [vmem:[%s8219_s1 + $0x2c0] sm:$0xff] }
  0x34   :  { %3536 = vmatpush.bf16.msrb.mxu1 %v6244_v62  ;;  %v6156_v62 = vld [vmem:[%s8220_s0 + $0x24] sm:$0xf] }
  0x35   :  { %3564 = vmatpush.bf16.msrb.mxu3 %v6260_v63  ;;  %v4360_v63 = vld [vmem:[%s8220_s0 + $0xe4] sm:$0xf0] }
  0x36   :  { %3523 = vmatpush.bf16.msrb.mxu0 %v6235_v0  ;;  %v6157_v0 = vld [vmem:[%s8220_s0 + $0x2c] sm:$0xf] }
  0x37   :  { %3551 = vmatpush.bf16.msrb.mxu2 %v6251_v1  ;;  %v4368_v1 = vld [vmem:[%s8220_s0 + $0xec] sm:$0xf0] }
  0x38   :  { %3537 = vmatpush.bf16.msrb.mxu1 %v6243_v2  ;;  %v4359_v2 = vor.u32 %v6180_v57, %v4358_v56  ;;  %v6334_v56 = vld [vmem:[%s8219_s1 + $0x428] sm:$0xff] }
  0x39   :  { %3565 = vmatpush.bf16.msrb.mxu3 %v6259_v3  ;;  %v4367_v3 = vor.u32 %v6181_v59, %v4366_v58  ;;  %v6350_v57 = vld [vmem:[%s8219_s1 + $0x4a8] sm:$0xff] }
  0x3a   :  { %3524 = vmatpush.bf16.msrb.mxu0 %v6234_v4  ;;  %v6312_v4 = vld [vmem:[%s8219_s1 + $0x378] sm:$0xff]  ;;  %v6342_v58 = vld [vmem:[%s8219_s1 + $0x468] sm:$0xff] }
  0x3b   :  { %3552 = vmatpush.bf16.msrb.mxu2 %v6250_v5  ;;  %v6328_v5 = vld [vmem:[%s8219_s1 + $0x3f8] sm:$0xff]  ;;  %v6358_v59 = vld [vmem:[%s8219_s1 + $0x4e8] sm:$0xff] }
  0x3c   :  { %3538 = vmatpush.bf16.msrb.mxu1 %v6242_v6  ;;  %v4363_v6 = vor.u32 %v6156_v62, %v4360_v63  ;;  %v6341_v62 = vld [vmem:[%s8219_s1 + $0x460] sm:$0xff] }
  0x3d   :  { %3566 = vmatpush.bf16.msrb.mxu3 %v6258_v7  ;;  %v4371_v7 = vor.u32 %v6157_v0, %v4368_v1  ;;  %v6357_v63 = vld [vmem:[%s8219_s1 + $0x4e0] sm:$0xff]  ;;  %v6332_v0 = vld [vmem:[%s8219_s1 + $0x418] sm:$0xff] }
  0x3e   :  { %3525 = vmatpush.bf16.msrb.mxu0 %v6233_v8  ;;  %v6303_v8 = vld [vmem:[%s8219_s1 + $0x330] sm:$0xff]  ;;  %v6348_v1 = vld [vmem:[%s8219_s1 + $0x498] sm:$0xff] }
  0x3f   :  { %3553 = vmatpush.bf16.msrb.mxu2 %v6249_v9  ;;  %v6319_v9 = vld [vmem:[%s8219_s1 + $0x3b0] sm:$0xff] }
  0x40   :  { %3539 = vmatpush.bf16.msrb.mxu1 %v6241_v16  ;;  %v6301_v16 = vld [vmem:[%s8219_s1 + $0x320] sm:$0xff] }
  0x41   :  { %3567 = vmatpush.bf16.msrb.mxu3 %v6257_v17  ;;  %3526 = vmatmul.bf16.vlgmr.msrb.gmra.mxu0 %v4343_v22  ;;  %v6317_v17 = vld [vmem:[%s8219_s1 + $0x3a0] sm:$0xff]  ;;  %v6308_v22 = vld [vmem:[%s8219_s1 + $0x358] sm:$0xff] }
  0x42   :  { %3574 = vmatpush.bf16.msra.mxu0 %v6272_v10  ;;  %3554 = vmatmul.bf16.vlgmr.msrb.gmra.mxu2 %v4351_v23  ;;  %v6311_v10 = vld [vmem:[%s8219_s1 + $0x370] sm:$0xff]  ;;  %v6324_v23 = vld [vmem:[%s8219_s1 + $0x3d8] sm:$0xff] }
  0x43   :  { %3602 = vmatpush.bf16.msra.mxu2 %v6288_v11  ;;  %3540 = vmatmul.bf16.vlgmr.msrb.gmra.mxu1 %v4347_v26  ;;  %v6327_v11 = vld [vmem:[%s8219_s1 + $0x3f0] sm:$0xff] }
  0x44   :  { %3588 = vmatpush.bf16.msra.mxu1 %v6280_v24  ;;  %3568 = vmatmul.bf16.vlgmr.msrb.gmra.mxu3 %v4355_v27  ;;  %v6299_v24 = vld [vmem:[%s8219_s1 + $0x310] sm:$0xff] }
  0x45   :  { %3616 = vmatpush.bf16.msra.mxu3 %v6296_v25  ;;  %v6315_v25 = vld [vmem:[%s8219_s1 + $0x390] sm:$0xff] }
  0x46   :  { %3575 = vmatpush.bf16.msra.mxu0 %v6271_v28  ;;  %v6307_v26 = vld [vmem:[%s8219_s1 + $0x350] sm:$0xff]  ;;  %v6298_v28 = vld [vmem:[%s8219_s1 + $0x308] sm:$0xff] }
  0x47   :  { %3603 = vmatpush.bf16.msra.mxu2 %v6287_v29  ;;  %v6323_v27 = vld [vmem:[%s8219_s1 + $0x3d0] sm:$0xff]  ;;  %v6314_v29 = vld [vmem:[%s8219_s1 + $0x388] sm:$0xff] }
  0x48   :  { %3589 = vmatpush.bf16.msra.mxu1 %v6279_v30  ;;  %v6306_v30 = vld [vmem:[%s8219_s1 + $0x348] sm:$0xff] }
  0x49   :  { %3617 = vmatpush.bf16.msra.mxu3 %v6295_v31  ;;  %v6322_v31 = vld [vmem:[%s8219_s1 + $0x3c8] sm:$0xff] }
  0x4a   :  { %3576 = vmatpush.bf16.msra.mxu0 %v6270_v32  ;;  %v6297_v32 = vld [vmem:[%s8219_s1 + $0x300] sm:$0xff] }
  0x4b   :  { %3604 = vmatpush.bf16.msra.mxu2 %v6286_v33  ;;  %v6313_v33 = vld [vmem:[%s8219_s1 + $0x380] sm:$0xff] }
  0x4c   :  { %3590 = vmatpush.bf16.msra.mxu1 %v6278_v34  ;;  %v6336_v34 = vld [vmem:[%s8219_s1 + $0x438] sm:$0xff] }
  0x4d   :  { %3618 = vmatpush.bf16.msra.mxu3 %v6294_v35  ;;  %v6352_v35 = vld [vmem:[%s8219_s1 + $0x4b8] sm:$0xff] }
  0x4e   :  { %3577 = vmatpush.bf16.msra.mxu0 %v6269_v36  ;;  %v4374_v36 = vld [vmem:[%s8220_s0 + $0x30] sm:$0xf] }
  0x4f   :  { %3605 = vmatpush.bf16.msra.mxu2 %v6285_v37  ;;  %v6182_v37 = vld [vmem:[%s8220_s0 + $0xf0] sm:$0xf0] }
  0x50   :  { %3591 = vmatpush.bf16.msra.mxu1 %v6277_v38  ;;  %v4382_v38 = vld [vmem:[%s8220_s0 + $0x38] sm:$0xf] }
  0x51   :  { %3619 = vmatpush.bf16.msra.mxu3 %v6293_v39  ;;  %v6183_v39 = vld [vmem:[%s8220_s0 + $0xf8] sm:$0xf0] }
  0x52   :  { %3578 = vmatpush.bf16.msra.mxu0 %v6268_v40  ;;  %v6305_v40 = vld [vmem:[%s8219_s1 + $0x340] sm:$0xff] }
  0x53   :  { %3606 = vmatpush.bf16.msra.mxu2 %v6284_v41  ;;  %v6321_v41 = vld [vmem:[%s8219_s1 + $0x3c0] sm:$0xff] }
  0x54   :  { %3592 = vmatpush.bf16.msra.mxu1 %v6276_v42  ;;  %v6158_v42 = vld [vmem:[%s8220_s0 + $0x34] sm:$0xf] }
  0x55   :  { %3620 = vmatpush.bf16.msra.mxu3 %v6292_v43  ;;  %v4376_v43 = vld [vmem:[%s8220_s0 + $0xf4] sm:$0xf0] }
  0x56   :  { %3579 = vmatpush.bf16.msra.mxu0 %v6267_v44  ;;  %v6159_v44 = vld [vmem:[%s8220_s0 + $0x3c] sm:$0xf] }
  0x57   :  { %3607 = vmatpush.bf16.msra.mxu2 %v6283_v45  ;;  %v4384_v45 = vld [vmem:[%s8220_s0 + $0xfc] sm:$0xf0] }
  0x58   :  { %3593 = vmatpush.bf16.msra.mxu1 %v6275_v46  ;;  %v4375_v46 = vor.u32 %v6182_v37, %v4374_v36  ;;  %v6366_v36 = vld [vmem:[%s8219_s1 + $0x528] sm:$0xff] }
  0x59   :  { %3621 = vmatpush.bf16.msra.mxu3 %v6291_v47  ;;  %v4383_v47 = vor.u32 %v6183_v39, %v4382_v38  ;;  %v6382_v37 = vld [vmem:[%s8219_s1 + $0x5a8] sm:$0xff]  ;;  %v7285_v38 = vld [vmem:[%s8221_s2] ss:$0 sm:$0xff] }
  0x5a   :  { %3580 = vmatpush.bf16.msra.mxu0 %v6266_v48  ;;  %v6344_v48 = vld [vmem:[%s8219_s1 + $0x478] sm:$0xff]  ;;  %v6374_v39 = vld [vmem:[%s8219_s1 + $0x568] sm:$0xff] }
  0x5b   :  { %3608 = vmatpush.bf16.msra.mxu2 %v6282_v49  ;;  %v6360_v49 = vld [vmem:[%s8219_s1 + $0x4f8] sm:$0xff] }
  0x5c   :  { %3594 = vmatpush.bf16.msra.mxu1 %v6274_v50  ;;  %v4379_v50 = vor.u32 %v6158_v42, %v4376_v43  ;;  %v6381_v42 = vld [vmem:[%s8219_s1 + $0x5a0] sm:$0xff] }
  0x5d   :  { %3622 = vmatpush.bf16.msra.mxu3 %v6290_v51  ;;  %v4387_v51 = vor.u32 %v6159_v44, %v4384_v45  ;;  %v6373_v45 = vld [vmem:[%s8219_s1 + $0x560] sm:$0xff] }
  0x5e   :  { %3581 = vmatpush.bf16.msra.mxu0 %v6265_v52  ;;  %v6335_v52 = vld [vmem:[%s8219_s1 + $0x430] sm:$0xff] }
  0x5f   :  { %3609 = vmatpush.bf16.msra.mxu2 %v6281_v53  ;;  %v6351_v53 = vld [vmem:[%s8219_s1 + $0x4b0] sm:$0xff] }
  0x60   :  { %3595 = vmatpush.bf16.msra.mxu1 %v6273_v60  ;;  %v6333_v60 = vld [vmem:[%s8219_s1 + $0x420] sm:$0xff] }
  0x61   :  { %3623 = vmatpush.bf16.msra.mxu3 %v6289_v61  ;;  %3582 = vmatmul.bf16.vlgmr.msra.gmra.mxu0 %v4359_v2  ;;  %v6349_v61 = vld [vmem:[%s8219_s1 + $0x4a0] sm:$0xff]  ;;  %v6340_v2 = vld [vmem:[%s8219_s1 + $0x458] sm:$0xff] }
  0x62   :  { %3630 = vmatpush.bf16.msrb.mxu0 %v6304_v54  ;;  %3610 = vmatmul.bf16.vlgmr.msra.gmra.mxu2 %v4367_v3  ;;  %v6343_v54 = vld [vmem:[%s8219_s1 + $0x470] sm:$0xff]  ;;  %v6356_v3 = vld [vmem:[%s8219_s1 + $0x4d8] sm:$0xff] }
  0x63   :  { %3658 = vmatpush.bf16.msrb.mxu2 %v6320_v55  ;;  %3596 = vmatmul.bf16.vlgmr.msra.gmra.mxu1 %v4363_v6  ;;  %v6359_v55 = vld [vmem:[%s8219_s1 + $0x4f0] sm:$0xff] }
  0x64   :  { %3644 = vmatpush.bf16.msrb.mxu1 %v6312_v4  ;;  %3624 = vmatmul.bf16.vlgmr.msra.gmra.mxu3 %v4371_v7  ;;  %v6331_v4 = vld [vmem:[%s8219_s1 + $0x410] sm:$0xff] }
  0x65   :  { %3672 = vmatpush.bf16.msrb.mxu3 %v6328_v5  ;;  %v6347_v5 = vld [vmem:[%s8219_s1 + $0x490] sm:$0xff] }
  0x66   :  { %3631 = vmatpush.bf16.msrb.mxu0 %v6303_v8  ;;  %v6339_v6 = vld [vmem:[%s8219_s1 + $0x450] sm:$0xff]  ;;  %v6330_v8 = vld [vmem:[%s8219_s1 + $0x408] sm:$0xff] }
  0x67   :  { %3659 = vmatpush.bf16.msrb.mxu2 %v6319_v9  ;;  %v6355_v7 = vld [vmem:[%s8219_s1 + $0x4d0] sm:$0xff]  ;;  %v6346_v9 = vld [vmem:[%s8219_s1 + $0x488] sm:$0xff] }
  0x68   :  { %3645 = vmatpush.bf16.msrb.mxu1 %v6311_v10  ;;  %v6338_v10 = vld [vmem:[%s8219_s1 + $0x448] sm:$0xff] }
  0x69   :  { %3673 = vmatpush.bf16.msrb.mxu3 %v6327_v11  ;;  %v6354_v11 = vld [vmem:[%s8219_s1 + $0x4c8] sm:$0xff] }
  0x6a   :  { %3632 = vmatpush.bf16.msrb.mxu0 %v6302_v12  ;;  %v6329_v12 = vld [vmem:[%s8219_s1 + $0x400] sm:$0xff] }
  0x6b   :  { %3660 = vmatpush.bf16.msrb.mxu2 %v6318_v13  ;;  %v6345_v13 = vld [vmem:[%s8219_s1 + $0x480] sm:$0xff] }
  0x6c   :  { %3646 = vmatpush.bf16.msrb.mxu1 %v6310_v14  ;;  %v6368_v14 = vld [vmem:[%s8219_s1 + $0x538] sm:$0xff] }
  0x6d   :  { %3674 = vmatpush.bf16.msrb.mxu3 %v6326_v15  ;;  %v6384_v15 = vld [vmem:[%s8219_s1 + $0x5b8] sm:$0xff] }
  0x6e   :  { %3633 = vmatpush.bf16.msrb.mxu0 %v6301_v16  ;;  %v4390_v16 = vld [vmem:[%s8220_s0 + $0x40] sm:$0xf] }
  0x6f   :  { %3661 = vmatpush.bf16.msrb.mxu2 %v6317_v17  ;;  %v6184_v17 = vld [vmem:[%s8220_s0 + $0x100] sm:$0xf0] }
  0x70   :  { %3647 = vmatpush.bf16.msrb.mxu1 %v6309_v18  ;;  %v4398_v18 = vld [vmem:[%s8220_s0 + $0x48] sm:$0xf] }
  0x71   :  { %3675 = vmatpush.bf16.msrb.mxu3 %v6325_v19  ;;  %v6185_v19 = vld [vmem:[%s8220_s0 + $0x108] sm:$0xf0] }
  0x72   :  { %3634 = vmatpush.bf16.msrb.mxu0 %v6300_v20  ;;  %v6337_v20 = vld [vmem:[%s8219_s1 + $0x440] sm:$0xff] }
  0x73   :  { %3662 = vmatpush.bf16.msrb.mxu2 %v6316_v21  ;;  %v6353_v21 = vld [vmem:[%s8219_s1 + $0x4c0] sm:$0xff] }
  0x74   :  { %3648 = vmatpush.bf16.msrb.mxu1 %v6308_v22  ;;  %v6160_v22 = vld [vmem:[%s8220_s0 + $0x44] sm:$0xf] }
  0x75   :  { %3676 = vmatpush.bf16.msrb.mxu3 %v6324_v23  ;;  %v4392_v23 = vld [vmem:[%s8220_s0 + $0x104] sm:$0xf0] }
  0x76   :  { %3635 = vmatpush.bf16.msrb.mxu0 %v6299_v24  ;;  %v6161_v24 = vld [vmem:[%s8220_s0 + $0x4c] sm:$0xf] }
  0x77   :  { %3663 = vmatpush.bf16.msrb.mxu2 %v6315_v25  ;;  %v4400_v25 = vld [vmem:[%s8220_s0 + $0x10c] sm:$0xf0] }
  0x78   :  { %3649 = vmatpush.bf16.msrb.mxu1 %v6307_v26  ;;  %v4391_v26 = vor.u32 %v6184_v17, %v4390_v16 }
  0x79   :  { %3677 = vmatpush.bf16.msrb.mxu3 %v6323_v27  ;;  %v4399_v27 = vor.u32 %v6185_v19, %v4398_v18  ;;  %v6408_v18 = vld [vmem:[%s8219_s1 + $0x678] sm:$0xff] }
  0x7a   :  { %3636 = vmatpush.bf16.msrb.mxu0 %v6298_v28  ;;  %v6376_v28 = vld [vmem:[%s8219_s1 + $0x578] sm:$0xff] }
  0x7b   :  { %3664 = vmatpush.bf16.msrb.mxu2 %v6314_v29  ;;  %v6392_v29 = vld [vmem:[%s8219_s1 + $0x5f8] sm:$0xff] }
  0x7c   :  { %3650 = vmatpush.bf16.msrb.mxu1 %v6306_v30  ;;  %v4395_v30 = vor.u32 %v6160_v22, %v4392_v23  ;;  %v6424_v19 = vld [vmem:[%s8219_s1 + $0x6f8] sm:$0xff]  ;;  %v6399_v23 = vld [vmem:[%s8219_s1 + $0x630] sm:$0xff] }
  0x7d   :  { %3678 = vmatpush.bf16.msrb.mxu3 %v6322_v31  ;;  %v4403_v31 = vor.u32 %v6161_v24, %v4400_v25  ;;  %v6415_v24 = vld [vmem:[%s8219_s1 + $0x6b0] sm:$0xff] }
  0x7e   :  { %3637 = vmatpush.bf16.msrb.mxu0 %v6297_v32  ;;  %v6367_v32 = vld [vmem:[%s8219_s1 + $0x530] sm:$0xff] }
  0x7f   :  { %3665 = vmatpush.bf16.msrb.mxu2 %v6313_v33  ;;  %v6383_v33 = vld [vmem:[%s8219_s1 + $0x5b0] sm:$0xff] }
  0x80   :  { %3651 = vmatpush.bf16.msrb.mxu1 %v6305_v40  ;;  %v6390_v40 = vld [vmem:[%s8219_s1 + $0x5e8] sm:$0xff] }
  0x81   :  { %3679 = vmatpush.bf16.msrb.mxu3 %v6321_v41  ;;  %3638 = vmatmul.bf16.vlgmr.msrb.gmra.mxu0 %v4375_v46  ;;  %v6365_v41 = vld [vmem:[%s8219_s1 + $0x520] sm:$0xff] }
  0x82   :  { %3686 = vmatpush.bf16.msra.mxu0 %v6336_v34  ;;  %3666 = vmatmul.bf16.vlgmr.msrb.gmra.mxu2 %v4383_v47  ;;  %v6375_v34 = vld [vmem:[%s8219_s1 + $0x570] sm:$0xff]  ;;  %v6389_v46 = vld [vmem:[%s8219_s1 + $0x5e0] sm:$0xff] }
  0x83   :  { %3714 = vmatpush.bf16.msra.mxu2 %v6352_v35  ;;  %3652 = vmatmul.bf16.vlgmr.msrb.gmra.mxu1 %v4379_v50  ;;  %v6391_v35 = vld [vmem:[%s8219_s1 + $0x5f0] sm:$0xff]  ;;  %v6380_v50 = vld [vmem:[%s8219_s1 + $0x598] sm:$0xff] }
  0x84   :  { %3700 = vmatpush.bf16.msra.mxu1 %v6344_v48  ;;  %3680 = vmatmul.bf16.vlgmr.msrb.gmra.mxu3 %v4387_v51  ;;  %v6372_v51 = vld [vmem:[%s8219_s1 + $0x558] sm:$0xff] }
  0x85   :  { %3728 = vmatpush.bf16.msra.mxu3 %v6360_v49  ;;  %v6364_v49 = vld [vmem:[%s8219_s1 + $0x518] sm:$0xff] }
  0x86   :  { %3687 = vmatpush.bf16.msra.mxu0 %v6335_v52  ;;  %v6388_v52 = vld [vmem:[%s8219_s1 + $0x5d8] sm:$0xff] }
  0x87   :  { %3715 = vmatpush.bf16.msra.mxu2 %v6351_v53 }
  0x88   :  { %3701 = vmatpush.bf16.msra.mxu1 %v6343_v54 }
  0x89   :  { %3729 = vmatpush.bf16.msra.mxu3 %v6359_v55  ;;  %v6363_v55 = vld [vmem:[%s8219_s1 + $0x510] sm:$0xff] }
  0x8a   :  { %3688 = vmatpush.bf16.msra.mxu0 %v6334_v56  ;;  %v6379_v56 = vld [vmem:[%s8219_s1 + $0x590] sm:$0xff] }
  0x8b   :  { %3716 = vmatpush.bf16.msra.mxu2 %v6350_v57 }
  0x8c   :  { %3702 = vmatpush.bf16.msra.mxu1 %v6342_v58 }
  0x8d   :  { %3730 = vmatpush.bf16.msra.mxu3 %v6358_v59  ;;  %v6371_v59 = vld [vmem:[%s8219_s1 + $0x550] sm:$0xff] }
  0x8e   :  { %3689 = vmatpush.bf16.msra.mxu0 %v6333_v60  ;;  %v6387_v60 = vld [vmem:[%s8219_s1 + $0x5d0] sm:$0xff] }
  0x8f   :  { %3717 = vmatpush.bf16.msra.mxu2 %v6349_v61  ;;  %v6362_v61 = vld [vmem:[%s8219_s1 + $0x508] sm:$0xff] }
  0x90   :  { %3703 = vmatpush.bf16.msra.mxu1 %v6341_v62  ;;  %v6378_v62 = vld [vmem:[%s8219_s1 + $0x588] sm:$0xff] }
  0x91   :  { %3731 = vmatpush.bf16.msra.mxu3 %v6357_v63  ;;  %v6370_v63 = vld [vmem:[%s8219_s1 + $0x548] sm:$0xff] }
  0x92   :  { %3690 = vmatpush.bf16.msra.mxu0 %v6332_v0  ;;  %v6386_v0 = vld [vmem:[%s8219_s1 + $0x5c8] sm:$0xff] }
  0x93   :  { %3718 = vmatpush.bf16.msra.mxu2 %v6348_v1  ;;  %v6361_v1 = vld [vmem:[%s8219_s1 + $0x500] sm:$0xff] }
  0x94   :  { %3704 = vmatpush.bf16.msra.mxu1 %v6340_v2  ;;  %v6377_v2 = vld [vmem:[%s8219_s1 + $0x580] sm:$0xff] }
  0x95   :  { %3732 = vmatpush.bf16.msra.mxu3 %v6356_v3  ;;  %v6400_v3 = vld [vmem:[%s8219_s1 + $0x638] sm:$0xff] }
  0x96   :  { %3691 = vmatpush.bf16.msra.mxu0 %v6331_v4  ;;  %v6416_v4 = vld [vmem:[%s8219_s1 + $0x6b8] sm:$0xff] }
  0x97   :  { %3719 = vmatpush.bf16.msra.mxu2 %v6347_v5  ;;  %v4406_v5 = vld [vmem:[%s8220_s0 + $0x50] sm:$0xf] }
  0x98   :  { %3705 = vmatpush.bf16.msra.mxu1 %v6339_v6  ;;  %v6186_v6 = vld [vmem:[%s8220_s0 + $0x110] sm:$0xf0] }
  0x99   :  { %3733 = vmatpush.bf16.msra.mxu3 %v6355_v7  ;;  %v4414_v7 = vld [vmem:[%s8220_s0 + $0x58] sm:$0xf]  ;;  %v4407_v16 = vor.u32 %v6186_v6, %v4406_v5  ;;  %v6409_v5 = vld [vmem:[%s8219_s1 + $0x680] sm:$0xff] }
  0x9a   :  { %3692 = vmatpush.bf16.msra.mxu0 %v6330_v8  ;;  %v6187_v8 = vld [vmem:[%s8220_s0 + $0x118] sm:$0xf0] }
  0x9b   :  { %3720 = vmatpush.bf16.msra.mxu2 %v6346_v9  ;;  %v6369_v9 = vld [vmem:[%s8219_s1 + $0x540] sm:$0xff]  ;;  %v4415_v17 = vor.u32 %v6187_v8, %v4414_v7  ;;  %v6432_v7 = vld [vmem:[%s8219_s1 + $0x738] sm:$0xff] }
  0x9c   :  { %3706 = vmatpush.bf16.msra.mxu1 %v6338_v10  ;;  %v6385_v10 = vld [vmem:[%s8219_s1 + $0x5c0] sm:$0xff]  ;;  %v6448_v8 = vld [vmem:[%s8219_s1 + $0x7b8] sm:$0xff] }
  0x9d   :  { %3734 = vmatpush.bf16.msra.mxu3 %v6354_v11  ;;  %v6162_v11 = vld [vmem:[%s8220_s0 + $0x54] sm:$0xf] }
  0x9e   :  { %3693 = vmatpush.bf16.msra.mxu0 %v6329_v12  ;;  %v3471_v43 = vpop.f32.mrf.mxu0 }
  0x9f   :  { %3721 = vmatpush.bf16.msra.mxu2 %v6345_v13  ;;  %v3472_v44 = vadd.f32 %v7285_v38, %v3471_v43  ;;  %v4408_v13 = vld [vmem:[%s8220_s0 + $0x114] sm:$0xf0]  ;;  %v6421_v43 = vld [vmem:[%s8219_s1 + $0x6e0] sm:$0xff] }
  0xa0   :  { %3707 = vmatpush.bf16.msra.mxu1 %v6337_v20  ;;  %v3485_v47 = vpop.f32.mrf.mxu1 }
  0xa1   :  { %3735 = vmatpush.bf16.msra.mxu3 %v6353_v21  ;;  %3694 = vmatmul.bf16.vlgmr.msra.gmra.mxu0 %v4391_v26  ;;  %v3486_v48 = vadd.f32 %v3485_v47, %v3472_v44  ;;  %v4411_v21 = vor.u32 %v6162_v11, %v4408_v13  ;;  %v6407_v26 = vld [vmem:[%s8219_s1 + $0x670] sm:$0xff]  ;;  %v6396_v44 = vld [vmem:[%s8219_s1 + $0x618] sm:$0xff]  ;;  %v4430_v11 = vld [vmem:[%s8220_s0 + $0x68] sm:$0xf] }
  0xa2   :  { %3742 = vmatpush.bf16.msrb.mxu0 %v6368_v14  ;;  %3722 = vmatmul.bf16.vlgmr.msra.gmra.mxu2 %v4399_v27  ;;  %v6163_v14 = vld [vmem:[%s8220_s0 + $0x5c] sm:$0xf]  ;;  %v6423_v27 = vld [vmem:[%s8219_s1 + $0x6f0] sm:$0xff]  ;;  %v6401_v13 = vld [vmem:[%s8219_s1 + $0x640] sm:$0xff] }
  0xa3   :  { %3770 = vmatpush.bf16.msrb.mxu2 %v6384_v15  ;;  %3708 = vmatmul.bf16.vlgmr.msra.gmra.mxu1 %v4395_v30  ;;  %v4416_v15 = vld [vmem:[%s8220_s0 + $0x11c] sm:$0xf0]  ;;  %v6414_v30 = vld [vmem:[%s8219_s1 + $0x6a8] sm:$0xff] }
  0xa4   :  { %3756 = vmatpush.bf16.msrb.mxu1 %v6376_v28  ;;  %3736 = vmatmul.bf16.vlgmr.msra.gmra.mxu3 %v4403_v31  ;;  %v4419_v22 = vor.u32 %v6163_v14, %v4416_v15  ;;  %v6417_v14 = vld [vmem:[%s8219_s1 + $0x6c0] sm:$0xff] }
  0xa5   :  { %3784 = vmatpush.bf16.msrb.mxu3 %v6392_v29  ;;  %v3499_v53 = vpop.f32.mrf.mxu2  ;;  %v6398_v29 = vld [vmem:[%s8219_s1 + $0x628] sm:$0xff]  ;;  %v6164_v15 = vld [vmem:[%s8220_s0 + $0x64] sm:$0xf] }
  0xa6   :  { %3743 = vmatpush.bf16.msrb.mxu0 %v6367_v32  ;;  %v3500_v54 = vadd.f32 %v3499_v53, %v3486_v48  ;;  %v3473_v12 = vpop.f32.mrf.mxu0 }
  0xa7   :  { %3771 = vmatpush.bf16.msrb.mxu2 %v6383_v33  ;;  %v3513_v57 = vpop.f32.mrf.mxu3  ;;  %v3474_v25 = vadd.f32 %v7285_v38, %v3473_v12  ;;  %v6406_v33 = vld [vmem:[%s8219_s1 + $0x668] sm:$0xff]  ;;  %v6413_v38 = vld [vmem:[%s8219_s1 + $0x6a0] sm:$0xff] }
  0xa8   :  { %3757 = vmatpush.bf16.msrb.mxu1 %v6375_v34  ;;  %v7324_v58 = vadd.f32 %v3513_v57, %v3500_v54  ;;  %v3487_v20 = vpop.f32.mrf.mxu1  ;;  %v6422_v34 = vld [vmem:[%s8219_s1 + $0x6e8] sm:$0xff] }
  0xa9   :  { %3785 = vmatpush.bf16.msrb.mxu3 %v6391_v35  ;;  %v3488_v32 = vadd.f32 %v3487_v20, %v3474_v25  ;;  %v6189_v12 = vld [vmem:[%s8220_s0 + $0x128] sm:$0xf0]  ;;  %v6431_v25 = vld [vmem:[%s8219_s1 + $0x730] sm:$0xff] }
  0xaa   :  { %3744 = vmatpush.bf16.msrb.mxu0 %v6366_v36  ;;  %v4431_v20 = vor.u32 %v6189_v12, %v4430_v11  ;;  %v6166_v11 = vld [vmem:[%s8220_s0 + $0x74] sm:$0xf]  ;;  %v4440_v12 = vld [vmem:[%s8220_s0 + $0x134] sm:$0xf0] }
  0xab   :  { %3772 = vmatpush.bf16.msrb.mxu2 %v6382_v37  ;;  %v6397_v37 = vld [vmem:[%s8219_s1 + $0x620] sm:$0xff] }
  0xac   :  { %3758 = vmatpush.bf16.msrb.mxu1 %v6374_v39 }
  0xad   :  { %3786 = vmatpush.bf16.msrb.mxu3 %v6390_v40  ;;  %v3501_v28 = vpop.f32.mrf.mxu2 }
  0xae   :  { %3745 = vmatpush.bf16.msrb.mxu0 %v6365_v41  ;;  %v3502_v40 = vadd.f32 %v3501_v28, %v3488_v32  ;;  %v6455_v28 = vld [vmem:[%s8219_s1 + $0x7f0] sm:$0xff]  ;;  %v6454_v32 = vld [vmem:[%s8219_s1 + $0x7e8] sm:$0xff] }
  0xaf   :  { %3773 = vmatpush.bf16.msrb.mxu2 %v6381_v42  ;;  %v3515_v31 = vpop.f32.mrf.mxu3  ;;  %v6405_v42 = vld [vmem:[%s8219_s1 + $0x660] sm:$0xff] }
  0xb0   :  { %3759 = vmatpush.bf16.msrb.mxu1 %v6373_v45  ;;  %v6412_v45 = vld [vmem:[%s8219_s1 + $0x698] sm:$0xff]  ;;  %v3516_v47 = vadd.f32 %v3515_v31, %v3502_v40  ;;  %v6438_v31 = vld [vmem:[%s8219_s1 + $0x768] sm:$0xff]  ;;  %v6453_v40 = vld [vmem:[%s8219_s1 + $0x7e0] sm:$0xff] }
  0xb1   :  { %3787 = vmatpush.bf16.msrb.mxu3 %v6389_v46 }
  0xb2   :  { %3746 = vmatpush.bf16.msrb.mxu0 %v6364_v49  ;;  %v6404_v49 = vld [vmem:[%s8219_s1 + $0x658] sm:$0xff] }
  0xb3   :  { %3774 = vmatpush.bf16.msrb.mxu2 %v6380_v50  ;;  %v6420_v50 = vld [vmem:[%s8219_s1 + $0x6d8] sm:$0xff] }
  0xb4   :  { %3760 = vmatpush.bf16.msrb.mxu1 %v6372_v51 }
  0xb5   :  { %3788 = vmatpush.bf16.msrb.mxu3 %v6388_v52 }
  0xb6   :  { %3747 = vmatpush.bf16.msrb.mxu0 %v6363_v55  ;;  %v6395_v55 = vld [vmem:[%s8219_s1 + $0x610] sm:$0xff] }
  0xb7   :  { %3775 = vmatpush.bf16.msrb.mxu2 %v6379_v56  ;;  %v6411_v56 = vld [vmem:[%s8219_s1 + $0x690] sm:$0xff] }
  0xb8   :  { %3761 = vmatpush.bf16.msrb.mxu1 %v6371_v59  ;;  %v6403_v59 = vld [vmem:[%s8219_s1 + $0x650] sm:$0xff] }
  0xb9   :  { %3789 = vmatpush.bf16.msrb.mxu3 %v6387_v60  ;;  %v6419_v60 = vld [vmem:[%s8219_s1 + $0x6d0] sm:$0xff] }
  0xba   :  { %3748 = vmatpush.bf16.msrb.mxu0 %v6362_v61  ;;  %v6394_v61 = vld [vmem:[%s8219_s1 + $0x608] sm:$0xff] }
  0xbb   :  { %3776 = vmatpush.bf16.msrb.mxu2 %v6378_v62  ;;  %v6410_v62 = vld [vmem:[%s8219_s1 + $0x688] sm:$0xff] }
  0xbc   :  { %3762 = vmatpush.bf16.msrb.mxu1 %v6370_v63 }
  0xbd   :  { %3790 = vmatpush.bf16.msrb.mxu3 %v6386_v0 }
  0xbe   :  { %3749 = vmatpush.bf16.msrb.mxu0 %v6361_v1  ;;  %v3527_v35 = vpop.f32.mrf.mxu0  ;;  %v6402_v1 = vld [vmem:[%s8219_s1 + $0x648] sm:$0xff] }
  0xbf   :  { %3777 = vmatpush.bf16.msrb.mxu2 %v6377_v2  ;;  %v3528_v36 = vadd.f32 %v3527_v35, %v7324_v58  ;;  %v6418_v2 = vld [vmem:[%s8219_s1 + $0x6c8] sm:$0xff]  ;;  %v6429_v35 = vld [vmem:[%s8219_s1 + $0x720] sm:$0xff] }
  0xc0   :  { %3763 = vmatpush.bf16.msrb.mxu1 %v6369_v9  ;;  %v3541_v39 = vpop.f32.mrf.mxu1  ;;  %v4422_v9 = vld [vmem:[%s8220_s0 + $0x60] sm:$0xf] }
  0xc1   :  { %3791 = vmatpush.bf16.msrb.mxu3 %v6385_v10  ;;  %3750 = vmatmul.bf16.vlgmr.msrb.gmra.mxu0 %v4407_v16  ;;  %v3542_v41 = vadd.f32 %v3541_v39, %v3528_v36  ;;  %v6188_v10 = vld [vmem:[%s8220_s0 + $0x120] sm:$0xf0]  ;;  %v4424_v16 = vld [vmem:[%s8220_s0 + $0x124] sm:$0xf0] }
  0xc2   :  { %3798 = vmatpush.bf16.msra.mxu0 %v6400_v3  ;;  %3778 = vmatmul.bf16.vlgmr.msrb.gmra.mxu2 %v4415_v17  ;;  %v6165_v17 = vld [vmem:[%s8220_s0 + $0x6c] sm:$0xf]  ;;  %v6445_v36 = vld [vmem:[%s8219_s1 + $0x7a0] sm:$0xff] }
  0xc3   :  { %3826 = vmatpush.bf16.msra.mxu2 %v6416_v4  ;;  %3764 = vmatmul.bf16.vlgmr.msrb.gmra.mxu1 %v4411_v21  ;;  %v6393_v4 = vld [vmem:[%s8219_s1 + $0x600] sm:$0xff]  ;;  %v6440_v21 = vld [vmem:[%s8219_s1 + $0x778] sm:$0xff] }
  0xc4   :  { %3812 = vmatpush.bf16.msra.mxu1 %v6408_v18  ;;  %3792 = vmatmul.bf16.vlgmr.msrb.gmra.mxu3 %v4419_v22  ;;  %v4432_v18 = vld [vmem:[%s8220_s0 + $0x12c] sm:$0xf0]  ;;  %v6456_v22 = vld [vmem:[%s8219_s1 + $0x7f8] sm:$0xff]  ;;  %v6437_v39 = vld [vmem:[%s8219_s1 + $0x760] sm:$0xff] }
  0xc5   :  { %3840 = vmatpush.bf16.msra.mxu3 %v6424_v19  ;;  %v3555_v46 = vpop.f32.mrf.mxu2  ;;  %v4423_v19 = vor.u32 %v6188_v10, %v4422_v9  ;;  %v6433_v9 = vld [vmem:[%s8219_s1 + $0x740] sm:$0xff] }
  0xc6   :  { %3799 = vmatpush.bf16.msra.mxu0 %v6399_v23  ;;  %v3556_v48 = vadd.f32 %v3555_v46, %v3542_v41  ;;  %v3529_v51 = vpop.f32.mrf.mxu0  ;;  %v4427_v23 = vor.u32 %v6164_v15, %v4424_v16  ;;  %v6428_v41 = vld [vmem:[%s8219_s1 + $0x718] sm:$0xff]  ;;  %v6449_v10 = vld [vmem:[%s8219_s1 + $0x7c0] sm:$0xff] }
  0xc7   :  { %3827 = vmatpush.bf16.msra.mxu2 %v6415_v24  ;;  %v3569_v52 = vpop.f32.mrf.mxu3  ;;  %v3530_v53 = vadd.f32 %v3529_v51, %v3516_v47  ;;  %v4435_v24 = vor.u32 %v6165_v17, %v4432_v18  ;;  %v6452_v46 = vld [vmem:[%s8219_s1 + $0x7d8] sm:$0xff]  ;;  %v6427_v51 = vld [vmem:[%s8219_s1 + $0x710] sm:$0xff] }
  0xc8   :  { %3813 = vmatpush.bf16.msra.mxu1 %v6407_v26  ;;  %v7442_v54 = vadd.f32 %v3569_v52, %v3556_v48  ;;  %v3543_v57 = vpop.f32.mrf.mxu1  ;;  %v6447_v26 = vld [vmem:[%s8219_s1 + $0x7b0] sm:$0xff]  ;;  %v6472_v17 = vld [vmem:[%s8219_s1 + $0x878] sm:$0xff] }
  0xc9   :  { %3841 = vmatpush.bf16.msra.mxu3 %v6423_v27  ;;  %v3544_v58 = vadd.f32 %v3543_v57, %v3530_v53  ;;  %v6439_v27 = vld [vmem:[%s8219_s1 + $0x770] sm:$0xff]  ;;  %v6426_v57 = vld [vmem:[%s8219_s1 + $0x708] sm:$0xff]  ;;  %v6488_v18 = vld [vmem:[%s8219_s1 + $0x8f8] sm:$0xff] }
  0xca   :  { %3800 = vmatpush.bf16.msra.mxu0 %v6398_v29  ;;  %v6430_v29 = vld [vmem:[%s8219_s1 + $0x728] sm:$0xff]  ;;  %v6443_v52 = vld [vmem:[%s8219_s1 + $0x790] sm:$0xff] }
  0xcb   :  { %3828 = vmatpush.bf16.msra.mxu2 %v6414_v30  ;;  %v6446_v30 = vld [vmem:[%s8219_s1 + $0x7a8] sm:$0xff] }
  0xcc   :  { %3814 = vmatpush.bf16.msra.mxu1 %v6406_v33 }
  0xcd   :  { %3842 = vmatpush.bf16.msra.mxu3 %v6422_v34  ;;  %v3557_v63 = vpop.f32.mrf.mxu2 }
  0xce   :  { %3801 = vmatpush.bf16.msra.mxu0 %v6397_v37  ;;  %v3558_v0 = vadd.f32 %v3557_v63, %v3544_v58  ;;  %v6442_v58 = vld [vmem:[%s8219_s1 + $0x788] sm:$0xff] }
  0xcf   :  { %3829 = vmatpush.bf16.msra.mxu2 %v6413_v38  ;;  %v3571_v3 = vpop.f32.mrf.mxu3 }
  0xd0   :  { %3815 = vmatpush.bf16.msra.mxu1 %v6405_v42  ;;  %v7474_v6 = vadd.f32 %v3571_v3, %v3558_v0  ;;  %v6444_v42 = vld [vmem:[%s8219_s1 + $0x798] sm:$0xff]  ;;  %v6425_v0 = vld [vmem:[%s8219_s1 + $0x700] sm:$0xff] }
  0xd1   :  { %3843 = vmatpush.bf16.msra.mxu3 %v6421_v43  ;;  %v6464_v3 = vld [vmem:[%s8219_s1 + $0x838] sm:$0xff] }
  0xd2   :  { %3802 = vmatpush.bf16.msra.mxu0 %v6396_v44 }
  0xd3   :  { %3830 = vmatpush.bf16.msra.mxu2 %v6412_v45  ;;  %v6436_v45 = vld [vmem:[%s8219_s1 + $0x758] sm:$0xff] }
  0xd4   :  { %3816 = vmatpush.bf16.msra.mxu1 %v6404_v49 }
  0xd5   :  { %3844 = vmatpush.bf16.msra.mxu3 %v6420_v50 }
  0xd6   :  { %3803 = vmatpush.bf16.msra.mxu0 %v6395_v55  ;;  %v6435_v55 = vld [vmem:[%s8219_s1 + $0x750] sm:$0xff] }
  0xd7   :  { %3831 = vmatpush.bf16.msra.mxu2 %v6411_v56  ;;  %v6451_v56 = vld [vmem:[%s8219_s1 + $0x7d0] sm:$0xff] }
  0xd8   :  { %3817 = vmatpush.bf16.msra.mxu1 %v6403_v59 }
  0xd9   :  { %3845 = vmatpush.bf16.msra.mxu3 %v6419_v60 }
  0xda   :  { %3804 = vmatpush.bf16.msra.mxu0 %v6394_v61  ;;  %v6434_v61 = vld [vmem:[%s8219_s1 + $0x748] sm:$0xff] }
  0xdb   :  { %3832 = vmatpush.bf16.msra.mxu2 %v6410_v62  ;;  %v6450_v62 = vld [vmem:[%s8219_s1 + $0x7c8] sm:$0xff] }
  0xdc   :  { %3818 = vmatpush.bf16.msra.mxu1 %v6402_v1  ;;  %v6441_v1 = vld [vmem:[%s8219_s1 + $0x780] sm:$0xff] }
  0xdd   :  { %3846 = vmatpush.bf16.msra.mxu3 %v6418_v2 }
  0xde   :  { %3805 = vmatpush.bf16.msra.mxu0 %v6393_v4  ;;  %v3583_v33 = vpop.f32.mrf.mxu0  ;;  %v6480_v4 = vld [vmem:[%s8219_s1 + $0x8b8] sm:$0xff] }
  0xdf   :  { %3833 = vmatpush.bf16.msra.mxu2 %v6409_v5  ;;  %v3584_v34 = vadd.f32 %v3583_v33, %v7442_v54  ;;  %v4438_v5 = vld [vmem:[%s8220_s0 + $0x70] sm:$0xf] }
  0xe0   :  { %3819 = vmatpush.bf16.msra.mxu1 %v6401_v13  ;;  %v3597_v37 = vpop.f32.mrf.mxu1  ;;  %v6167_v13 = vld [vmem:[%s8220_s0 + $0x7c] sm:$0xf] }
  0xe1   :  { %3847 = vmatpush.bf16.msra.mxu3 %v6417_v14  ;;  %3806 = vmatmul.bf16.vlgmr.msra.gmra.mxu0 %v4423_v19  ;;  %v3598_v38 = vadd.f32 %v3597_v37, %v3584_v34  ;;  %v4448_v14 = vld [vmem:[%s8220_s0 + $0x13c] sm:$0xf0]  ;;  %v4443_v19 = vor.u32 %v6166_v11, %v4440_v12  ;;  %v6460_v37 = vld [vmem:[%s8219_s1 + $0x818] sm:$0xff] }
  0xe2   :  { %3854 = vmatpush.bf16.msrb.mxu0 %v6432_v7  ;;  %3834 = vmatmul.bf16.vlgmr.msra.gmra.mxu2 %v4431_v20  ;;  %v4446_v7 = vld [vmem:[%s8220_s0 + $0x78] sm:$0xf]  ;;  %v4451_v20 = vor.u32 %v6167_v13, %v4448_v14 }
  0xe3   :  { %3882 = vmatpush.bf16.msrb.mxu2 %v6448_v8  ;;  %3820 = vmatmul.bf16.vlgmr.msra.gmra.mxu1 %v4427_v23  ;;  %v6191_v8 = vld [vmem:[%s8220_s0 + $0x138] sm:$0xf0]  ;;  %v6471_v23 = vld [vmem:[%s8219_s1 + $0x870] sm:$0xff] }
  0xe4   :  { %3868 = vmatpush.bf16.msrb.mxu1 %v6440_v21  ;;  %3848 = vmatmul.bf16.vlgmr.msra.gmra.mxu3 %v4435_v24  ;;  %v4447_v16 = vor.u32 %v6191_v8, %v4446_v7  ;;  %v6463_v21 = vld [vmem:[%s8219_s1 + $0x830] sm:$0xff]  ;;  %v6168_v7 = vld [vmem:[%s8220_s0 + $0x84] sm:$0xf]  ;;  %v4456_v8 = vld [vmem:[%s8220_s0 + $0x144] sm:$0xf0] }
  0xe5   :  { %3896 = vmatpush.bf16.msrb.mxu3 %v6456_v22  ;;  %v3611_v43 = vpop.f32.mrf.mxu2  ;;  %v6479_v22 = vld [vmem:[%s8219_s1 + $0x8b0] sm:$0xff]  ;;  %v6504_v13 = vld [vmem:[%s8219_s1 + $0x978] sm:$0xff] }
  0xe6   :  { %3855 = vmatpush.bf16.msrb.mxu0 %v6431_v25  ;;  %v3612_v44 = vadd.f32 %v3611_v43, %v3598_v38  ;;  %v3585_v47 = vpop.f32.mrf.mxu0  ;;  %v6487_v24 = vld [vmem:[%s8219_s1 + $0x8f0] sm:$0xff]  ;;  %v6462_v25 = vld [vmem:[%s8219_s1 + $0x828] sm:$0xff]  ;;  %v6476_v38 = vld [vmem:[%s8219_s1 + $0x898] sm:$0xff] }
  0xe7   :  { %3883 = vmatpush.bf16.msrb.mxu2 %v6447_v26  ;;  %v3625_v48 = vpop.f32.mrf.mxu3  ;;  %v3586_v49 = vadd.f32 %v3585_v47, %v7474_v6  ;;  %v6190_v6 = vld [vmem:[%s8220_s0 + $0x130] sm:$0xf0]  ;;  %v6478_v26 = vld [vmem:[%s8219_s1 + $0x8a8] sm:$0xff]  ;;  %v6520_v14 = vld [vmem:[%s8219_s1 + $0x9f8] sm:$0xff] }
  0xe8   :  { %3869 = vmatpush.bf16.msrb.mxu1 %v6439_v27  ;;  %v7568_v50 = vadd.f32 %v3625_v48, %v3612_v44  ;;  %v3599_v53 = vpop.f32.mrf.mxu1  ;;  %v4439_v15 = vor.u32 %v6190_v6, %v4438_v5  ;;  %v6470_v27 = vld [vmem:[%s8219_s1 + $0x868] sm:$0xff]  ;;  %v6459_v47 = vld [vmem:[%s8219_s1 + $0x810] sm:$0xff]  ;;  %v6465_v5 = vld [vmem:[%s8219_s1 + $0x840] sm:$0xff] }
  0xe9   :  { %3897 = vmatpush.bf16.msrb.mxu3 %v6455_v28  ;;  %v3600_v54 = vadd.f32 %v3599_v53, %v3586_v49  ;;  %v6486_v28 = vld [vmem:[%s8219_s1 + $0x8e8] sm:$0xff]  ;;  %v6475_v48 = vld [vmem:[%s8219_s1 + $0x890] sm:$0xff]  ;;  %v6481_v6 = vld [vmem:[%s8219_s1 + $0x8c0] sm:$0xff] }
  0xea   :  { %3856 = vmatpush.bf16.msrb.mxu0 %v6430_v29  ;;  %v6458_v53 = vld [vmem:[%s8219_s1 + $0x808] sm:$0xff] }
  0xeb   :  { %3884 = vmatpush.bf16.msrb.mxu2 %v6446_v30 }
  0xec   :  { %3870 = vmatpush.bf16.msrb.mxu1 %v6438_v31  ;;  %v6461_v31 = vld [vmem:[%s8219_s1 + $0x820] sm:$0xff] }
  0xed   :  { %3898 = vmatpush.bf16.msrb.mxu3 %v6454_v32  ;;  %v3613_v59 = vpop.f32.mrf.mxu2  ;;  %v6477_v32 = vld [vmem:[%s8219_s1 + $0x8a0] sm:$0xff] }
  0xee   :  { %3857 = vmatpush.bf16.msrb.mxu0 %v6429_v35  ;;  %v3614_v60 = vadd.f32 %v3613_v59, %v3600_v54  ;;  %v6469_v35 = vld [vmem:[%s8219_s1 + $0x860] sm:$0xff]  ;;  %v6474_v54 = vld [vmem:[%s8219_s1 + $0x888] sm:$0xff] }
  0xef   :  { %3885 = vmatpush.bf16.msrb.mxu2 %v6445_v36  ;;  %v3627_v63 = vpop.f32.mrf.mxu3  ;;  %v6485_v36 = vld [vmem:[%s8219_s1 + $0x8e0] sm:$0xff] }
  0xf0   :  { %3871 = vmatpush.bf16.msrb.mxu1 %v6437_v39  ;;  %v7600_v2 = vadd.f32 %v3627_v63, %v3614_v60  ;;  %v6457_v60 = vld [vmem:[%s8219_s1 + $0x800] sm:$0xff]  ;;  %v6496_v63 = vld [vmem:[%s8219_s1 + $0x938] sm:$0xff] }
  0xf1   :  { %3899 = vmatpush.bf16.msrb.mxu3 %v6453_v40 }
  0xf2   :  { %3858 = vmatpush.bf16.msrb.mxu0 %v6428_v41  ;;  %v6468_v41 = vld [vmem:[%s8219_s1 + $0x858] sm:$0xff] }
  0xf3   :  { %3886 = vmatpush.bf16.msrb.mxu2 %v6444_v42  ;;  %v6484_v42 = vld [vmem:[%s8219_s1 + $0x8d8] sm:$0xff] }
  0xf4   :  { %3872 = vmatpush.bf16.msrb.mxu1 %v6436_v45 }
  0xf5   :  { %3900 = vmatpush.bf16.msrb.mxu3 %v6452_v46 }
  0xf6   :  { %3859 = vmatpush.bf16.msrb.mxu0 %v6427_v51  ;;  %v6467_v51 = vld [vmem:[%s8219_s1 + $0x850] sm:$0xff] }
  0xf7   :  { %3887 = vmatpush.bf16.msrb.mxu2 %v6443_v52  ;;  %v6483_v52 = vld [vmem:[%s8219_s1 + $0x8d0] sm:$0xff] }
  0xf8   :  { %3873 = vmatpush.bf16.msrb.mxu1 %v6435_v55 }
  0xf9   :  { %3901 = vmatpush.bf16.msrb.mxu3 %v6451_v56 }
  0xfa   :  { %3860 = vmatpush.bf16.msrb.mxu0 %v6426_v57  ;;  %v6466_v57 = vld [vmem:[%s8219_s1 + $0x848] sm:$0xff] }
  0xfb   :  { %3888 = vmatpush.bf16.msrb.mxu2 %v6442_v58  ;;  %v6482_v58 = vld [vmem:[%s8219_s1 + $0x8c8] sm:$0xff] }
  0xfc   :  { %3874 = vmatpush.bf16.msrb.mxu1 %v6434_v61  ;;  %v6473_v61 = vld [vmem:[%s8219_s1 + $0x880] sm:$0xff] }
  0xfd   :  { %3902 = vmatpush.bf16.msrb.mxu3 %v6450_v62 }
  0xfe   :  { %3861 = vmatpush.bf16.msrb.mxu0 %v6425_v0  ;;  %v3639_v29 = vpop.f32.mrf.mxu0  ;;  %v6512_v0 = vld [vmem:[%s8219_s1 + $0x9b8] sm:$0xff] }
  0xff   :  { %3889 = vmatpush.bf16.msrb.mxu2 %v6441_v1  ;;  %v3640_v30 = vadd.f32 %v3639_v29, %v7568_v50  ;;  %v4454_v1 = vld [vmem:[%s8220_s0 + $0x80] sm:$0xf] }
 0x100   :  { %3875 = vmatpush.bf16.msrb.mxu1 %v6433_v9  ;;  %v3653_v33 = vpop.f32.mrf.mxu1  ;;  %v6169_v9 = vld [vmem:[%s8220_s0 + $0x8c] sm:$0xf] }
 0x101   :  { %3903 = vmatpush.bf16.msrb.mxu3 %v6449_v10  ;;  %3862 = vmatmul.bf16.vlgmr.msrb.gmra.mxu0 %v4439_v15  ;;  %v3654_v34 = vadd.f32 %v3653_v33, %v3640_v30  ;;  %v4464_v10 = vld [vmem:[%s8220_s0 + $0x14c] sm:$0xf0]  ;;  %v4459_v15 = vor.u32 %v6168_v7, %v4456_v8  ;;  %v6492_v33 = vld [vmem:[%s8219_s1 + $0x918] sm:$0xff] }
 0x102   :  { %3910 = vmatpush.bf16.msra.mxu0 %v6464_v3  ;;  %3890 = vmatmul.bf16.vlgmr.msrb.gmra.mxu2 %v4447_v16  ;;  %v4462_v3 = vld [vmem:[%s8220_s0 + $0x88] sm:$0xf]  ;;  %v4467_v16 = vor.u32 %v6169_v9, %v4464_v10  ;;  %v6527_v7 = vld [vmem:[%s8219_s1 + $0xa30] sm:$0xff] }
 0x103   :  { %3938 = vmatpush.bf16.msra.mxu2 %v6480_v4  ;;  %3876 = vmatmul.bf16.vlgmr.msrb.gmra.mxu1 %v4443_v19  ;;  %v6193_v4 = vld [vmem:[%s8220_s0 + $0x148] sm:$0xf0]  ;;  %v6503_v19 = vld [vmem:[%s8219_s1 + $0x970] sm:$0xff] }
 0x104   :  { %3924 = vmatpush.bf16.msra.mxu1 %v6472_v17  ;;  %3904 = vmatmul.bf16.vlgmr.msrb.gmra.mxu3 %v4451_v20  ;;  %v4463_v12 = vor.u32 %v6193_v4, %v4462_v3  ;;  %v6495_v17 = vld [vmem:[%s8219_s1 + $0x930] sm:$0xff]  ;;  %v6536_v3 = vld [vmem:[%s8219_s1 + $0xa78] sm:$0xff] }
 0x105   :  { %3952 = vmatpush.bf16.msra.mxu3 %v6488_v18  ;;  %v3667_v39 = vpop.f32.mrf.mxu2  ;;  %v6511_v18 = vld [vmem:[%s8219_s1 + $0x9b0] sm:$0xff]  ;;  %v6552_v4 = vld [vmem:[%s8219_s1 + $0xaf8] sm:$0xff] }
 0x106   :  { %3911 = vmatpush.bf16.msra.mxu0 %v6463_v21  ;;  %v3668_v40 = vadd.f32 %v3667_v39, %v3654_v34  ;;  %v3641_v43 = vpop.f32.mrf.mxu0  ;;  %v6519_v20 = vld [vmem:[%s8219_s1 + $0x9f0] sm:$0xff]  ;;  %v6494_v21 = vld [vmem:[%s8219_s1 + $0x928] sm:$0xff]  ;;  %v6508_v34 = vld [vmem:[%s8219_s1 + $0x998] sm:$0xff] }
 0x107   :  { %3939 = vmatpush.bf16.msra.mxu2 %v6479_v22  ;;  %v3681_v44 = vpop.f32.mrf.mxu3  ;;  %v3642_v45 = vadd.f32 %v3641_v43, %v7600_v2  ;;  %v6192_v2 = vld [vmem:[%s8220_s0 + $0x140] sm:$0xf0]  ;;  %v6510_v22 = vld [vmem:[%s8219_s1 + $0x9a8] sm:$0xff]  ;;  %v6491_v43 = vld [vmem:[%s8219_s1 + $0x910] sm:$0xff] }
 0x108   :  { %3925 = vmatpush.bf16.msra.mxu1 %v6471_v23  ;;  %v7694_v46 = vadd.f32 %v3681_v44, %v3668_v40  ;;  %v3655_v49 = vpop.f32.mrf.mxu1  ;;  %v4455_v11 = vor.u32 %v6192_v2, %v4454_v1  ;;  %v6502_v23 = vld [vmem:[%s8219_s1 + $0x968] sm:$0xff]  ;;  %v6507_v44 = vld [vmem:[%s8219_s1 + $0x990] sm:$0xff] }
 0x109   :  { %3953 = vmatpush.bf16.msra.mxu3 %v6487_v24  ;;  %v3656_v50 = vadd.f32 %v3655_v49, %v3642_v45  ;;  %v6518_v24 = vld [vmem:[%s8219_s1 + $0x9e8] sm:$0xff]  ;;  %v6499_v45 = vld [vmem:[%s8219_s1 + $0x950] sm:$0xff] }
 0x10a   :  { %3912 = vmatpush.bf16.msra.mxu0 %v6462_v25  ;;  %v6498_v49 = vld [vmem:[%s8219_s1 + $0x948] sm:$0xff]  ;;  %v6543_v8 = vld [vmem:[%s8219_s1 + $0xab0] sm:$0xff] }
 0x10b   :  { %3940 = vmatpush.bf16.msra.mxu2 %v6478_v26  ;;  %v6535_v9 = vld [vmem:[%s8219_s1 + $0xa70] sm:$0xff] }
 0x10c   :  { %3926 = vmatpush.bf16.msra.mxu1 %v6470_v27  ;;  %v6493_v27 = vld [vmem:[%s8219_s1 + $0x920] sm:$0xff]  ;;  %v6551_v10 = vld [vmem:[%s8219_s1 + $0xaf0] sm:$0xff] }
 0x10d   :  { %3954 = vmatpush.bf16.msra.mxu3 %v6486_v28  ;;  %v3669_v55 = vpop.f32.mrf.mxu2  ;;  %v6509_v28 = vld [vmem:[%s8219_s1 + $0x9a0] sm:$0xff] }
 0x10e   :  { %3913 = vmatpush.bf16.msra.mxu0 %v6461_v31  ;;  %v3670_v56 = vadd.f32 %v3669_v55, %v3656_v50  ;;  %v6501_v31 = vld [vmem:[%s8219_s1 + $0x960] sm:$0xff]  ;;  %v6514_v50 = vld [vmem:[%s8219_s1 + $0x9c8] sm:$0xff]  ;;  %v4470_v55 = vld [vmem:[%s8220_s0 + $0x90] sm:$0xf] }
 0x10f   :  { %3941 = vmatpush.bf16.msra.mxu2 %v6477_v32  ;;  %v3683_v59 = vpop.f32.mrf.mxu3  ;;  %v6517_v32 = vld [vmem:[%s8219_s1 + $0x9e0] sm:$0xff] }
 0x110   :  { %3927 = vmatpush.bf16.msra.mxu1 %v6469_v35  ;;  %v7726_v62 = vadd.f32 %v3683_v59, %v3670_v56  ;;  %v6194_v56 = vld [vmem:[%s8220_s0 + $0x150] sm:$0xf0]  ;;  %v6497_v59 = vld [vmem:[%s8219_s1 + $0x940] sm:$0xff] }
 0x111   :  { %3955 = vmatpush.bf16.msra.mxu3 %v6485_v36  ;;  %v4471_v1 = vor.u32 %v6194_v56, %v4470_v55  ;;  %v6575_v55 = vld [vmem:[%s8219_s1 + $0xbb0] sm:$0xff] }
 0x112   :  { %3914 = vmatpush.bf16.msra.mxu0 %v6460_v37  ;;  %v6500_v37 = vld [vmem:[%s8219_s1 + $0x958] sm:$0xff]  ;;  %v6567_v56 = vld [vmem:[%s8219_s1 + $0xb70] sm:$0xff] }
 0x113   :  { %3942 = vmatpush.bf16.msra.mxu2 %v6476_v38  ;;  %v6516_v38 = vld [vmem:[%s8219_s1 + $0x9d8] sm:$0xff] }
 0x114   :  { %3928 = vmatpush.bf16.msra.mxu1 %v6468_v41 }
 0x115   :  { %3956 = vmatpush.bf16.msra.mxu3 %v6484_v42 }
 0x116   :  { %3915 = vmatpush.bf16.msra.mxu0 %v6459_v47  ;;  %v6490_v47 = vld [vmem:[%s8219_s1 + $0x908] sm:$0xff] }
 0x117   :  { %3943 = vmatpush.bf16.msra.mxu2 %v6475_v48  ;;  %v6506_v48 = vld [vmem:[%s8219_s1 + $0x988] sm:$0xff] }
 0x118   :  { %3929 = vmatpush.bf16.msra.mxu1 %v6467_v51  ;;  %v6489_v51 = vld [vmem:[%s8219_s1 + $0x900] sm:$0xff] }
 0x119   :  { %3957 = vmatpush.bf16.msra.mxu3 %v6483_v52  ;;  %v6505_v52 = vld [vmem:[%s8219_s1 + $0x980] sm:$0xff] }
 0x11a   :  { %3916 = vmatpush.bf16.msra.mxu0 %v6458_v53  ;;  %v6528_v53 = vld [vmem:[%s8219_s1 + $0xa38] sm:$0xff] }
 0x11b   :  { %3944 = vmatpush.bf16.msra.mxu2 %v6474_v54  ;;  %v6544_v54 = vld [vmem:[%s8219_s1 + $0xab8] sm:$0xff] }
 0x11c   :  { %3930 = vmatpush.bf16.msra.mxu1 %v6466_v57  ;;  %v4478_v57 = vld [vmem:[%s8220_s0 + $0x98] sm:$0xf] }
 0x11d   :  { %3958 = vmatpush.bf16.msra.mxu3 %v6482_v58  ;;  %v6195_v58 = vld [vmem:[%s8220_s0 + $0x158] sm:$0xf0] }
 0x11e   :  { %3917 = vmatpush.bf16.msra.mxu0 %v6457_v60  ;;  %v3695_v25 = vpop.f32.mrf.mxu0  ;;  %v6513_v60 = vld [vmem:[%s8219_s1 + $0x9c0] sm:$0xff]  ;;  %v4479_v2 = vor.u32 %v6195_v58, %v4478_v57  ;;  %v6583_v57 = vld [vmem:[%s8219_s1 + $0xbf0] sm:$0xff]  ;;  %v6558_v58 = vld [vmem:[%s8219_s1 + $0xb28] sm:$0xff] }
 0x11f   :  { %3945 = vmatpush.bf16.msra.mxu2 %v6473_v61  ;;  %v3696_v26 = vadd.f32 %v3695_v25, %v7694_v46  ;;  %v6515_v46 = vld [vmem:[%s8219_s1 + $0x9d0] sm:$0xff] }
 0x120   :  { %3931 = vmatpush.bf16.msra.mxu1 %v6465_v5  ;;  %v3709_v29 = vpop.f32.mrf.mxu1  ;;  %v6170_v61 = vld [vmem:[%s8220_s0 + $0x94] sm:$0xf] }
 0x121   :  { %3959 = vmatpush.bf16.msra.mxu3 %v6481_v6  ;;  %3918 = vmatmul.bf16.vlgmr.msra.gmra.mxu0 %v4455_v11  ;;  %v3710_v30 = vadd.f32 %v3709_v29, %v3696_v26  ;;  %v6526_v11 = vld [vmem:[%s8219_s1 + $0xa28] sm:$0xff]  ;;  %v6523_v25 = vld [vmem:[%s8219_s1 + $0xa10] sm:$0xff] }
 0x122   :  { %3966 = vmatpush.bf16.msrb.mxu0 %v6496_v63  ;;  %3946 = vmatmul.bf16.vlgmr.msra.gmra.mxu2 %v4463_v12  ;;  %v6171_v63 = vld [vmem:[%s8220_s0 + $0x9c] sm:$0xf]  ;;  %v6542_v12 = vld [vmem:[%s8219_s1 + $0xaa8] sm:$0xff]  ;;  %v6539_v26 = vld [vmem:[%s8219_s1 + $0xa90] sm:$0xff] }
 0x123   :  { %3994 = vmatpush.bf16.msrb.mxu2 %v6512_v0  ;;  %3932 = vmatmul.bf16.vlgmr.msra.gmra.mxu1 %v4459_v15  ;;  %v4480_v0 = vld [vmem:[%s8220_s0 + $0x15c] sm:$0xf0]  ;;  %v6522_v29 = vld [vmem:[%s8219_s1 + $0xa08] sm:$0xff] }
 0x124   :  { %3980 = vmatpush.bf16.msrb.mxu1 %v6504_v13  ;;  %3960 = vmatmul.bf16.vlgmr.msra.gmra.mxu3 %v4467_v16  ;;  %v4483_v6 = vor.u32 %v6171_v63, %v4480_v0  ;;  %v6534_v13 = vld [vmem:[%s8219_s1 + $0xa68] sm:$0xff]  ;;  %v6573_v63 = vld [vmem:[%s8219_s1 + $0xba0] sm:$0xff] }
 0x125   :  { %4008 = vmatpush.bf16.msrb.mxu3 %v6520_v14  ;;  %v3723_v35 = vpop.f32.mrf.mxu2  ;;  %v6550_v14 = vld [vmem:[%s8219_s1 + $0xae8] sm:$0xff]  ;;  %v6565_v0 = vld [vmem:[%s8219_s1 + $0xb60] sm:$0xff] }
 0x126   :  { %3967 = vmatpush.bf16.msrb.mxu0 %v6495_v17  ;;  %v3724_v36 = vadd.f32 %v3723_v35, %v3710_v30  ;;  %v3697_v39 = vpop.f32.mrf.mxu0  ;;  %v6525_v17 = vld [vmem:[%s8219_s1 + $0xa20] sm:$0xff]  ;;  %v6538_v30 = vld [vmem:[%s8219_s1 + $0xa88] sm:$0xff]  ;;  %v6560_v35 = vld [vmem:[%s8219_s1 + $0xb38] sm:$0xff] }
 0x127   :  { %3995 = vmatpush.bf16.msrb.mxu2 %v6511_v18  ;;  %v3737_v40 = vpop.f32.mrf.mxu3  ;;  %v7820_v41 = vadd.f32 %v3697_v39, %v7726_v62  ;;  %v4472_v62 = vld [vmem:[%s8220_s0 + $0x154] sm:$0xf0]  ;;  %v6541_v18 = vld [vmem:[%s8219_s1 + $0xaa0] sm:$0xff]  ;;  %v4494_v39 = vld [vmem:[%s8220_s0 + $0xa8] sm:$0xf] }
 0x128   :  { %3981 = vmatpush.bf16.msrb.mxu1 %v6503_v19  ;;  %v7822_v42 = vadd.f32 %v3737_v40, %v3724_v36  ;;  %v4475_v5 = vor.u32 %v6170_v61, %v4472_v62  ;;  %v6533_v19 = vld [vmem:[%s8219_s1 + $0xa60] sm:$0xff]  ;;  %v6576_v36 = vld [vmem:[%s8219_s1 + $0xbb8] sm:$0xff]  ;;  %v6197_v40 = vld [vmem:[%s8220_s0 + $0x168] sm:$0xf0] }
 0x129   :  { %4009 = vmatpush.bf16.msrb.mxu3 %v6519_v20  ;;  %v6549_v20 = vld [vmem:[%s8219_s1 + $0xae0] sm:$0xff]  ;;  %v6582_v61 = vld [vmem:[%s8219_s1 + $0xbe8] sm:$0xff] }
 0x12a   :  { %3968 = vmatpush.bf16.msrb.mxu0 %v6494_v21  ;;  %v6524_v21 = vld [vmem:[%s8219_s1 + $0xa18] sm:$0xff]  ;;  %v6557_v62 = vld [vmem:[%s8219_s1 + $0xb20] sm:$0xff] }
 0x12b   :  { %3996 = vmatpush.bf16.msrb.mxu2 %v6510_v22  ;;  %v6540_v22 = vld [vmem:[%s8219_s1 + $0xa98] sm:$0xff] }
 0x12c   :  { %3982 = vmatpush.bf16.msrb.mxu1 %v6502_v23  ;;  %v6532_v23 = vld [vmem:[%s8219_s1 + $0xa58] sm:$0xff] }
 0x12d   :  { %4010 = vmatpush.bf16.msrb.mxu3 %v6518_v24  ;;  %v6548_v24 = vld [vmem:[%s8219_s1 + $0xad8] sm:$0xff] }
 0x12e   :  { %3969 = vmatpush.bf16.msrb.mxu0 %v6493_v27  ;;  %v6531_v27 = vld [vmem:[%s8219_s1 + $0xa50] sm:$0xff] }
 0x12f   :  { %3997 = vmatpush.bf16.msrb.mxu2 %v6509_v28  ;;  %v6547_v28 = vld [vmem:[%s8219_s1 + $0xad0] sm:$0xff] }
 0x130   :  { %3983 = vmatpush.bf16.msrb.mxu1 %v6501_v31  ;;  %v6530_v31 = vld [vmem:[%s8219_s1 + $0xa48] sm:$0xff] }
 0x131   :  { %4011 = vmatpush.bf16.msrb.mxu3 %v6517_v32  ;;  %v6546_v32 = vld [vmem:[%s8219_s1 + $0xac8] sm:$0xff] }
 0x132   :  { %3970 = vmatpush.bf16.msrb.mxu0 %v6492_v33  ;;  %v6521_v33 = vld [vmem:[%s8219_s1 + $0xa00] sm:$0xff] }
 0x133   :  { %3998 = vmatpush.bf16.msrb.mxu2 %v6508_v34  ;;  %v6537_v34 = vld [vmem:[%s8219_s1 + $0xa80] sm:$0xff] }
 0x134   :  { %3984 = vmatpush.bf16.msrb.mxu1 %v6500_v37  ;;  %v4486_v37 = vld [vmem:[%s8220_s0 + $0xa0] sm:$0xf] }
 0x135   :  { %4012 = vmatpush.bf16.msrb.mxu3 %v6516_v38  ;;  %v6196_v38 = vld [vmem:[%s8220_s0 + $0x160] sm:$0xf0] }
 0x136   :  { %3971 = vmatpush.bf16.msrb.mxu0 %v6491_v43  ;;  %v6545_v43 = vld [vmem:[%s8219_s1 + $0xac0] sm:$0xff] }
 0x137   :  { %3999 = vmatpush.bf16.msrb.mxu2 %v6507_v44  ;;  %v6172_v44 = vld [vmem:[%s8220_s0 + $0xa4] sm:$0xf] }
 0x138   :  { %3985 = vmatpush.bf16.msrb.mxu1 %v6499_v45  ;;  %v4488_v45 = vld [vmem:[%s8220_s0 + $0x164] sm:$0xf0] }
 0x139   :  { %4013 = vmatpush.bf16.msrb.mxu3 %v6515_v46  ;;  %v6173_v46 = vld [vmem:[%s8220_s0 + $0xac] sm:$0xf] }
 0x13a   :  { %3972 = vmatpush.bf16.msrb.mxu0 %v6490_v47  ;;  %v4496_v47 = vld [vmem:[%s8220_s0 + $0x16c] sm:$0xf0] }
 0x13b   :  { %4000 = vmatpush.bf16.msrb.mxu2 %v6506_v48  ;;  %v4487_v48 = vor.u32 %v6196_v38, %v4486_v37  ;;  %v6586_v37 = vld [vmem:[%s8219_s1 + $0xc08] sm:$0xff]  ;;  %v6585_v38 = vld [vmem:[%s8219_s1 + $0xc00] sm:$0xff] }
 0x13c   :  { %3986 = vmatpush.bf16.msrb.mxu1 %v6498_v49  ;;  %v4495_v49 = vor.u32 %v6197_v40, %v4494_v39  ;;  %v4518_v39 = vld [vmem:[%s8220_s0 + $0xc0] sm:$0xf]  ;;  %v6200_v40 = vld [vmem:[%s8220_s0 + $0x180] sm:$0xf0] }
 0x13d   :  { %4014 = vmatpush.bf16.msrb.mxu3 %v6514_v50  ;;  %v6568_v50 = vld [vmem:[%s8219_s1 + $0xb78] sm:$0xff] }
 0x13e   :  { %3973 = vmatpush.bf16.msrb.mxu0 %v6489_v51  ;;  %v3751_v15 = vpop.f32.mrf.mxu0  ;;  %v6584_v51 = vld [vmem:[%s8219_s1 + $0xbf8] sm:$0xff] }
 0x13f   :  { %4001 = vmatpush.bf16.msrb.mxu2 %v6505_v52  ;;  %v7921_v16 = vadd.f32 %v3751_v15, %v7822_v42  ;;  %v6529_v42 = vld [vmem:[%s8219_s1 + $0xa40] sm:$0xff]  ;;  %v4491_v52 = vor.u32 %v6172_v44, %v4488_v45  ;;  %v3725_v44 = vpop.f32.mrf.mxu2  ;;  %v3739_v45 = vpop.f32.mrf.mxu3 }
 0x140   :  { %3987 = vmatpush.bf16.msrb.mxu1 %v6497_v59  ;;  %v6574_v59 = vld [vmem:[%s8219_s1 + $0xba8] sm:$0xff]  ;;  %v6569_v15 = vld [vmem:[%s8219_s1 + $0xb80] sm:$0xff] }
 0x141   :  { %4015 = vmatpush.bf16.msrb.mxu3 %v6513_v60  ;;  %3974 = vmatmul.bf16.vlgmr.msrb.gmra.mxu0 %v4471_v1  ;;  %v6566_v60 = vld [vmem:[%s8219_s1 + $0xb68] sm:$0xff]  ;;  %v6581_v1 = vld [vmem:[%s8219_s1 + $0xbe0] sm:$0xff] }
 0x142   :  { %4022 = vmatpush.bf16.msra.mxu0 %v6528_v53  ;;  %4002 = vmatmul.bf16.vlgmr.msrb.gmra.mxu2 %v4479_v2  ;;  %v4499_v53 = vor.u32 %v6173_v46, %v4496_v47  ;;  %v6556_v2 = vld [vmem:[%s8219_s1 + $0xb18] sm:$0xff] }
 0x143   :  { %4050 = vmatpush.bf16.msra.mxu2 %v6544_v54  ;;  %3988 = vmatmul.bf16.vlgmr.msrb.gmra.mxu1 %v4475_v5  ;;  %v6559_v54 = vld [vmem:[%s8219_s1 + $0xb30] sm:$0xff]  ;;  %v6580_v5 = vld [vmem:[%s8219_s1 + $0xbd8] sm:$0xff] }
 0x144   :  { %4036 = vmatpush.bf16.msra.mxu1 %v6536_v3  ;;  %4016 = vmatmul.bf16.vlgmr.msrb.gmra.mxu3 %v4483_v6  ;;  %v6572_v3 = vld [vmem:[%s8219_s1 + $0xb98] sm:$0xff]  ;;  %v6555_v6 = vld [vmem:[%s8219_s1 + $0xb10] sm:$0xff] }
 0x145   :  { %4064 = vmatpush.bf16.msra.mxu3 %v6552_v4  ;;  %v6564_v4 = vld [vmem:[%s8219_s1 + $0xb58] sm:$0xff] }
 0x146   :  { %4023 = vmatpush.bf16.msra.mxu0 %v6527_v7  ;;  %v6571_v7 = vld [vmem:[%s8219_s1 + $0xb90] sm:$0xff] }
 0x147   :  { %4051 = vmatpush.bf16.msra.mxu2 %v6543_v8  ;;  %v6563_v8 = vld [vmem:[%s8219_s1 + $0xb50] sm:$0xff]  ;;  %v3779_v47 = vpop.f32.mrf.mxu2 }
 0x148   :  { %4037 = vmatpush.bf16.msra.mxu1 %v6535_v9  ;;  %v6579_v9 = vld [vmem:[%s8219_s1 + $0xbd0] sm:$0xff] }
 0x149   :  { %4065 = vmatpush.bf16.msra.mxu3 %v6551_v10  ;;  %v6554_v10 = vld [vmem:[%s8219_s1 + $0xb08] sm:$0xff] }
 0x14a   :  { %4024 = vmatpush.bf16.msra.mxu0 %v6526_v11  ;;  %v6570_v11 = vld [vmem:[%s8219_s1 + $0xb88] sm:$0xff] }
 0x14b   :  { %4052 = vmatpush.bf16.msra.mxu2 %v6542_v12  ;;  %v6562_v12 = vld [vmem:[%s8219_s1 + $0xb48] sm:$0xff] }
 0x14c   :  { %4038 = vmatpush.bf16.msra.mxu1 %v6534_v13  ;;  %v6578_v13 = vld [vmem:[%s8219_s1 + $0xbc8] sm:$0xff] }
 0x14d   :  { %4066 = vmatpush.bf16.msra.mxu3 %v6550_v14  ;;  %v6553_v14 = vld [vmem:[%s8219_s1 + $0xb00] sm:$0xff] }
 0x14e   :  { %4025 = vmatpush.bf16.msra.mxu0 %v6525_v17  ;;  %v6592_v17 = vld [vmem:[%s8219_s1 + $0xc38] sm:$0xff] }
 0x14f   :  { %4053 = vmatpush.bf16.msra.mxu2 %v6541_v18  ;;  %v4502_v18 = vld [vmem:[%s8220_s0 + $0xb0] sm:$0xf] }
 0x150   :  { %4039 = vmatpush.bf16.msra.mxu1 %v6533_v19  ;;  %v6198_v19 = vld [vmem:[%s8220_s0 + $0x170] sm:$0xf0] }
 0x151   :  { %4067 = vmatpush.bf16.msra.mxu3 %v6549_v20  ;;  %v4510_v20 = vld [vmem:[%s8220_s0 + $0xb8] sm:$0xf] }
 0x152   :  { %4026 = vmatpush.bf16.msra.mxu0 %v6524_v21  ;;  %v6199_v21 = vld [vmem:[%s8220_s0 + $0x178] sm:$0xf0] }
 0x153   :  { %4054 = vmatpush.bf16.msra.mxu2 %v6540_v22  ;;  %v6561_v22 = vld [vmem:[%s8219_s1 + $0xb40] sm:$0xff] }
 0x154   :  { %4040 = vmatpush.bf16.msra.mxu1 %v6532_v23  ;;  %v6577_v23 = vld [vmem:[%s8219_s1 + $0xbc0] sm:$0xff] }
 0x155   :  { %4068 = vmatpush.bf16.msra.mxu3 %v6548_v24  ;;  %v6174_v24 = vld [vmem:[%s8220_s0 + $0xb4] sm:$0xf] }
 0x156   :  { %4027 = vmatpush.bf16.msra.mxu0 %v6523_v25  ;;  %v4504_v25 = vld [vmem:[%s8220_s0 + $0x174] sm:$0xf0] }
 0x157   :  { %4055 = vmatpush.bf16.msra.mxu2 %v6539_v26  ;;  %v6175_v26 = vld [vmem:[%s8220_s0 + $0xbc] sm:$0xf] }
 0x158   :  { %4041 = vmatpush.bf16.msra.mxu1 %v6531_v27  ;;  %v4512_v27 = vld [vmem:[%s8220_s0 + $0x17c] sm:$0xf0] }
 0x159   :  { %4069 = vmatpush.bf16.msra.mxu3 %v6547_v28  ;;  %v4503_v28 = vor.u32 %v6198_v19, %v4502_v18 }
 0x15a   :  { %4028 = vmatpush.bf16.msra.mxu0 %v6522_v29  ;;  %v4511_v29 = vor.u32 %v6199_v21, %v4510_v20 }
 0x15b   :  { %4056 = vmatpush.bf16.msra.mxu2 %v6538_v30  ;;  %v4507_v30 = vor.u32 %v6174_v24, %v4504_v25 }
 0x15c   :  { %4042 = vmatpush.bf16.msra.mxu1 %v6530_v31  ;;  %v4515_v31 = vor.u32 %v6175_v26, %v4512_v27 }
 0x15d   :  { %4070 = vmatpush.bf16.msra.mxu3 %v6546_v32  ;;  %v6591_v32 = vld [vmem:[%s8219_s1 + $0xc30] sm:$0xff] }
 0x15e   :  { %4029 = vmatpush.bf16.msra.mxu0 %v6521_v33  ;;  %v6590_v33 = vld [vmem:[%s8219_s1 + $0xc28] sm:$0xff] }
 0x15f   :  { %4057 = vmatpush.bf16.msra.mxu2 %v6537_v34  ;;  %v6589_v34 = vld [vmem:[%s8219_s1 + $0xc20] sm:$0xff] }
 0x160   :  { %4043 = vmatpush.bf16.msra.mxu1 %v6529_v42  ;;  %v4519_v42 = vor.u32 %v6200_v40, %v4518_v39  ;;  %v6599_v39 = vld [vmem:[%s8223_s3 + $0x30] sm:$0xff] }
 0x161   :  { %4071 = vmatpush.bf16.msra.mxu3 %v6545_v43  ;;  %4030 = vmatmul.bf16.vlgmr.msra.gmra.mxu0 %v4487_v48  ;;  %v3711_v43 = vpop.f32.mrf.mxu1  ;;  %v3753_v48 = vpop.f32.mrf.mxu0 }
 0x162   :  { %4078 = vmatpush.bf16.msrb.mxu0 %v6560_v35  ;;  %4058 = vmatmul.bf16.vlgmr.msra.gmra.mxu2 %v4495_v49  ;;  %v6588_v35 = vld [vmem:[%s8219_s1 + $0xc18] sm:$0xff]  ;;  %v3793_v49 = vpop.f32.mrf.mxu3 }
 0x163   :  { %4106 = vmatpush.bf16.msrb.mxu2 %v6576_v36  ;;  %4044 = vmatmul.bf16.vlgmr.msra.gmra.mxu1 %v4491_v52  ;;  %v6587_v36 = vld [vmem:[%s8219_s1 + $0xc10] sm:$0xff] }
 0x164   :  { %4092 = vmatpush.bf16.msrb.mxu1 %v6568_v50  ;;  %4072 = vmatmul.bf16.vlgmr.msra.gmra.mxu3 %v4499_v53 }
 0x165   :  { %4120 = vmatpush.bf16.msrb.mxu3 %v6584_v51  ;;  %v3781_v51 = vpop.f32.mrf.mxu2 }
 0x166   :  { %4079 = vmatpush.bf16.msrb.mxu0 %v6559_v54 }
 0x167   :  { %4107 = vmatpush.bf16.msrb.mxu2 %v6575_v55 }
 0x168   :  { %4093 = vmatpush.bf16.msrb.mxu1 %v6567_v56 }
 0x169   :  { %4121 = vmatpush.bf16.msrb.mxu3 %v6583_v57  ;;  %v3765_v46 = vpop.f32.mrf.mxu1  ;;  %v3807_v52 = vpop.f32.mrf.mxu0 }
 0x16a   :  { %4080 = vmatpush.bf16.msrb.mxu0 %v6558_v58  ;;  %v3795_v53 = vpop.f32.mrf.mxu3 }
 0x16b   :  { %4108 = vmatpush.bf16.msrb.mxu2 %v6574_v59 }
 0x16c   :  { %4094 = vmatpush.bf16.msrb.mxu1 %v6566_v60 }
 0x16d   :  { %4122 = vmatpush.bf16.msrb.mxu3 %v6582_v61  ;;  %v3835_v55 = vpop.f32.mrf.mxu2 }
 0x16e   :  { %4081 = vmatpush.bf16.msrb.mxu0 %v6557_v62 }
 0x16f   :  { %4109 = vmatpush.bf16.msrb.mxu2 %v6573_v63  ;;  %v3712_v63 = vadd.f32 %v3711_v43, %v7820_v41  ;;  %v6598_v43 = vld [vmem:[%s8223_s3 + $0x28] sm:$0xff] }
 0x170   :  { %4095 = vmatpush.bf16.msrb.mxu1 %v6565_v0 }
 0x171   :  { %4123 = vmatpush.bf16.msrb.mxu3 %v6581_v1  ;;  %v3767_v50 = vpop.f32.mrf.mxu1  ;;  %v3809_v56 = vpop.f32.mrf.mxu0  ;;  %v3726_v1 = vadd.f32 %v3725_v44, %v3712_v63 }
 0x172   :  { %4082 = vmatpush.bf16.msrb.mxu0 %v6556_v2  ;;  %v3849_v57 = vpop.f32.mrf.mxu3 }
 0x173   :  { %4110 = vmatpush.bf16.msrb.mxu2 %v6572_v3 }
 0x174   :  { %4096 = vmatpush.bf16.msrb.mxu1 %v6564_v4  ;;  %v3740_v4 = vadd.f32 %v3739_v45, %v3726_v1 }
 0x175   :  { %4124 = vmatpush.bf16.msrb.mxu3 %v6580_v5  ;;  %v3837_v59 = vpop.f32.mrf.mxu2 }
 0x176   :  { %4083 = vmatpush.bf16.msrb.mxu0 %v6555_v6  ;;  %v3754_v5 = vadd.f32 %v3753_v48, %v3740_v4  ;;  %v6597_v48 = vld [vmem:[%s8223_s3 + $0x20] sm:$0xff] }
 0x177   :  { %4111 = vmatpush.bf16.msrb.mxu2 %v6571_v7  ;;  %v3766_v7 = vadd.f32 %v3765_v46, %v7921_v16 }
 0x178   :  { %4097 = vmatpush.bf16.msrb.mxu1 %v6563_v8 }
 0x179   :  { %4125 = vmatpush.bf16.msrb.mxu3 %v6579_v9  ;;  %v3821_v54 = vpop.f32.mrf.mxu1 }
 0x17a   :  { %4084 = vmatpush.bf16.msrb.mxu0 %v6554_v10  ;;  %v3851_v61 = vpop.f32.mrf.mxu3  ;;  %v3780_v10 = vadd.f32 %v3779_v47, %v3766_v7 }
 0x17b   :  { %4112 = vmatpush.bf16.msrb.mxu2 %v6570_v11  ;;  %v3768_v11 = vadd.f32 %v3767_v50, %v3754_v5 }
 0x17c   :  { %4098 = vmatpush.bf16.msrb.mxu1 %v6562_v12 }
 0x17d   :  { %4126 = vmatpush.bf16.msrb.mxu3 %v6578_v13  ;;  %v3782_v12 = vadd.f32 %v3781_v51, %v3768_v11 }
 0x17e   :  { %4085 = vmatpush.bf16.msrb.mxu0 %v6553_v14  ;;  %v3863_v60 = vpop.f32.mrf.mxu0  ;;  %v3794_v14 = vadd.f32 %v3793_v49, %v3780_v10 }
 0x17f   :  { %4113 = vmatpush.bf16.msrb.mxu2 %v6569_v15 }
 0x180   :  { %4099 = vmatpush.bf16.msrb.mxu1 %v6561_v22  ;;  %v3808_v18 = vadd.f32 %v3807_v52, %v3794_v14 }
 0x181   :  { %4127 = vmatpush.bf16.msrb.mxu3 %v6577_v23  ;;  %4086 = vmatmul.bf16.vlgmr.msrb.gmra.mxu0 %v4503_v28  ;;  %v3823_v58 = vpop.f32.mrf.mxu1 }
 0x182   :  { %4134 = vmatpush.bf16.msra.mxu0 %v6592_v17  ;;  %4114 = vmatmul.bf16.vlgmr.msrb.gmra.mxu2 %v4511_v29  ;;  %v3796_v17 = vadd.f32 %v3795_v53, %v3782_v12  ;;  %v3822_v21 = vadd.f32 %v3821_v54, %v3808_v18 }
 0x183   :  { %4100 = vmatmul.bf16.vlgmr.msrb.gmra.mxu1 %v4507_v30 }
 0x184   :  { %4128 = vmatmul.bf16.vlgmr.msrb.gmra.mxu3 %v4515_v31  ;;  %v3810_v19 = vadd.f32 %v3809_v56, %v3796_v17  ;;  %v3836_v23 = vadd.f32 %v3835_v55, %v3822_v21  ;;  %v6596_v56 = vld [vmem:[%s8223_s3 + $0x18] sm:$0xff] }
 0x185   :  { %v3891_v0 = vpop.f32.mrf.mxu2  ;;  %v6608_v17 = vld [vmem:[%s8224_s5 + $0x38] sm:$0xff] }
 0x186   :  { %4135 = vmatpush.bf16.msra.mxu0 %v6591_v32  ;;  %v3865_v2 = vpop.f32.mrf.mxu0  ;;  %v3824_v24 = vadd.f32 %v3823_v58, %v3810_v19  ;;  %v3850_v16 = vadd.f32 %v3849_v57, %v3836_v23  ;;  %v6600_v32 = vld [vmem:[%s8223_s3 + $0x38] sm:$0xff]  ;;  %4304 = vmatpush.bf16.msra.mxu2 %v6608_v17 }
 0x187   :  { %v3905_v3 = vpop.f32.mrf.mxu3  ;;  %4219 = vmatpush.bf16.msra.mxu1 %v6600_v32 }
 0x188   :  { %v3838_v25 = vadd.f32 %v3837_v59, %v3824_v24  ;;  %v3864_v30 = vadd.f32 %v3863_v60, %v3850_v16  ;;  %v6606_v24 = vld [vmem:[%s8224_s5 + $0x28] sm:$0xff] }
 0x189   :  { %v3877_v62 = vpop.f32.mrf.mxu1 }
 0x18a   :  { %4136 = vmatpush.bf16.msra.mxu0 %v6590_v33  ;;  %v3852_v29 = vadd.f32 %v3851_v61, %v3838_v25  ;;  %v6595_v61 = vld [vmem:[%s8223_s3 + $0x10] sm:$0xff] }
 0x18b   :  { %4220 = vmatpush.bf16.msra.mxu1 %v6599_v39 }
 0x18c   :  { %v3866_v31 = vadd.f32 %v3865_v2, %v3852_v29 }
 0x18d   :  { %v3893_v8 = vpop.f32.mrf.mxu2 }
 0x18e   :  { %4137 = vmatpush.bf16.msra.mxu0 %v6589_v34  ;;  %v3878_v34 = vadd.f32 %v3877_v62, %v3864_v30 }
 0x18f   :  { %v3907_v13 = vpop.f32.mrf.mxu3  ;;  %4221 = vmatpush.bf16.msra.mxu1 %v6598_v43 }
 0x191   :  { %v3879_v6 = vpop.f32.mrf.mxu1 }
 0x192   :  { %4138 = vmatpush.bf16.msra.mxu0 %v6588_v35 }
 0x193   :  { %4222 = vmatpush.bf16.msra.mxu1 %v6597_v48 }
 0x196   :  { %4139 = vmatpush.bf16.msra.mxu0 %v6587_v36  ;;  %v3892_v36 = vadd.f32 %v3891_v0, %v3878_v34 }
 0x197   :  { %4223 = vmatpush.bf16.msra.mxu1 %v6596_v56 }
 0x198   :  { %v3906_v44 = vadd.f32 %v3905_v3, %v3892_v36  ;;  %v6594_v3 = vld [vmem:[%s8223_s3 + $0x8] sm:$0xff] }
 0x19a   :  { %4140 = vmatpush.bf16.msra.mxu0 %v6586_v37  ;;  %v3880_v37 = vadd.f32 %v3879_v6, %v3866_v31 }
 0x19b   :  { %4224 = vmatpush.bf16.msra.mxu1 %v6595_v61 }
 0x19c   :  { %v3894_v40 = vadd.f32 %v3893_v8, %v3880_v37  ;;  %v6593_v8 = vld [vmem:[%s8223_s3] sm:$0xff] }
 0x19e   :  { %4141 = vmatpush.bf16.msra.mxu0 %v6585_v38  ;;  %v3919_v9 = vpop.f32.mrf.mxu0  ;;  %v3908_v46 = vadd.f32 %v3907_v13, %v3894_v40 }
 0x19f   :  { %v3920_v47 = vadd.f32 %v3919_v9, %v3906_v44  ;;  %4225 = vmatpush.bf16.msra.mxu1 %v6594_v3 }
 0x1a0   :  { %v3933_v15 = vpop.f32.mrf.mxu1 }
 0x1a1   :  { %4142 = vmatmul.bf16.vlgmr.msra.gmra.mxu0 %v4519_v42  ;;  %v3934_v51 = vadd.f32 %v3933_v15, %v3920_v47 }
 0x1a3   :  { %4226 = vmatpush.bf16.msra.mxu1 %v6593_v8 }
 0x1a5   :  { %v3947_v41 = vpop.f32.mrf.mxu2 }
 0x1a6   :  { %v3921_v20 = vpop.f32.mrf.mxu0  ;;  %v3948_v54 = vadd.f32 %v3947_v41, %v3934_v51  ;;  %v6607_v41 = vld [vmem:[%s8224_s5 + $0x30] sm:$0xff] }
 0x1a7   :  { %v3961_v22 = vpop.f32.mrf.mxu3  ;;  %v3922_v49 = vadd.f32 %v3921_v20, %v3908_v46  ;;  %4305 = vmatpush.bf16.msra.mxu2 %v6607_v41  ;;  %v6603_v51 = vld [vmem:[%s8224_s5 + $0x10] sm:$0xff] }
 0x1a8   :  { %v3935_v26 = vpop.f32.mrf.mxu1  ;;  %v3962_v59 = vadd.f32 %v3961_v22, %v3948_v54 }
 0x1a9   :  { %v3936_v55 = vadd.f32 %v3935_v26, %v3922_v49 }
 0x1ab   :  { %4306 = vmatpush.bf16.msra.mxu2 %v6606_v24 }
 0x1ad   :  { %v3949_v27 = vpop.f32.mrf.mxu2 }
 0x1ae   :  { %v3950_v57 = vadd.f32 %v3949_v27, %v3936_v55  ;;  %v6610_v55 = vld [vmem:[%s8222_s4] ss:$0 sm:$0xff] }
 0x1af   :  { %v3963_v33 = vpop.f32.mrf.mxu3 }
 0x1b0   :  { %v3964_v62 = vadd.f32 %v3963_v33, %v3950_v57 }
 0x1be   :  { %v3975_v28 = vpop.f32.mrf.mxu0 }
 0x1bf   :  { %v3976_v63 = vadd.f32 %v3975_v28, %v3962_v59  ;;  %v6605_v28 = vld [vmem:[%s8224_s5 + $0x20] sm:$0xff] }
 0x1c0   :  { %v3989_v35 = vpop.f32.mrf.mxu1  ;;  %4307 = vmatpush.bf16.msra.mxu2 %v6605_v28 }
 0x1c1   :  { %v3990_v4 = vadd.f32 %v3989_v35, %v3976_v63 }
 0x1c5   :  { %v4003_v38 = vpop.f32.mrf.mxu2 }
 0x1c6   :  { %v3977_v42 = vpop.f32.mrf.mxu0  ;;  %v4004_v6 = vadd.f32 %v4003_v38, %v3990_v4 }
 0x1c7   :  { %v4017_v45 = vpop.f32.mrf.mxu3  ;;  %v3978_v1 = vadd.f32 %v3977_v42, %v3964_v62  ;;  %v6611_v62 = vld [vmem:[%s8225_s6] ss:$0 sm:$0xff] }
 0x1c8   :  { %v3991_v50 = vpop.f32.mrf.mxu1  ;;  %v4018_v11 = vadd.f32 %v4017_v45, %v4004_v6 }
 0x1c9   :  { %v3992_v7 = vadd.f32 %v3991_v50, %v3978_v1  ;;  %v6604_v50 = vld [vmem:[%s8224_s5 + $0x18] sm:$0xff] }
 0x1ca   :  { %4308 = vmatpush.bf16.msra.mxu2 %v6604_v50 }
 0x1cd   :  { %v4005_v52 = vpop.f32.mrf.mxu2 }
 0x1ce   :  { %v4006_v9 = vadd.f32 %v4005_v52, %v3992_v7  ;;  %4309 = vmatpush.bf16.msra.mxu2 %v6603_v51  ;;  %v6602_v52 = vld [vmem:[%s8224_s5 + $0x8] sm:$0xff] }
 0x1cf   :  { %v4019_v58 = vpop.f32.mrf.mxu3 }
 0x1d0   :  { %v4020_v14 = vadd.f32 %v4019_v58, %v4006_v9 }
 0x1d2   :  { %4310 = vmatpush.bf16.msra.mxu2 %v6602_v52 }
 0x1de   :  { %v4031_v53 = vpop.f32.mrf.mxu0 }
 0x1df   :  { %v4032_v15 = vadd.f32 %v4031_v53, %v4018_v11  ;;  %v6601_v53 = vld [vmem:[%s8224_s5] sm:$0xff] }
 0x1e0   :  { %v4045_v60 = vpop.f32.mrf.mxu1  ;;  %4311 = vmatpush.bf16.msra.mxu2 %v6601_v53 }
 0x1e1   :  { %v4046_v20 = vadd.f32 %v4045_v60, %v4032_v15 }
 0x1e5   :  { %v4059_v0 = vpop.f32.mrf.mxu2 }
 0x1e6   :  { %v4033_v2 = vpop.f32.mrf.mxu0  ;;  %v4060_v22 = vadd.f32 %v4059_v0, %v4046_v20 }
 0x1e7   :  { %v4073_v5 = vpop.f32.mrf.mxu3  ;;  %v4034_v18 = vadd.f32 %v4033_v2, %v4020_v14 }
 0x1e8   :  { %v4047_v10 = vpop.f32.mrf.mxu1  ;;  %v4074_v27 = vadd.f32 %v4073_v5, %v4060_v22 }
 0x1e9   :  { %v4048_v23 = vadd.f32 %v4047_v10, %v4034_v18 }
 0x1ed   :  { %v4061_v12 = vpop.f32.mrf.mxu2 }
 0x1ee   :  { %v4062_v26 = vadd.f32 %v4061_v12, %v4048_v23 }
 0x1ef   :  { %v4075_v19 = vpop.f32.mrf.mxu3 }
 0x1f0   :  { %v4076_v30 = vadd.f32 %v4075_v19, %v4062_v26 }
 0x1fe   :  { %v4087_v13 = vpop.f32.mrf.mxu0 }
 0x1ff   :  { %v4088_v31 = vadd.f32 %v4087_v13, %v4074_v27 }
 0x200   :  { %v4101_v21 = vpop.f32.mrf.mxu1 }
 0x201   :  { %v4102_v34 = vadd.f32 %v4101_v21, %v4088_v31 }
 0x205   :  { %v4115_v25 = vpop.f32.mrf.mxu2 }
 0x206   :  { %v4089_v16 = vpop.f32.mrf.mxu0  ;;  %v4116_v37 = vadd.f32 %v4115_v25, %v4102_v34 }
 0x207   :  { %v4129_v29 = vpop.f32.mrf.mxu3  ;;  %v4090_v32 = vadd.f32 %v4089_v16, %v4076_v30 }
 0x208   :  { %v4103_v33 = vpop.f32.mrf.mxu1  ;;  %v4130_v42 = vadd.f32 %v4129_v29, %v4116_v37 }
 0x209   :  { %v4104_v38 = vadd.f32 %v4103_v33, %v4090_v32 }
 0x20d   :  { %v4117_v35 = vpop.f32.mrf.mxu2 }
 0x20e   :  { %v4118_v39 = vadd.f32 %v4117_v35, %v4104_v38 }
 0x20f   :  { %v4131_v40 = vpop.f32.mrf.mxu3 }
 0x210   :  { %v4132_v43 = vadd.f32 %v4131_v40, %v4118_v39 }
 0x21e   :  { %v4143_v36 = vpop.f32.mrf.mxu0 }
 0x21f   :  { %v4144_v44 = vadd.f32 %v4143_v36, %v4130_v42 }
 0x221   :  { %v4148_v47 = vmax.f32 %v4144_v44, 0.0 }
 0x226   :  { %v4145_v45 = vpop.f32.mrf.mxu0 }
 0x227   :  { %v4146_v46 = vadd.f32 %v4145_v45, %v4132_v43 }
 0x229   :  { %v4149_v48 = vmax.f32 %v4146_v46, 0.0 }
 0x22b   :  { %v4150_v49 = vpack.c.bf16 %v4149_v48, %v4148_v47 }
 0x22d   :  { %4227 = vmatmul.bf16.vlgmr.msra.gmra.mxu1 %v4150_v49 }
 0x2aa   :  { %v4228_v54 = vpop.f32.mrf.mxu1 }
 0x2ab   :  { %v4229_v56 = vadd.f32 %v6610_v55, %v4228_v54 }
 0x2ad   :  { %v4233_v59 = vmax.f32 %v4229_v56, 0.0 }
 0x2b2   :  { %v4230_v57 = vpop.f32.mrf.mxu1 }
 0x2b3   :  { %v4231_v58 = vadd.f32 %v6610_v55, %v4230_v57 }
 0x2b5   :  { %v4234_v60 = vmax.f32 %v4231_v58, 0.0 }
 0x2b7   :  { %v4235_v61 = vpack.c.bf16 %v4234_v60, %v4233_v59 }
 0x2b9   :  { %4312 = vmatmul.bf16.vlgmr.msra.gmra.mxu2 %v4235_v61 }
 0x33c   :  { %v4313_v63 = vpop.f32.mrf.mxu2 }
 0x33d   :  { %v4314_v0 = vadd.f32 %v6611_v62, %v4313_v63 }
 0x33f   :  { %4318 = vst [vmem:[%s8226_s7] sm:$0xff] %v4314_v0 }
 0x344   :  { %v4315_v1 = vpop.f32.mrf.mxu2 }
 0x345   :  { %v4316_v2 = vadd.f32 %v6611_v62, %v4315_v1 }
 0x347   :  { %4319 = vst [vmem:[%s8226_s7 + $0x8] sm:$0xff] %v4316_v2 }

</bundles_post_ra>
